<compile_context>
chip_gen: v7x
topology: tpu7x:2x2x1
jax: 0.10.0
libtpu: 0.0.40
codegen_flags: <defaults>
</compile_context>

<pallas_src>
import math

import jax
import jax.numpy as jnp
from jax.experimental import pallas as pl
from jax.experimental.pallas import tpu as pltpu

# ---------------- configuration (small synthetic base model) ----------------
VOCAB = 50
HIDDEN = 128          # lane-dense hidden (per review: unmasked output stores)
HEADS = 2
HEAD_DIM = HIDDEN // HEADS
FFN = 256
BATCH = 2
SEQ = 8

ALPHA_INIT = 5.0
L_BOUND = -1.5
R_BOUND = 1.5

# Synthetic base-model parameters, flattened into ReparamModule.flat_param.
# wq|wk|wv are stored pre-fused as one (H, 3H) block and the bias / LayerNorm
# vectors in slab shapes so unflatten() is only free reshapes.
PARAM_SHAPES = {
    "emb":   (VOCAB, HIDDEN),
    "wqkv":  (HIDDEN, 3 * HIDDEN),
    "b_qkv": (3 * HIDDEN,),
    "wo":    (HIDDEN, HIDDEN),
    "w1":    (HIDDEN, FFN),
    "b_1":   (FFN,),
    "w2":    (FFN, HIDDEN),
    # rows: [b_o, ln1_gamma, ln1_beta, b_2, ln2_gamma, ln2_beta]
    "vech":  (6, HIDDEN),
}
FLAT_SIZE = sum(math.prod(s) for s in PARAM_SHAPES.values())

# ---- flat-parameter storage layout for the L0 patch kernel (padded ONCE) ----
LANES = 128
# 2048 rows = 1 MiB per array per buffer: amortizes the ~0.35us per-grid-step
# overhead against v7x's 3.2 TB/s HBM while 4 arrays x 2 buffers (~8 MiB) stays
# inside v5e's 16 MiB scoped-VMEM default.
MAX_PATCH_BLOCK_ROWS = 2048


def _plan_patch_layout(n_elems):
    rows = -(-n_elems // LANES)
    if rows > MAX_PATCH_BLOCK_ROWS:
        nblocks = -(-rows // MAX_PATCH_BLOCK_ROWS)
        nblocks += nblocks % 2      # even block count -> balanced v7x megacore shards
    elif rows >= 16:
        nblocks = 2                 # give v7x's two TensorCores one block each
    else:
        nblocks = 1
    per_block = -(-rows // nblocks)
    block_rows = -(-per_block // 8) * 8
    return block_rows, block_rows * nblocks


PATCH_BLOCK_ROWS, PATCH_ROWS = _plan_patch_layout(FLAT_SIZE)


def _pad_to_patch_layout(flat1d):
    """One-time (init) padding of a 1-D f32 vector into the (ROWS, 128) slab."""
    pad = PATCH_ROWS * LANES - flat1d.shape[0]
    return jnp.pad(flat1d, (0, pad)).reshape(PATCH_ROWS, LANES)


# ------------------------------ Pallas kernels -------------------------------
def _l0_patch_kernel(alpha_ref, pw_ref, fp_ref, out_ref):
    # Eval-mode L0Norm mask: hard_sigmoid(sigmoid(alpha)*(r-l)+l);
    # hard_sigmoid == clamp(0,1000).clamp(-1000,1) == clip(., 0, 1).
    s = jax.nn.sigmoid(alpha_ref[...]) * (R_BOUND - L_BOUND) + L_BOUND
    mask = jnp.clip(s, 0.0, 1.0)
    # flat_param.detach() + mask * patch_weight   (detach is a value no-op)
    out_ref[...] = fp_ref[...] + mask * pw_ref[...]


def _fused_encoder_kernel(ids_ref, mask_ref, emb_hbm, wqkv_ref, bqkv_ref,
                          wo_ref, w1_ref, b1_ref, w2_ref, vech_ref,
                          o_ref, xbuf, sems):
    """One VMEM-resident pass over the whole encoder block (single invocation)."""
    f32, bf16 = jnp.float32, jnp.bfloat16
    bs = BATCH * SEQ
    hidden = HIDDEN
    head_dim = HEAD_DIM

    # ---- fused embedding gather: one small DMA per token row (ids in SMEM) ----
    for i in range(bs):
        pltpu.make_async_copy(emb_hbm.at[pl.ds(ids_ref[i], 1), :],
                              xbuf.at[pl.ds(i, 1), :], sems.at[i]).start()
    for i in range(bs):
        pltpu.make_async_copy(emb_hbm.at[pl.ds(ids_ref[i], 1), :],
                              xbuf.at[pl.ds(i, 1), :], sems.at[i]).wait()
    x = xbuf[...]                                                    # (BS, H) f32

    # ---- fused Q|K|V projection: bf16 MXU operands, f32 accumulation ----
    qkv = jnp.dot(x.astype(bf16), wqkv_ref[...].astype(bf16),
                  preferred_element_type=f32) + bqkv_ref[...]        # (BS, 3H)

    # ---- block-diagonal additive attention bias, built in-kernel ----
    row_i = jax.lax.broadcasted_iota(jnp.int32, (bs, bs), 0)
    col_i = jax.lax.broadcasted_iota(jnp.int32, (bs, bs), 1)
    same = jnp.zeros((bs, bs), jnp.bool_)
    for b in range(BATCH):                      # comparison-only batch-id test
        lo, hi = b * SEQ, (b + 1) * SEQ
        same = same | ((row_i >= lo) & (row_i < hi) &
                       (col_i >= lo) & (col_i < hi))
    block_bias = jnp.where(same, 0.0, -1e9)                          # (BS, BS)
    key_bias = (mask_ref[...] - 1.0) * 1e9                           # (1, BS)
    bias = block_bias + key_bias

    scale = 1.0 / math.sqrt(head_dim)
    b_o = vech_ref[0:1, :]

    # ---- attention: loop over heads only (batches folded via block-diag bias);
    #      head-concat folded into per-head row-slices of wo (no lane concats) --
    attn = jnp.zeros((bs, hidden), f32) + b_o
    for h in range(HEADS):
        c = h * head_dim
        q = qkv[:, c:c + head_dim] * scale                           # (BS, D)
        k = qkv[:, hidden + c:hidden + c + head_dim]
        v = qkv[:, 2 * hidden + c:2 * hidden + c + head_dim]
        s = jax.lax.dot_general(q.astype(bf16), k.astype(bf16),
                                (((1,), (1,)), ((), ())),
                                preferred_element_type=f32) + bias   # (BS, BS)
        s = s - jnp.max(s, axis=-1, keepdims=True)
        p = jnp.exp(s)
        p = p * pl.reciprocal(jnp.sum(p, axis=-1, keepdims=True), approx=True)
        ctx = jnp.dot(p.astype(bf16), v.astype(bf16),
                      preferred_element_type=f32)                    # (BS, D)
        attn = attn + jnp.dot(ctx.astype(bf16),
                              wo_ref[c:c + head_dim, :].astype(bf16),
                              preferred_element_type=f32)            # (BS, H)

    def add_ln(a, res, g, beta):
        y = a + res
        mu = jnp.mean(y, axis=-1, keepdims=True)
        yc = y - mu
        var = jnp.mean(yc * yc, axis=-1, keepdims=True)
        return yc * jax.lax.rsqrt(var + 1e-5) * g + beta

    h1 = add_ln(attn, x, vech_ref[1:2, :], vech_ref[2:3, :])

    ff = jnp.dot(h1.astype(bf16), w1_ref[...].astype(bf16),
                 preferred_element_type=f32) + b1_ref[...]
    # TODO(synk): PyTorch/BERT exact GELU is the erf form; the tanh approximation
    #             is used here (and in the reference) for guaranteed lowering.
    ff = jax.nn.gelu(ff)
    ff = jnp.dot(ff.astype(bf16), w2_ref[...].astype(bf16),
                 preferred_element_type=f32) + vech_ref[3:4, :]

    # Lane-dense (BS, 128) store -> unmasked vst.
    o_ref[...] = add_ln(ff, h1, vech_ref[4:5, :], vech_ref[5:6, :]).astype(o_ref.dtype)


# ------------------------------- wrappers ------------------------------------
def apply_l0_patch(alpha2d, patch2d, flat2d):
    """flat_param + hard_sigmoid(sigmoid(alpha)*(r-l)+l) * patch_weight.

    Operands are already stored in the padded (PATCH_ROWS, 128) layout, so this
    is a pure streaming kernel: no per-forward padding or output slicing.
    """
    rows, lanes = flat2d.shape
    spec = pl.BlockSpec((PATCH_BLOCK_ROWS, lanes), lambda i: (i, 0))
    return pl.pallas_call(
        _l0_patch_kernel,
        grid=(rows // PATCH_BLOCK_ROWS,),
        out_shape=jax.ShapeDtypeStruct((rows, lanes), jnp.float32),
        in_specs=[spec, spec, spec],
        out_specs=spec,
        compiler_params=pltpu.CompilerParams(
            dimension_semantics=("parallel",),
            vmem_limit_bytes=32 * 1024 * 1024),
    )(alpha2d, patch2d, flat2d)


def fused_encoder(input_ids, attention_mask, p):
    bs = BATCH * SEQ
    ids = input_ids.reshape(-1).astype(jnp.int32)
    mask = attention_mask.reshape(1, -1).astype(jnp.float32)

    # NOTE: single-invocation design is sized for this toy config.  For real
    # sequence lengths, add a grid over row-tiles of the activations with the
    # weight index_maps returning a constant block (weights stay resident) so it
    # fits v7x's 64 MiB VMEM and regains DMA/compute pipelining.
    grid_spec = pltpu.PrefetchScalarGridSpec(
        num_scalar_prefetch=1,             # input_ids -> SMEM for the DMA gather
        grid=(1,),
        in_specs=[
            pl.BlockSpec((1, bs), lambda i, ids: (0, 0)),               # mask
            pl.BlockSpec(memory_space=pl.ANY),                          # emb (HBM)
            pl.BlockSpec((HIDDEN, 3 * HIDDEN), lambda i, ids: (0, 0)),  # wqkv
            pl.BlockSpec((1, 3 * HIDDEN), lambda i, ids: (0, 0)),       # b_qkv
            pl.BlockSpec((HIDDEN, HIDDEN), lambda i, ids: (0, 0)),      # wo
            pl.BlockSpec((HIDDEN, FFN), lambda i, ids: (0, 0)),         # w1
            pl.BlockSpec((1, FFN), lambda i, ids: (0, 0)),              # b1
            pl.BlockSpec((FFN, HIDDEN), lambda i, ids: (0, 0)),         # w2
            pl.BlockSpec((6, HIDDEN), lambda i, ids: (0, 0)),           # vec slab
        ],
        out_specs=pl.BlockSpec((bs, HIDDEN), lambda i, ids: (0, 0)),
        scratch_shapes=[pltpu.VMEM((bs, HIDDEN), jnp.float32),
                        pltpu.SemaphoreType.DMA((bs,))],
    )
    out = pl.pallas_call(
        _fused_encoder_kernel,
        grid_spec=grid_spec,
        out_shape=jax.ShapeDtypeStruct((bs, HIDDEN), jnp.float32),
        compiler_params=pltpu.CompilerParams(dimension_semantics=("arbitrary",)),
    )(ids, mask, p["emb"], p["wqkv"], p["b_qkv"].reshape(1, -1),
      p["wo"], p["w1"], p["b_1"].reshape(1, -1), p["w2"], p["vech"])
    return out.reshape(BATCH, SEQ, HIDDEN)


# ------------------------ synthetic ReparamModule -----------------------------
def unflatten(flat):
    out, idx = {}, 0
    for name, shape in PARAM_SHAPES.items():
        size = math.prod(shape)
        out[name] = flat[idx:idx + size].reshape(shape)
        idx += size
    return out


def transformer_forward(flat_patched_2d, input_ids, attention_mask):
    # (PATCH_ROWS, 128) -> flat view is a free contiguous reshape; the padding
    # tail beyond FLAT_SIZE is simply never read by unflatten().
    p = unflatten(flat_patched_2d.reshape(-1))
    return fused_encoder(input_ids, attention_mask, p)


# --------------------- DiffPruningTransformer.forward ------------------------
@jax.jit
def diff_pruning_transformer_forward(params, input_ids, attention_mask):
    # TODO(synk): training-mode stochastic mask (uniform_() concrete-dropout
    #             sampling + penalty) not implemented; eval-mode semantics used
    #             (penalty = 0), matching L0Norm._get_mask() under training=False.
    flat_patched = apply_l0_patch(params["alpha"],
                                  params["patch_weight"],
                                  params["flat_param"])
    sequence_output = transformer_forward(flat_patched, input_ids, attention_mask)
    penalty = jnp.asarray(0, dtype=jnp.int32)      # torch.tensor(0) in eval mode
    # outputs[:1] + (penalty,) + outputs[1:]
    return (sequence_output, penalty)


# ------------------------------ pure-JAX reference ----------------------------
def _reference_forward(params, input_ids, attention_mask):
    alpha = params["alpha"].reshape(-1)[:FLAT_SIZE]
    pw = params["patch_weight"].reshape(-1)[:FLAT_SIZE]
    fp = params["flat_param"].reshape(-1)[:FLAT_SIZE]
    s = jax.nn.sigmoid(alpha) * (R_BOUND - L_BOUND) + L_BOUND
    flat = fp + jnp.clip(s, 0.0, 1.0) * pw
    p = unflatten(flat)

    b, sq, hd = input_ids.shape[0], input_ids.shape[1], HIDDEN
    x = jnp.take(p["emb"], input_ids, axis=0)                        # (B, S, H)
    wq, wk, wv = p["wqkv"][:, :hd], p["wqkv"][:, hd:2 * hd], p["wqkv"][:, 2 * hd:]
    bq, bk, bv = p["b_qkv"][:hd], p["b_qkv"][hd:2 * hd], p["b_qkv"][2 * hd:]

    def heads(t):
        return t.reshape(b, sq, HEADS, HEAD_DIM).transpose(0, 2, 1, 3)

    q = heads(x @ wq + bq)
    k = heads(x @ wk + bk)
    v = heads(x @ wv + bv)
    bias = (1.0 - attention_mask.astype(jnp.float32)) * -1e9
    scores = jnp.einsum("bhqd,bhkd->bhqk", q, k) / math.sqrt(HEAD_DIM)
    scores = scores + bias[:, None, None, :]
    probs = jax.nn.softmax(scores, axis=-1)
    ctx = jnp.einsum("bhqk,bhkd->bhqd", probs, v)
    ctx = ctx.transpose(0, 2, 1, 3).reshape(b, sq, hd)

    bo, ln1_g, ln1_b, b2, ln2_g, ln2_b = (p["vech"][i] for i in range(6))

    def ln(t, g, bb):
        mu = jnp.mean(t, axis=-1, keepdims=True)
        tc = t - mu
        var = jnp.mean(tc * tc, axis=-1, keepdims=True)
        return tc * jax.lax.rsqrt(var + 1e-5) * g + bb

    h1 = ln(ctx @ p["wo"] + bo + x, ln1_g, ln1_b)
    ff = jax.nn.gelu(h1 @ p["w1"] + p["b_1"])
    ff = ff @ p["w2"] + b2
    return ln(ff + h1, ln2_g, ln2_b)


# ---------------------------------- main --------------------------------------
if __name__ == "__main__":
    key = jax.random.PRNGKey(0)
    k_flat, k_patch, k_ids = jax.random.split(key, 3)

    params = {
        # base-model weights (ReparamModule.flat_param), padded ONCE at init
        "flat_param": _pad_to_patch_layout(
            0.02 * jax.random.normal(k_flat, (FLAT_SIZE,), jnp.float32)),
        # L0Norm.alpha = zeros + alpha_init
        "alpha": jnp.full((PATCH_ROWS, LANES), ALPHA_INIT, jnp.float32),
        # patch_weight (zeros at init; nonzero here to exercise the mask path)
        "patch_weight": _pad_to_patch_layout(
            0.01 * jax.random.normal(k_patch, (FLAT_SIZE,), jnp.float32)),
    }

    input_ids = jax.random.randint(k_ids, (BATCH, SEQ), 0, VOCAB, dtype=jnp.int32)
    attention_mask = jnp.ones((BATCH, SEQ), jnp.int32)
    attention_mask = attention_mask.at[1, SEQ - 2:].set(0)   # exercise masking

    seq_out, penalty = diff_pruning_transformer_forward(params, input_ids,
                                                        attention_mask)
    jax.block_until_ready((seq_out, penalty))

    assert seq_out.shape == (BATCH, SEQ, HIDDEN)
    assert bool(jnp.all(jnp.isfinite(seq_out)))

    ref = _reference_forward(params, input_ids, attention_mask)
    # bf16 MXU operands + approx softmax reciprocal in the kernel vs f32 reference
    assert bool(jnp.allclose(seq_out, ref, atol=2e-2, rtol=2e-2)), (
        "kernel output diverges from pure-JAX reference")

    print("KERNEL_OK")
</pallas_src>

<mosaic_0001>
module attributes {stable_mosaic.version = 11 : i64} {
  func.func @_l0_patch_kernel(%arg0: i32, %arg1: memref<544x128xf32, #tpu.memory_space<vmem>>, %arg2: memref<544x128xf32, #tpu.memory_space<vmem>>, %arg3: memref<544x128xf32, #tpu.memory_space<vmem>>, %arg4: memref<544x128xf32, #tpu.memory_space<vmem>>) attributes {dimension_semantics = [#tpu.dimension_semantics<parallel>], iteration_bounds = array<i64: 2>, scalar_prefetch = 0 : i64, scratch_operands = 0 : i64, tpu.core_type = #tpu.core_type<tc>, window_params = [{transform_indices = @transform_0, window_bounds = array<i64: 544, 128>}, {transform_indices = @transform_1, window_bounds = array<i64: 544, 128>}, {transform_indices = @transform_2, window_bounds = array<i64: 544, 128>}, {transform_indices = @transform_3, window_bounds = array<i64: 544, 128>}]} {
    %c0 = arith.constant 0 : index
    %c0_0 = arith.constant 0 : index
    %0 = vector.load %arg1[%c0, %c0_0] : memref<544x128xf32, #tpu.memory_space<vmem>>, vector<544x128xf32>
    %1 = arith.negf %0 : vector<544x128xf32>
    %2 = math.exp %1 : vector<544x128xf32>
    %cst = arith.constant 1.000000e+00 : f32
    %3 = vector.broadcast %cst : f32 to vector<544x128xf32>
    %4 = arith.addf %3, %2 : vector<544x128xf32>
    %5 = arith.divf %3, %4 : vector<544x128xf32>
    %cst_1 = arith.constant 3.000000e+00 : f32
    %6 = vector.broadcast %cst_1 : f32 to vector<544x128xf32>
    %7 = arith.mulf %5, %6 : vector<544x128xf32>
    %cst_2 = arith.constant -1.500000e+00 : f32
    %8 = vector.broadcast %cst_2 : f32 to vector<544x128xf32>
    %9 = arith.addf %7, %8 : vector<544x128xf32>
    %cst_3 = arith.constant 0.000000e+00 : f32
    %cst_4 = arith.constant 1.000000e+00 : f32
    %10 = vector.broadcast %cst_3 : f32 to vector<544x128xf32>
    %11 = arith.maximumf %10, %9 : vector<544x128xf32>
    %12 = vector.broadcast %cst_4 : f32 to vector<544x128xf32>
    %13 = arith.minimumf %12, %11 : vector<544x128xf32>
    %c0_5 = arith.constant 0 : index
    %c0_6 = arith.constant 0 : index
    %14 = vector.load %arg3[%c0_5, %c0_6] : memref<544x128xf32, #tpu.memory_space<vmem>>, vector<544x128xf32>
    %c0_7 = arith.constant 0 : index
    %c0_8 = arith.constant 0 : index
    %15 = vector.load %arg2[%c0_7, %c0_8] : memref<544x128xf32, #tpu.memory_space<vmem>>, vector<544x128xf32>
    %16 = arith.mulf %13, %15 : vector<544x128xf32>
    %17 = arith.addf %14, %16 : vector<544x128xf32>
    %c0_9 = arith.constant 0 : index
    %c0_10 = arith.constant 0 : index
    %18 = vector.load %arg4[%c0_9, %c0_10] : memref<544x128xf32, #tpu.memory_space<vmem>>, vector<544x128xf32>
    tpu.vector_store %arg4[%c0_9, %c0_10], %17 {strides = array<i32>} : memref<544x128xf32, #tpu.memory_space<vmem>>, vector<544x128xf32>,
    return
  }
  func.func @transform_0(%arg0: i32) -> (i32, i32) {
    %c0_i32 = arith.constant 0 : i32
    %c0_i32_0 = arith.constant 0 : i32
    return %arg0, %c0_i32 : i32, i32
  }
  func.func @transform_1(%arg0: i32) -> (i32, i32) {
    %c0_i32 = arith.constant 0 : i32
    %c0_i32_0 = arith.constant 0 : i32
    return %arg0, %c0_i32 : i32, i32
  }
  func.func @transform_2(%arg0: i32) -> (i32, i32) {
    %c0_i32 = arith.constant 0 : i32
    %c0_i32_0 = arith.constant 0 : i32
    return %arg0, %c0_i32 : i32, i32
  }
  func.func @transform_3(%arg0: i32) -> (i32, i32) {
    %c0_i32 = arith.constant 0 : i32
    %c0_i32_0 = arith.constant 0 : i32
    return %arg0, %c0_i32 : i32, i32
  }
}

module attributes {stable_mosaic.version = 11 : i64} {
  func.func @_fused_encoder_kernel(%arg0: i32, %arg1: memref<16xi32, #tpu.memory_space<smem>>, %arg2: memref<1x16xf32, #tpu.memory_space<vmem>>, %arg3: memref<50x128xf32, #tpu.memory_space<any>>, %arg4: memref<128x384xf32, #tpu.memory_space<vmem>>, %arg5: memref<1x384xf32, #tpu.memory_space<vmem>>, %arg6: memref<128x128xf32, #tpu.memory_space<vmem>>, %arg7: memref<128x256xf32, #tpu.memory_space<vmem>>, %arg8: memref<1x256xf32, #tpu.memory_space<vmem>>, %arg9: memref<256x128xf32, #tpu.memory_space<vmem>>, %arg10: memref<6x128xf32, #tpu.memory_space<vmem>>, %arg11: memref<16x128xf32, #tpu.memory_space<vmem>>, %arg12: memref<16x128xf32, #tpu.memory_space<vmem>>, %arg13: memref<16x!tpu.dma_semaphore, #tpu.memory_space<semaphore_mem>>) attributes {dimension_semantics = [#tpu.dimension_semantics<arbitrary>], iteration_bounds = array<i64: 1>, scalar_prefetch = 1 : i64, scratch_operands = 2 : i64, tpu.core_type = #tpu.core_type<tc>, window_params = [{pipeline_mode = #tpu.pipeline_mode<synchronous>, transform_indices = @transform_0, window_bounds = array<i64: 1, 16>}, {}, {pipeline_mode = #tpu.pipeline_mode<synchronous>, transform_indices = @transform_2, window_bounds = array<i64: 128, 384>}, {pipeline_mode = #tpu.pipeline_mode<synchronous>, transform_indices = @transform_3, window_bounds = array<i64: 1, 384>}, {pipeline_mode = #tpu.pipeline_mode<synchronous>, transform_indices = @transform_4, window_bounds = array<i64: 128, 128>}, {pipeline_mode = #tpu.pipeline_mode<synchronous>, transform_indices = @transform_5, window_bounds = array<i64: 128, 256>}, {pipeline_mode = #tpu.pipeline_mode<synchronous>, transform_indices = @transform_6, window_bounds = array<i64: 1, 256>}, {pipeline_mode = #tpu.pipeline_mode<synchronous>, transform_indices = @transform_7, window_bounds = array<i64: 256, 128>}, {pipeline_mode = #tpu.pipeline_mode<synchronous>, transform_indices = @transform_8, window_bounds = array<i64: 6, 128>}, {pipeline_mode = #tpu.pipeline_mode<synchronous>, transform_indices = @transform_9, window_bounds = array<i64: 16, 128>}]} {
    %c0 = arith.constant 0 : index
    %0 = memref.load %arg1[%c0] : memref<16xi32, #tpu.memory_space<smem>>
    %c0_i32 = arith.constant 0 : i32
    %c0_i32_0 = arith.constant 0 : i32
    %1 = tpu.memref_slice %arg3[%0, %c0_i32_0] : memref<50x128xf32, #tpu.memory_space<any>> -> memref<1x128xf32, #tpu.memory_space<any>>
    %c0_i32_1 = arith.constant 0 : i32
    %c0_i32_2 = arith.constant 0 : i32
    %2 = tpu.memref_slice %arg12[%c0_i32_1, %c0_i32_2] : memref<16x128xf32, #tpu.memory_space<vmem>> -> memref<1x128xf32, #tpu.memory_space<vmem>>
    %3 = tpu.memref_slice %arg13[%c0_i32] : memref<16x!tpu.dma_semaphore, #tpu.memory_space<semaphore_mem>> -> memref<1x!tpu.dma_semaphore, #tpu.memory_space<semaphore_mem>>
    %4 = tpu.memref_squeeze %3 : memref<1x!tpu.dma_semaphore, #tpu.memory_space<semaphore_mem>> -> memref<!tpu.dma_semaphore, #tpu.memory_space<semaphore_mem>>
    tpu.enqueue_dma source(%1 : memref<1x128xf32, #tpu.memory_space<any>>) target(%2 : memref<1x128xf32, #tpu.memory_space<vmem>>) target_semaphore(%4 : memref<!tpu.dma_semaphore, #tpu.memory_space<semaphore_mem>>)
    %c1 = arith.constant 1 : index
    %5 = memref.load %arg1[%c1] : memref<16xi32, #tpu.memory_space<smem>>
    %c1_i32 = arith.constant 1 : i32
    %c0_i32_3 = arith.constant 0 : i32
    %6 = tpu.memref_slice %arg3[%5, %c0_i32_3] : memref<50x128xf32, #tpu.memory_space<any>> -> memref<1x128xf32, #tpu.memory_space<any>>
    %c1_i32_4 = arith.constant 1 : i32
    %c0_i32_5 = arith.constant 0 : i32
    %7 = tpu.memref_slice %arg12[%c1_i32_4, %c0_i32_5] : memref<16x128xf32, #tpu.memory_space<vmem>> -> memref<1x128xf32, #tpu.memory_space<vmem>>
    %8 = tpu.memref_slice %arg13[%c1_i32] : memref<16x!tpu.dma_semaphore, #tpu.memory_space<semaphore_mem>> -> memref<1x!tpu.dma_semaphore, #tpu.memory_space<semaphore_mem>>
    %9 = tpu.memref_squeeze %8 : memref<1x!tpu.dma_semaphore, #tpu.memory_space<semaphore_mem>> -> memref<!tpu.dma_semaphore, #tpu.memory_space<semaphore_mem>>
    tpu.enqueue_dma source(%6 : memref<1x128xf32, #tpu.memory_space<any>>) target(%7 : memref<1x128xf32, #tpu.memory_space<vmem>>) target_semaphore(%9 : memref<!tpu.dma_semaphore, #tpu.memory_space<semaphore_mem>>)
    %c2 = arith.constant 2 : index
    %10 = memref.load %arg1[%c2] : memref<16xi32, #tpu.memory_space<smem>>
    %c2_i32 = arith.constant 2 : i32
    %c0_i32_6 = arith.constant 0 : i32
    %11 = tpu.memref_slice %arg3[%10, %c0_i32_6] : memref<50x128xf32, #tpu.memory_space<any>> -> memref<1x128xf32, #tpu.memory_space<any>>
    %c2_i32_7 = arith.constant 2 : i32
    %c0_i32_8 = arith.constant 0 : i32
    %12 = tpu.memref_slice %arg12[%c2_i32_7, %c0_i32_8] : memref<16x128xf32, #tpu.memory_space<vmem>> -> memref<1x128xf32, #tpu.memory_space<vmem>>
    %13 = tpu.memref_slice %arg13[%c2_i32] : memref<16x!tpu.dma_semaphore, #tpu.memory_space<semaphore_mem>> -> memref<1x!tpu.dma_semaphore, #tpu.memory_space<semaphore_mem>>
    %14 = tpu.memref_squeeze %13 : memref<1x!tpu.dma_semaphore, #tpu.memory_space<semaphore_mem>> -> memref<!tpu.dma_semaphore, #tpu.memory_space<semaphore_mem>>
    tpu.enqueue_dma source(%11 : memref<1x128xf32, #tpu.memory_space<any>>) target(%12 : memref<1x128xf32, #tpu.memory_space<vmem>>) target_semaphore(%14 : memref<!tpu.dma_semaphore, #tpu.memory_space<semaphore_mem>>)
    %c3 = arith.constant 3 : index
    %15 = memref.load %arg1[%c3] : memref<16xi32, #tpu.memory_space<smem>>
    %c3_i32 = arith.constant 3 : i32
    %c0_i32_9 = arith.constant 0 : i32
    %16 = tpu.memref_slice %arg3[%15, %c0_i32_9] : memref<50x128xf32, #tpu.memory_space<any>> -> memref<1x128xf32, #tpu.memory_space<any>>
    %c3_i32_10 = arith.constant 3 : i32
    %c0_i32_11 = arith.constant 0 : i32
    %17 = tpu.memref_slice %arg12[%c3_i32_10, %c0_i32_11] : memref<16x128xf32, #tpu.memory_space<vmem>> -> memref<1x128xf32, #tpu.memory_space<vmem>>
    %18 = tpu.memref_slice %arg13[%c3_i32] : memref<16x!tpu.dma_semaphore, #tpu.memory_space<semaphore_mem>> -> memref<1x!tpu.dma_semaphore, #tpu.memory_space<semaphore_mem>>
    %19 = tpu.memref_squeeze %18 : memref<1x!tpu.dma_semaphore, #tpu.memory_space<semaphore_mem>> -> memref<!tpu.dma_semaphore, #tpu.memory_space<semaphore_mem>>
    tpu.enqueue_dma source(%16 : memref<1x128xf32, #tpu.memory_space<any>>) target(%17 : memref<1x128xf32, #tpu.memory_space<vmem>>) target_semaphore(%19 : memref<!tpu.dma_semaphore, #tpu.memory_space<semaphore_mem>>)
    %c4 = arith.constant 4 : index
    %20 = memref.load %arg1[%c4] : memref<16xi32, #tpu.memory_space<smem>>
    %c4_i32 = arith.constant 4 : i32
    %c0_i32_12 = arith.constant 0 : i32
    %21 = tpu.memref_slice %arg3[%20, %c0_i32_12] : memref<50x128xf32, #tpu.memory_space<any>> -> memref<1x128xf32, #tpu.memory_space<any>>
    %c4_i32_13 = arith.constant 4 : i32
    %c0_i32_14 = arith.constant 0 : i32
    %22 = tpu.memref_slice %arg12[%c4_i32_13, %c0_i32_14] : memref<16x128xf32, #tpu.memory_space<vmem>> -> memref<1x128xf32, #tpu.memory_space<vmem>>
    %23 = tpu.memref_slice %arg13[%c4_i32] : memref<16x!tpu.dma_semaphore, #tpu.memory_space<semaphore_mem>> -> memref<1x!tpu.dma_semaphore, #tpu.memory_space<semaphore_mem>>
    %24 = tpu.memref_squeeze %23 : memref<1x!tpu.dma_semaphore, #tpu.memory_space<semaphore_mem>> -> memref<!tpu.dma_semaphore, #tpu.memory_space<semaphore_mem>>
    tpu.enqueue_dma source(%21 : memref<1x128xf32, #tpu.memory_space<any>>) target(%22 : memref<1x128xf32, #tpu.memory_space<vmem>>) target_semaphore(%24 : memref<!tpu.dma_semaphore, #tpu.memory_space<semaphore_mem>>)
    %c5 = arith.constant 5 : index
    %25 = memref.load %arg1[%c5] : memref<16xi32, #tpu.memory_space<smem>>
    %c5_i32 = arith.constant 5 : i32
    %c0_i32_15 = arith.constant 0 : i32
    %26 = tpu.memref_slice %arg3[%25, %c0_i32_15] : memref<50x128xf32, #tpu.memory_space<any>> -> memref<1x128xf32, #tpu.memory_space<any>>
    %c5_i32_16 = arith.constant 5 : i32
    %c0_i32_17 = arith.constant 0 : i32
    %27 = tpu.memref_slice %arg12[%c5_i32_16, %c0_i32_17] : memref<16x128xf32, #tpu.memory_space<vmem>> -> memref<1x128xf32, #tpu.memory_space<vmem>>
    %28 = tpu.memref_slice %arg13[%c5_i32] : memref<16x!tpu.dma_semaphore, #tpu.memory_space<semaphore_mem>> -> memref<1x!tpu.dma_semaphore, #tpu.memory_space<semaphore_mem>>
    %29 = tpu.memref_squeeze %28 : memref<1x!tpu.dma_semaphore, #tpu.memory_space<semaphore_mem>> -> memref<!tpu.dma_semaphore, #tpu.memory_space<semaphore_mem>>
    tpu.enqueue_dma source(%26 : memref<1x128xf32, #tpu.memory_space<any>>) target(%27 : memref<1x128xf32, #tpu.memory_space<vmem>>) target_semaphore(%29 : memref<!tpu.dma_semaphore, #tpu.memory_space<semaphore_mem>>)
    %c6 = arith.constant 6 : index
    %30 = memref.load %arg1[%c6] : memref<16xi32, #tpu.memory_space<smem>>
    %c6_i32 = arith.constant 6 : i32
    %c0_i32_18 = arith.constant 0 : i32
    %31 = tpu.memref_slice %arg3[%30, %c0_i32_18] : memref<50x128xf32, #tpu.memory_space<any>> -> memref<1x128xf32, #tpu.memory_space<any>>
    %c6_i32_19 = arith.constant 6 : i32
    %c0_i32_20 = arith.constant 0 : i32
    %32 = tpu.memref_slice %arg12[%c6_i32_19, %c0_i32_20] : memref<16x128xf32, #tpu.memory_space<vmem>> -> memref<1x128xf32, #tpu.memory_space<vmem>>
    %33 = tpu.memref_slice %arg13[%c6_i32] : memref<16x!tpu.dma_semaphore, #tpu.memory_space<semaphore_mem>> -> memref<1x!tpu.dma_semaphore, #tpu.memory_space<semaphore_mem>>
    %34 = tpu.memref_squeeze %33 : memref<1x!tpu.dma_semaphore, #tpu.memory_space<semaphore_mem>> -> memref<!tpu.dma_semaphore, #tpu.memory_space<semaphore_mem>>
    tpu.enqueue_dma source(%31 : memref<1x128xf32, #tpu.memory_space<any>>) target(%32 : memref<1x128xf32, #tpu.memory_space<vmem>>) target_semaphore(%34 : memref<!tpu.dma_semaphore, #tpu.memory_space<semaphore_mem>>)
    %c7 = arith.constant 7 : index
    %35 = memref.load %arg1[%c7] : memref<16xi32, #tpu.memory_space<smem>>
    %c7_i32 = arith.constant 7 : i32
    %c0_i32_21 = arith.constant 0 : i32
    %36 = tpu.memref_slice %arg3[%35, %c0_i32_21] : memref<50x128xf32, #tpu.memory_space<any>> -> memref<1x128xf32, #tpu.memory_space<any>>
    %c7_i32_22 = arith.constant 7 : i32
    %c0_i32_23 = arith.constant 0 : i32
    %37 = tpu.memref_slice %arg12[%c7_i32_22, %c0_i32_23] : memref<16x128xf32, #tpu.memory_space<vmem>> -> memref<1x128xf32, #tpu.memory_space<vmem>>
    %38 = tpu.memref_slice %arg13[%c7_i32] : memref<16x!tpu.dma_semaphore, #tpu.memory_space<semaphore_mem>> -> memref<1x!tpu.dma_semaphore, #tpu.memory_space<semaphore_mem>>
    %39 = tpu.memref_squeeze %38 : memref<1x!tpu.dma_semaphore, #tpu.memory_space<semaphore_mem>> -> memref<!tpu.dma_semaphore, #tpu.memory_space<semaphore_mem>>
    tpu.enqueue_dma source(%36 : memref<1x128xf32, #tpu.memory_space<any>>) target(%37 : memref<1x128xf32, #tpu.memory_space<vmem>>) target_semaphore(%39 : memref<!tpu.dma_semaphore, #tpu.memory_space<semaphore_mem>>)
    %c8 = arith.constant 8 : index
    %40 = memref.load %arg1[%c8] : memref<16xi32, #tpu.memory_space<smem>>
    %c8_i32 = arith.constant 8 : i32
    %c0_i32_24 = arith.constant 0 : i32
    %41 = tpu.memref_slice %arg3[%40, %c0_i32_24] : memref<50x128xf32, #tpu.memory_space<any>> -> memref<1x128xf32, #tpu.memory_space<any>>
    %c8_i32_25 = arith.constant 8 : i32
    %c0_i32_26 = arith.constant 0 : i32
    %42 = tpu.memref_slice %arg12[%c8_i32_25, %c0_i32_26] : memref<16x128xf32, #tpu.memory_space<vmem>> -> memref<1x128xf32, #tpu.memory_space<vmem>>
    %43 = tpu.memref_slice %arg13[%c8_i32] : memref<16x!tpu.dma_semaphore, #tpu.memory_space<semaphore_mem>> -> memref<1x!tpu.dma_semaphore, #tpu.memory_space<semaphore_mem>>
    %44 = tpu.memref_squeeze %43 : memref<1x!tpu.dma_semaphore, #tpu.memory_space<semaphore_mem>> -> memref<!tpu.dma_semaphore, #tpu.memory_space<semaphore_mem>>
    tpu.enqueue_dma source(%41 : memref<1x128xf32, #tpu.memory_space<any>>) target(%42 : memref<1x128xf32, #tpu.memory_space<vmem>>) target_semaphore(%44 : memref<!tpu.dma_semaphore, #tpu.memory_space<semaphore_mem>>)
    %c9 = arith.constant 9 : index
    %45 = memref.load %arg1[%c9] : memref<16xi32, #tpu.memory_space<smem>>
    %c9_i32 = arith.constant 9 : i32
    %c0_i32_27 = arith.constant 0 : i32
    %46 = tpu.memref_slice %arg3[%45, %c0_i32_27] : memref<50x128xf32, #tpu.memory_space<any>> -> memref<1x128xf32, #tpu.memory_space<any>>
    %c9_i32_28 = arith.constant 9 : i32
    %c0_i32_29 = arith.constant 0 : i32
    %47 = tpu.memref_slice %arg12[%c9_i32_28, %c0_i32_29] : memref<16x128xf32, #tpu.memory_space<vmem>> -> memref<1x128xf32, #tpu.memory_space<vmem>>
    %48 = tpu.memref_slice %arg13[%c9_i32] : memref<16x!tpu.dma_semaphore, #tpu.memory_space<semaphore_mem>> -> memref<1x!tpu.dma_semaphore, #tpu.memory_space<semaphore_mem>>
    %49 = tpu.memref_squeeze %48 : memref<1x!tpu.dma_semaphore, #tpu.memory_space<semaphore_mem>> -> memref<!tpu.dma_semaphore, #tpu.memory_space<semaphore_mem>>
    tpu.enqueue_dma source(%46 : memref<1x128xf32, #tpu.memory_space<any>>) target(%47 : memref<1x128xf32, #tpu.memory_space<vmem>>) target_semaphore(%49 : memref<!tpu.dma_semaphore, #tpu.memory_space<semaphore_mem>>)
    %c10 = arith.constant 10 : index
    %50 = memref.load %arg1[%c10] : memref<16xi32, #tpu.memory_space<smem>>
    %c10_i32 = arith.constant 10 : i32
    %c0_i32_30 = arith.constant 0 : i32
    %51 = tpu.memref_slice %arg3[%50, %c0_i32_30] : memref<50x128xf32, #tpu.memory_space<any>> -> memref<1x128xf32, #tpu.memory_space<any>>
    %c10_i32_31 = arith.constant 10 : i32
    %c0_i32_32 = arith.constant 0 : i32
    %52 = tpu.memref_slice %arg12[%c10_i32_31, %c0_i32_32] : memref<16x128xf32, #tpu.memory_space<vmem>> -> memref<1x128xf32, #tpu.memory_space<vmem>>
    %53 = tpu.memref_slice %arg13[%c10_i32] : memref<16x!tpu.dma_semaphore, #tpu.memory_space<semaphore_mem>> -> memref<1x!tpu.dma_semaphore, #tpu.memory_space<semaphore_mem>>
    %54 = tpu.memref_squeeze %53 : memref<1x!tpu.dma_semaphore, #tpu.memory_space<semaphore_mem>> -> memref<!tpu.dma_semaphore, #tpu.memory_space<semaphore_mem>>
    tpu.enqueue_dma source(%51 : memref<1x128xf32, #tpu.memory_space<any>>) target(%52 : memref<1x128xf32, #tpu.memory_space<vmem>>) target_semaphore(%54 : memref<!tpu.dma_semaphore, #tpu.memory_space<semaphore_mem>>)
    %c11 = arith.constant 11 : index
    %55 = memref.load %arg1[%c11] : memref<16xi32, #tpu.memory_space<smem>>
    %c11_i32 = arith.constant 11 : i32
    %c0_i32_33 = arith.constant 0 : i32
    %56 = tpu.memref_slice %arg3[%55, %c0_i32_33] : memref<50x128xf32, #tpu.memory_space<any>> -> memref<1x128xf32, #tpu.memory_space<any>>
    %c11_i32_34 = arith.constant 11 : i32
    %c0_i32_35 = arith.constant 0 : i32
    %57 = tpu.memref_slice %arg12[%c11_i32_34, %c0_i32_35] : memref<16x128xf32, #tpu.memory_space<vmem>> -> memref<1x128xf32, #tpu.memory_space<vmem>>
    %58 = tpu.memref_slice %arg13[%c11_i32] : memref<16x!tpu.dma_semaphore, #tpu.memory_space<semaphore_mem>> -> memref<1x!tpu.dma_semaphore, #tpu.memory_space<semaphore_mem>>
    %59 = tpu.memref_squeeze %58 : memref<1x!tpu.dma_semaphore, #tpu.memory_space<semaphore_mem>> -> memref<!tpu.dma_semaphore, #tpu.memory_space<semaphore_mem>>
    tpu.enqueue_dma source(%56 : memref<1x128xf32, #tpu.memory_space<any>>) target(%57 : memref<1x128xf32, #tpu.memory_space<vmem>>) target_semaphore(%59 : memref<!tpu.dma_semaphore, #tpu.memory_space<semaphore_mem>>)
    %c12 = arith.constant 12 : index
    %60 = memref.load %arg1[%c12] : memref<16xi32, #tpu.memory_space<smem>>
    %c12_i32 = arith.constant 12 : i32
    %c0_i32_36 = arith.constant 0 : i32
    %61 = tpu.memref_slice %arg3[%60, %c0_i32_36] : memref<50x128xf32, #tpu.memory_space<any>> -> memref<1x128xf32, #tpu.memory_space<any>>
    %c12_i32_37 = arith.constant 12 : i32
    %c0_i32_38 = arith.constant 0 : i32
    %62 = tpu.memref_slice %arg12[%c12_i32_37, %c0_i32_38] : memref<16x128xf32, #tpu.memory_space<vmem>> -> memref<1x128xf32, #tpu.memory_space<vmem>>
    %63 = tpu.memref_slice %arg13[%c12_i32] : memref<16x!tpu.dma_semaphore, #tpu.memory_space<semaphore_mem>> -> memref<1x!tpu.dma_semaphore, #tpu.memory_space<semaphore_mem>>
    %64 = tpu.memref_squeeze %63 : memref<1x!tpu.dma_semaphore, #tpu.memory_space<semaphore_mem>> -> memref<!tpu.dma_semaphore, #tpu.memory_space<semaphore_mem>>
    tpu.enqueue_dma source(%61 : memref<1x128xf32, #tpu.memory_space<any>>) target(%62 : memref<1x128xf32, #tpu.memory_space<vmem>>) target_semaphore(%64 : memref<!tpu.dma_semaphore, #tpu.memory_space<semaphore_mem>>)
    %c13 = arith.constant 13 : index
    %65 = memref.load %arg1[%c13] : memref<16xi32, #tpu.memory_space<smem>>
    %c13_i32 = arith.constant 13 : i32
    %c0_i32_39 = arith.constant 0 : i32
    %66 = tpu.memref_slice %arg3[%65, %c0_i32_39] : memref<50x128xf32, #tpu.memory_space<any>> -> memref<1x128xf32, #tpu.memory_space<any>>
    %c13_i32_40 = arith.constant 13 : i32
    %c0_i32_41 = arith.constant 0 : i32
    %67 = tpu.memref_slice %arg12[%c13_i32_40, %c0_i32_41] : memref<16x128xf32, #tpu.memory_space<vmem>> -> memref<1x128xf32, #tpu.memory_space<vmem>>
    %68 = tpu.memref_slice %arg13[%c13_i32] : memref<16x!tpu.dma_semaphore, #tpu.memory_space<semaphore_mem>> -> memref<1x!tpu.dma_semaphore, #tpu.memory_space<semaphore_mem>>
    %69 = tpu.memref_squeeze %68 : memref<1x!tpu.dma_semaphore, #tpu.memory_space<semaphore_mem>> -> memref<!tpu.dma_semaphore, #tpu.memory_space<semaphore_mem>>
    tpu.enqueue_dma source(%66 : memref<1x128xf32, #tpu.memory_space<any>>) target(%67 : memref<1x128xf32, #tpu.memory_space<vmem>>) target_semaphore(%69 : memref<!tpu.dma_semaphore, #tpu.memory_space<semaphore_mem>>)
    %c14 = arith.constant 14 : index
    %70 = memref.load %arg1[%c14] : memref<16xi32, #tpu.memory_space<smem>>
    %c14_i32 = arith.constant 14 : i32
    %c0_i32_42 = arith.constant 0 : i32
    %71 = tpu.memref_slice %arg3[%70, %c0_i32_42] : memref<50x128xf32, #tpu.memory_space<any>> -> memref<1x128xf32, #tpu.memory_space<any>>
    %c14_i32_43 = arith.constant 14 : i32
    %c0_i32_44 = arith.constant 0 : i32
    %72 = tpu.memref_slice %arg12[%c14_i32_43, %c0_i32_44] : memref<16x128xf32, #tpu.memory_space<vmem>> -> memref<1x128xf32, #tpu.memory_space<vmem>>
    %73 = tpu.memref_slice %arg13[%c14_i32] : memref<16x!tpu.dma_semaphore, #tpu.memory_space<semaphore_mem>> -> memref<1x!tpu.dma_semaphore, #tpu.memory_space<semaphore_mem>>
    %74 = tpu.memref_squeeze %73 : memref<1x!tpu.dma_semaphore, #tpu.memory_space<semaphore_mem>> -> memref<!tpu.dma_semaphore, #tpu.memory_space<semaphore_mem>>
    tpu.enqueue_dma source(%71 : memref<1x128xf32, #tpu.memory_space<any>>) target(%72 : memref<1x128xf32, #tpu.memory_space<vmem>>) target_semaphore(%74 : memref<!tpu.dma_semaphore, #tpu.memory_space<semaphore_mem>>)
    %c15 = arith.constant 15 : index
    %75 = memref.load %arg1[%c15] : memref<16xi32, #tpu.memory_space<smem>>
    %c15_i32 = arith.constant 15 : i32
    %c0_i32_45 = arith.constant 0 : i32
    %76 = tpu.memref_slice %arg3[%75, %c0_i32_45] : memref<50x128xf32, #tpu.memory_space<any>> -> memref<1x128xf32, #tpu.memory_space<any>>
    %c15_i32_46 = arith.constant 15 : i32
    %c0_i32_47 = arith.constant 0 : i32
    %77 = tpu.memref_slice %arg12[%c15_i32_46, %c0_i32_47] : memref<16x128xf32, #tpu.memory_space<vmem>> -> memref<1x128xf32, #tpu.memory_space<vmem>>
    %78 = tpu.memref_slice %arg13[%c15_i32] : memref<16x!tpu.dma_semaphore, #tpu.memory_space<semaphore_mem>> -> memref<1x!tpu.dma_semaphore, #tpu.memory_space<semaphore_mem>>
    %79 = tpu.memref_squeeze %78 : memref<1x!tpu.dma_semaphore, #tpu.memory_space<semaphore_mem>> -> memref<!tpu.dma_semaphore, #tpu.memory_space<semaphore_mem>>
    tpu.enqueue_dma source(%76 : memref<1x128xf32, #tpu.memory_space<any>>) target(%77 : memref<1x128xf32, #tpu.memory_space<vmem>>) target_semaphore(%79 : memref<!tpu.dma_semaphore, #tpu.memory_space<semaphore_mem>>)
    %c0_48 = arith.constant 0 : index
    %80 = memref.load %arg1[%c0_48] : memref<16xi32, #tpu.memory_space<smem>>
    %c0_i32_49 = arith.constant 0 : i32
    %c0_i32_50 = arith.constant 0 : i32
    %81 = tpu.memref_slice %arg3[%80, %c0_i32_50] : memref<50x128xf32, #tpu.memory_space<any>> -> memref<1x128xf32, #tpu.memory_space<any>>
    %c0_i32_51 = arith.constant 0 : i32
    %c0_i32_52 = arith.constant 0 : i32
    %82 = tpu.memref_slice %arg12[%c0_i32_51, %c0_i32_52] : memref<16x128xf32, #tpu.memory_space<vmem>> -> memref<1x128xf32, #tpu.memory_space<vmem>>
    %83 = tpu.memref_slice %arg13[%c0_i32_49] : memref<16x!tpu.dma_semaphore, #tpu.memory_space<semaphore_mem>> -> memref<1x!tpu.dma_semaphore, #tpu.memory_space<semaphore_mem>>
    %84 = tpu.memref_squeeze %83 : memref<1x!tpu.dma_semaphore, #tpu.memory_space<semaphore_mem>> -> memref<!tpu.dma_semaphore, #tpu.memory_space<semaphore_mem>>
    tpu.wait_dma2 semaphore(%84 : memref<!tpu.dma_semaphore, #tpu.memory_space<semaphore_mem>>) src(%81 : memref<1x128xf32, #tpu.memory_space<any>>) dst(%82 : memref<1x128xf32, #tpu.memory_space<vmem>>)
    %c1_53 = arith.constant 1 : index
    %85 = memref.load %arg1[%c1_53] : memref<16xi32, #tpu.memory_space<smem>>
    %c1_i32_54 = arith.constant 1 : i32
    %c0_i32_55 = arith.constant 0 : i32
    %86 = tpu.memref_slice %arg3[%85, %c0_i32_55] : memref<50x128xf32, #tpu.memory_space<any>> -> memref<1x128xf32, #tpu.memory_space<any>>
    %c1_i32_56 = arith.constant 1 : i32
    %c0_i32_57 = arith.constant 0 : i32
    %87 = tpu.memref_slice %arg12[%c1_i32_56, %c0_i32_57] : memref<16x128xf32, #tpu.memory_space<vmem>> -> memref<1x128xf32, #tpu.memory_space<vmem>>
    %88 = tpu.memref_slice %arg13[%c1_i32_54] : memref<16x!tpu.dma_semaphore, #tpu.memory_space<semaphore_mem>> -> memref<1x!tpu.dma_semaphore, #tpu.memory_space<semaphore_mem>>
    %89 = tpu.memref_squeeze %88 : memref<1x!tpu.dma_semaphore, #tpu.memory_space<semaphore_mem>> -> memref<!tpu.dma_semaphore, #tpu.memory_space<semaphore_mem>>
    tpu.wait_dma2 semaphore(%89 : memref<!tpu.dma_semaphore, #tpu.memory_space<semaphore_mem>>) src(%86 : memref<1x128xf32, #tpu.memory_space<any>>) dst(%87 : memref<1x128xf32, #tpu.memory_space<vmem>>)
    %c2_58 = arith.constant 2 : index
    %90 = memref.load %arg1[%c2_58] : memref<16xi32, #tpu.memory_space<smem>>
    %c2_i32_59 = arith.constant 2 : i32
    %c0_i32_60 = arith.constant 0 : i32
    %91 = tpu.memref_slice %arg3[%90, %c0_i32_60] : memref<50x128xf32, #tpu.memory_space<any>> -> memref<1x128xf32, #tpu.memory_space<any>>
    %c2_i32_61 = arith.constant 2 : i32
    %c0_i32_62 = arith.constant 0 : i32
    %92 = tpu.memref_slice %arg12[%c2_i32_61, %c0_i32_62] : memref<16x128xf32, #tpu.memory_space<vmem>> -> memref<1x128xf32, #tpu.memory_space<vmem>>
    %93 = tpu.memref_slice %arg13[%c2_i32_59] : memref<16x!tpu.dma_semaphore, #tpu.memory_space<semaphore_mem>> -> memref<1x!tpu.dma_semaphore, #tpu.memory_space<semaphore_mem>>
    %94 = tpu.memref_squeeze %93 : memref<1x!tpu.dma_semaphore, #tpu.memory_space<semaphore_mem>> -> memref<!tpu.dma_semaphore, #tpu.memory_space<semaphore_mem>>
    tpu.wait_dma2 semaphore(%94 : memref<!tpu.dma_semaphore, #tpu.memory_space<semaphore_mem>>) src(%91 : memref<1x128xf32, #tpu.memory_space<any>>) dst(%92 : memref<1x128xf32, #tpu.memory_space<vmem>>)
    %c3_63 = arith.constant 3 : index
    %95 = memref.load %arg1[%c3_63] : memref<16xi32, #tpu.memory_space<smem>>
    %c3_i32_64 = arith.constant 3 : i32
    %c0_i32_65 = arith.constant 0 : i32
    %96 = tpu.memref_slice %arg3[%95, %c0_i32_65] : memref<50x128xf32, #tpu.memory_space<any>> -> memref<1x128xf32, #tpu.memory_space<any>>
    %c3_i32_66 = arith.constant 3 : i32
    %c0_i32_67 = arith.constant 0 : i32
    %97 = tpu.memref_slice %arg12[%c3_i32_66, %c0_i32_67] : memref<16x128xf32, #tpu.memory_space<vmem>> -> memref<1x128xf32, #tpu.memory_space<vmem>>
    %98 = tpu.memref_slice %arg13[%c3_i32_64] : memref<16x!tpu.dma_semaphore, #tpu.memory_space<semaphore_mem>> -> memref<1x!tpu.dma_semaphore, #tpu.memory_space<semaphore_mem>>
    %99 = tpu.memref_squeeze %98 : memref<1x!tpu.dma_semaphore, #tpu.memory_space<semaphore_mem>> -> memref<!tpu.dma_semaphore, #tpu.memory_space<semaphore_mem>>
    tpu.wait_dma2 semaphore(%99 : memref<!tpu.dma_semaphore, #tpu.memory_space<semaphore_mem>>) src(%96 : memref<1x128xf32, #tpu.memory_space<any>>) dst(%97 : memref<1x128xf32, #tpu.memory_space<vmem>>)
    %c4_68 = arith.constant 4 : index
    %100 = memref.load %arg1[%c4_68] : memref<16xi32, #tpu.memory_space<smem>>
    %c4_i32_69 = arith.constant 4 : i32
    %c0_i32_70 = arith.constant 0 : i32
    %101 = tpu.memref_slice %arg3[%100, %c0_i32_70] : memref<50x128xf32, #tpu.memory_space<any>> -> memref<1x128xf32, #tpu.memory_space<any>>
    %c4_i32_71 = arith.constant 4 : i32
    %c0_i32_72 = arith.constant 0 : i32
    %102 = tpu.memref_slice %arg12[%c4_i32_71, %c0_i32_72] : memref<16x128xf32, #tpu.memory_space<vmem>> -> memref<1x128xf32, #tpu.memory_space<vmem>>
    %103 = tpu.memref_slice %arg13[%c4_i32_69] : memref<16x!tpu.dma_semaphore, #tpu.memory_space<semaphore_mem>> -> memref<1x!tpu.dma_semaphore, #tpu.memory_space<semaphore_mem>>
    %104 = tpu.memref_squeeze %103 : memref<1x!tpu.dma_semaphore, #tpu.memory_space<semaphore_mem>> -> memref<!tpu.dma_semaphore, #tpu.memory_space<semaphore_mem>>
    tpu.wait_dma2 semaphore(%104 : memref<!tpu.dma_semaphore, #tpu.memory_space<semaphore_mem>>) src(%101 : memref<1x128xf32, #tpu.memory_space<any>>) dst(%102 : memref<1x128xf32, #tpu.memory_space<vmem>>)
    %c5_73 = arith.constant 5 : index
    %105 = memref.load %arg1[%c5_73] : memref<16xi32, #tpu.memory_space<smem>>
    %c5_i32_74 = arith.constant 5 : i32
    %c0_i32_75 = arith.constant 0 : i32
    %106 = tpu.memref_slice %arg3[%105, %c0_i32_75] : memref<50x128xf32, #tpu.memory_space<any>> -> memref<1x128xf32, #tpu.memory_space<any>>
    %c5_i32_76 = arith.constant 5 : i32
    %c0_i32_77 = arith.constant 0 : i32
    %107 = tpu.memref_slice %arg12[%c5_i32_76, %c0_i32_77] : memref<16x128xf32, #tpu.memory_space<vmem>> -> memref<1x128xf32, #tpu.memory_space<vmem>>
    %108 = tpu.memref_slice %arg13[%c5_i32_74] : memref<16x!tpu.dma_semaphore, #tpu.memory_space<semaphore_mem>> -> memref<1x!tpu.dma_semaphore, #tpu.memory_space<semaphore_mem>>
    %109 = tpu.memref_squeeze %108 : memref<1x!tpu.dma_semaphore, #tpu.memory_space<semaphore_mem>> -> memref<!tpu.dma_semaphore, #tpu.memory_space<semaphore_mem>>
    tpu.wait_dma2 semaphore(%109 : memref<!tpu.dma_semaphore, #tpu.memory_space<semaphore_mem>>) src(%106 : memref<1x128xf32, #tpu.memory_space<any>>) dst(%107 : memref<1x128xf32, #tpu.memory_space<vmem>>)
    %c6_78 = arith.constant 6 : index
    %110 = memref.load %arg1[%c6_78] : memref<16xi32, #tpu.memory_space<smem>>
    %c6_i32_79 = arith.constant 6 : i32
    %c0_i32_80 = arith.constant 0 : i32
    %111 = tpu.memref_slice %arg3[%110, %c0_i32_80] : memref<50x128xf32, #tpu.memory_space<any>> -> memref<1x128xf32, #tpu.memory_space<any>>
    %c6_i32_81 = arith.constant 6 : i32
    %c0_i32_82 = arith.constant 0 : i32
    %112 = tpu.memref_slice %arg12[%c6_i32_81, %c0_i32_82] : memref<16x128xf32, #tpu.memory_space<vmem>> -> memref<1x128xf32, #tpu.memory_space<vmem>>
    %113 = tpu.memref_slice %arg13[%c6_i32_79] : memref<16x!tpu.dma_semaphore, #tpu.memory_space<semaphore_mem>> -> memref<1x!tpu.dma_semaphore, #tpu.memory_space<semaphore_mem>>
    %114 = tpu.memref_squeeze %113 : memref<1x!tpu.dma_semaphore, #tpu.memory_space<semaphore_mem>> -> memref<!tpu.dma_semaphore, #tpu.memory_space<semaphore_mem>>
    tpu.wait_dma2 semaphore(%114 : memref<!tpu.dma_semaphore, #tpu.memory_space<semaphore_mem>>) src(%111 : memref<1x128xf32, #tpu.memory_space<any>>) dst(%112 : memref<1x128xf32, #tpu.memory_space<vmem>>)
    %c7_83 = arith.constant 7 : index
    %115 = memref.load %arg1[%c7_83] : memref<16xi32, #tpu.memory_space<smem>>
    %c7_i32_84 = arith.constant 7 : i32
    %c0_i32_85 = arith.constant 0 : i32
    %116 = tpu.memref_slice %arg3[%115, %c0_i32_85] : memref<50x128xf32, #tpu.memory_space<any>> -> memref<1x128xf32, #tpu.memory_space<any>>
    %c7_i32_86 = arith.constant 7 : i32
    %c0_i32_87 = arith.constant 0 : i32
    %117 = tpu.memref_slice %arg12[%c7_i32_86, %c0_i32_87] : memref<16x128xf32, #tpu.memory_space<vmem>> -> memref<1x128xf32, #tpu.memory_space<vmem>>
    %118 = tpu.memref_slice %arg13[%c7_i32_84] : memref<16x!tpu.dma_semaphore, #tpu.memory_space<semaphore_mem>> -> memref<1x!tpu.dma_semaphore, #tpu.memory_space<semaphore_mem>>
    %119 = tpu.memref_squeeze %118 : memref<1x!tpu.dma_semaphore, #tpu.memory_space<semaphore_mem>> -> memref<!tpu.dma_semaphore, #tpu.memory_space<semaphore_mem>>
    tpu.wait_dma2 semaphore(%119 : memref<!tpu.dma_semaphore, #tpu.memory_space<semaphore_mem>>) src(%116 : memref<1x128xf32, #tpu.memory_space<any>>) dst(%117 : memref<1x128xf32, #tpu.memory_space<vmem>>)
    %c8_88 = arith.constant 8 : index
    %120 = memref.load %arg1[%c8_88] : memref<16xi32, #tpu.memory_space<smem>>
    %c8_i32_89 = arith.constant 8 : i32
    %c0_i32_90 = arith.constant 0 : i32
    %121 = tpu.memref_slice %arg3[%120, %c0_i32_90] : memref<50x128xf32, #tpu.memory_space<any>> -> memref<1x128xf32, #tpu.memory_space<any>>
    %c8_i32_91 = arith.constant 8 : i32
    %c0_i32_92 = arith.constant 0 : i32
    %122 = tpu.memref_slice %arg12[%c8_i32_91, %c0_i32_92] : memref<16x128xf32, #tpu.memory_space<vmem>> -> memref<1x128xf32, #tpu.memory_space<vmem>>
    %123 = tpu.memref_slice %arg13[%c8_i32_89] : memref<16x!tpu.dma_semaphore, #tpu.memory_space<semaphore_mem>> -> memref<1x!tpu.dma_semaphore, #tpu.memory_space<semaphore_mem>>
    %124 = tpu.memref_squeeze %123 : memref<1x!tpu.dma_semaphore, #tpu.memory_space<semaphore_mem>> -> memref<!tpu.dma_semaphore, #tpu.memory_space<semaphore_mem>>
    tpu.wait_dma2 semaphore(%124 : memref<!tpu.dma_semaphore, #tpu.memory_space<semaphore_mem>>) src(%121 : memref<1x128xf32, #tpu.memory_space<any>>) dst(%122 : memref<1x128xf32, #tpu.memory_space<vmem>>)
    %c9_93 = arith.constant 9 : index
    %125 = memref.load %arg1[%c9_93] : memref<16xi32, #tpu.memory_space<smem>>
    %c9_i32_94 = arith.constant 9 : i32
    %c0_i32_95 = arith.constant 0 : i32
    %126 = tpu.memref_slice %arg3[%125, %c0_i32_95] : memref<50x128xf32, #tpu.memory_space<any>> -> memref<1x128xf32, #tpu.memory_space<any>>
    %c9_i32_96 = arith.constant 9 : i32
    %c0_i32_97 = arith.constant 0 : i32
    %127 = tpu.memref_slice %arg12[%c9_i32_96, %c0_i32_97] : memref<16x128xf32, #tpu.memory_space<vmem>> -> memref<1x128xf32, #tpu.memory_space<vmem>>
    %128 = tpu.memref_slice %arg13[%c9_i32_94] : memref<16x!tpu.dma_semaphore, #tpu.memory_space<semaphore_mem>> -> memref<1x!tpu.dma_semaphore, #tpu.memory_space<semaphore_mem>>
    %129 = tpu.memref_squeeze %128 : memref<1x!tpu.dma_semaphore, #tpu.memory_space<semaphore_mem>> -> memref<!tpu.dma_semaphore, #tpu.memory_space<semaphore_mem>>
    tpu.wait_dma2 semaphore(%129 : memref<!tpu.dma_semaphore, #tpu.memory_space<semaphore_mem>>) src(%126 : memref<1x128xf32, #tpu.memory_space<any>>) dst(%127 : memref<1x128xf32, #tpu.memory_space<vmem>>)
    %c10_98 = arith.constant 10 : index
    %130 = memref.load %arg1[%c10_98] : memref<16xi32, #tpu.memory_space<smem>>
    %c10_i32_99 = arith.constant 10 : i32
    %c0_i32_100 = arith.constant 0 : i32
    %131 = tpu.memref_slice %arg3[%130, %c0_i32_100] : memref<50x128xf32, #tpu.memory_space<any>> -> memref<1x128xf32, #tpu.memory_space<any>>
    %c10_i32_101 = arith.constant 10 : i32
    %c0_i32_102 = arith.constant 0 : i32
    %132 = tpu.memref_slice %arg12[%c10_i32_101, %c0_i32_102] : memref<16x128xf32, #tpu.memory_space<vmem>> -> memref<1x128xf32, #tpu.memory_space<vmem>>
    %133 = tpu.memref_slice %arg13[%c10_i32_99] : memref<16x!tpu.dma_semaphore, #tpu.memory_space<semaphore_mem>> -> memref<1x!tpu.dma_semaphore, #tpu.memory_space<semaphore_mem>>
    %134 = tpu.memref_squeeze %133 : memref<1x!tpu.dma_semaphore, #tpu.memory_space<semaphore_mem>> -> memref<!tpu.dma_semaphore, #tpu.memory_space<semaphore_mem>>
    tpu.wait_dma2 semaphore(%134 : memref<!tpu.dma_semaphore, #tpu.memory_space<semaphore_mem>>) src(%131 : memref<1x128xf32, #tpu.memory_space<any>>) dst(%132 : memref<1x128xf32, #tpu.memory_space<vmem>>)
    %c11_103 = arith.constant 11 : index
    %135 = memref.load %arg1[%c11_103] : memref<16xi32, #tpu.memory_space<smem>>
    %c11_i32_104 = arith.constant 11 : i32
    %c0_i32_105 = arith.constant 0 : i32
    %136 = tpu.memref_slice %arg3[%135, %c0_i32_105] : memref<50x128xf32, #tpu.memory_space<any>> -> memref<1x128xf32, #tpu.memory_space<any>>
    %c11_i32_106 = arith.constant 11 : i32
    %c0_i32_107 = arith.constant 0 : i32
    %137 = tpu.memref_slice %arg12[%c11_i32_106, %c0_i32_107] : memref<16x128xf32, #tpu.memory_space<vmem>> -> memref<1x128xf32, #tpu.memory_space<vmem>>
    %138 = tpu.memref_slice %arg13[%c11_i32_104] : memref<16x!tpu.dma_semaphore, #tpu.memory_space<semaphore_mem>> -> memref<1x!tpu.dma_semaphore, #tpu.memory_space<semaphore_mem>>
    %139 = tpu.memref_squeeze %138 : memref<1x!tpu.dma_semaphore, #tpu.memory_space<semaphore_mem>> -> memref<!tpu.dma_semaphore, #tpu.memory_space<semaphore_mem>>
    tpu.wait_dma2 semaphore(%139 : memref<!tpu.dma_semaphore, #tpu.memory_space<semaphore_mem>>) src(%136 : memref<1x128xf32, #tpu.memory_space<any>>) dst(%137 : memref<1x128xf32, #tpu.memory_space<vmem>>)
    %c12_108 = arith.constant 12 : index
    %140 = memref.load %arg1[%c12_108] : memref<16xi32, #tpu.memory_space<smem>>
    %c12_i32_109 = arith.constant 12 : i32
    %c0_i32_110 = arith.constant 0 : i32
    %141 = tpu.memref_slice %arg3[%140, %c0_i32_110] : memref<50x128xf32, #tpu.memory_space<any>> -> memref<1x128xf32, #tpu.memory_space<any>>
    %c12_i32_111 = arith.constant 12 : i32
    %c0_i32_112 = arith.constant 0 : i32
    %142 = tpu.memref_slice %arg12[%c12_i32_111, %c0_i32_112] : memref<16x128xf32, #tpu.memory_space<vmem>> -> memref<1x128xf32, #tpu.memory_space<vmem>>
    %143 = tpu.memref_slice %arg13[%c12_i32_109] : memref<16x!tpu.dma_semaphore, #tpu.memory_space<semaphore_mem>> -> memref<1x!tpu.dma_semaphore, #tpu.memory_space<semaphore_mem>>
    %144 = tpu.memref_squeeze %143 : memref<1x!tpu.dma_semaphore, #tpu.memory_space<semaphore_mem>> -> memref<!tpu.dma_semaphore, #tpu.memory_space<semaphore_mem>>
    tpu.wait_dma2 semaphore(%144 : memref<!tpu.dma_semaphore, #tpu.memory_space<semaphore_mem>>) src(%141 : memref<1x128xf32, #tpu.memory_space<any>>) dst(%142 : memref<1x128xf32, #tpu.memory_space<vmem>>)
    %c13_113 = arith.constant 13 : index
    %145 = memref.load %arg1[%c13_113] : memref<16xi32, #tpu.memory_space<smem>>
    %c13_i32_114 = arith.constant 13 : i32
    %c0_i32_115 = arith.constant 0 : i32
    %146 = tpu.memref_slice %arg3[%145, %c0_i32_115] : memref<50x128xf32, #tpu.memory_space<any>> -> memref<1x128xf32, #tpu.memory_space<any>>
    %c13_i32_116 = arith.constant 13 : i32
    %c0_i32_117 = arith.constant 0 : i32
    %147 = tpu.memref_slice %arg12[%c13_i32_116, %c0_i32_117] : memref<16x128xf32, #tpu.memory_space<vmem>> -> memref<1x128xf32, #tpu.memory_space<vmem>>
    %148 = tpu.memref_slice %arg13[%c13_i32_114] : memref<16x!tpu.dma_semaphore, #tpu.memory_space<semaphore_mem>> -> memref<1x!tpu.dma_semaphore, #tpu.memory_space<semaphore_mem>>
    %149 = tpu.memref_squeeze %148 : memref<1x!tpu.dma_semaphore, #tpu.memory_space<semaphore_mem>> -> memref<!tpu.dma_semaphore, #tpu.memory_space<semaphore_mem>>
    tpu.wait_dma2 semaphore(%149 : memref<!tpu.dma_semaphore, #tpu.memory_space<semaphore_mem>>) src(%146 : memref<1x128xf32, #tpu.memory_space<any>>) dst(%147 : memref<1x128xf32, #tpu.memory_space<vmem>>)
    %c14_118 = arith.constant 14 : index
    %150 = memref.load %arg1[%c14_118] : memref<16xi32, #tpu.memory_space<smem>>
    %c14_i32_119 = arith.constant 14 : i32
    %c0_i32_120 = arith.constant 0 : i32
    %151 = tpu.memref_slice %arg3[%150, %c0_i32_120] : memref<50x128xf32, #tpu.memory_space<any>> -> memref<1x128xf32, #tpu.memory_space<any>>
    %c14_i32_121 = arith.constant 14 : i32
    %c0_i32_122 = arith.constant 0 : i32
    %152 = tpu.memref_slice %arg12[%c14_i32_121, %c0_i32_122] : memref<16x128xf32, #tpu.memory_space<vmem>> -> memref<1x128xf32, #tpu.memory_space<vmem>>
    %153 = tpu.memref_slice %arg13[%c14_i32_119] : memref<16x!tpu.dma_semaphore, #tpu.memory_space<semaphore_mem>> -> memref<1x!tpu.dma_semaphore, #tpu.memory_space<semaphore_mem>>
    %154 = tpu.memref_squeeze %153 : memref<1x!tpu.dma_semaphore, #tpu.memory_space<semaphore_mem>> -> memref<!tpu.dma_semaphore, #tpu.memory_space<semaphore_mem>>
    tpu.wait_dma2 semaphore(%154 : memref<!tpu.dma_semaphore, #tpu.memory_space<semaphore_mem>>) src(%151 : memref<1x128xf32, #tpu.memory_space<any>>) dst(%152 : memref<1x128xf32, #tpu.memory_space<vmem>>)
    %c15_123 = arith.constant 15 : index
    %155 = memref.load %arg1[%c15_123] : memref<16xi32, #tpu.memory_space<smem>>
    %c15_i32_124 = arith.constant 15 : i32
    %c0_i32_125 = arith.constant 0 : i32
    %156 = tpu.memref_slice %arg3[%155, %c0_i32_125] : memref<50x128xf32, #tpu.memory_space<any>> -> memref<1x128xf32, #tpu.memory_space<any>>
    %c15_i32_126 = arith.constant 15 : i32
    %c0_i32_127 = arith.constant 0 : i32
    %157 = tpu.memref_slice %arg12[%c15_i32_126, %c0_i32_127] : memref<16x128xf32, #tpu.memory_space<vmem>> -> memref<1x128xf32, #tpu.memory_space<vmem>>
    %158 = tpu.memref_slice %arg13[%c15_i32_124] : memref<16x!tpu.dma_semaphore, #tpu.memory_space<semaphore_mem>> -> memref<1x!tpu.dma_semaphore, #tpu.memory_space<semaphore_mem>>
    %159 = tpu.memref_squeeze %158 : memref<1x!tpu.dma_semaphore, #tpu.memory_space<semaphore_mem>> -> memref<!tpu.dma_semaphore, #tpu.memory_space<semaphore_mem>>
    tpu.wait_dma2 semaphore(%159 : memref<!tpu.dma_semaphore, #tpu.memory_space<semaphore_mem>>) src(%156 : memref<1x128xf32, #tpu.memory_space<any>>) dst(%157 : memref<1x128xf32, #tpu.memory_space<vmem>>)
    %c0_128 = arith.constant 0 : index
    %c0_129 = arith.constant 0 : index
    %160 = vector.load %arg12[%c0_128, %c0_129] : memref<16x128xf32, #tpu.memory_space<vmem>>, vector<16x128xf32>
    %161 = arith.truncf %160 : vector<16x128xf32> to vector<16x128xbf16>
    %c0_130 = arith.constant 0 : index
    %c0_131 = arith.constant 0 : index
    %162 = vector.load %arg4[%c0_130, %c0_131] : memref<128x384xf32, #tpu.memory_space<vmem>>, vector<128x384xf32>
    %163 = arith.truncf %162 : vector<128x384xf32> to vector<128x384xbf16>
    %cst = arith.constant dense<0.000000e+00> : vector<16x384xf32>
    %164 = tpu.matmul %161, %163, %cst {dimension_numbers = #tpu.dot_dimension_numbers<[1], [0], [0], [1], [0, 0, 1, 1], [], []>} : vector<16x128xbf16>, vector<128x384xbf16>, vector<16x384xf32> -> vector<16x384xf32>
    %c0_132 = arith.constant 0 : index
    %c0_133 = arith.constant 0 : index
    %165 = vector.load %arg5[%c0_132, %c0_133] : memref<1x384xf32, #tpu.memory_space<vmem>>, vector<1x384xf32>
    %166 = vector.broadcast %165 : vector<1x384xf32> to vector<16x384xf32>
    %167 = arith.addf %164, %166 : vector<16x384xf32>
    %168 = tpu.iota {dimensions = array<i32: 0>} : vector<16x16xi32>
    %169 = tpu.iota {dimensions = array<i32: 1>} : vector<16x16xi32>
    %false = arith.constant false
    %170 = vector.broadcast %false : i1 to vector<16x16xi1>
    %c0_i32_134 = arith.constant 0 : i32
    %171 = vector.broadcast %c0_i32_134 : i32 to vector<16x16xi32>
    %172 = arith.cmpi sge, %168, %171 : vector<16x16xi32>
    %c8_i32_135 = arith.constant 8 : i32
    %173 = vector.broadcast %c8_i32_135 : i32 to vector<16x16xi32>
    %174 = arith.cmpi slt, %168, %173 : vector<16x16xi32>
    %175 = arith.andi %172, %174 : vector<16x16xi1>
    %c0_i32_136 = arith.constant 0 : i32
    %176 = vector.broadcast %c0_i32_136 : i32 to vector<16x16xi32>
    %177 = arith.cmpi sge, %169, %176 : vector<16x16xi32>
    %178 = arith.andi %175, %177 : vector<16x16xi1>
    %c8_i32_137 = arith.constant 8 : i32
    %179 = vector.broadcast %c8_i32_137 : i32 to vector<16x16xi32>
    %180 = arith.cmpi slt, %169, %179 : vector<16x16xi32>
    %181 = arith.andi %178, %180 : vector<16x16xi1>
    %182 = arith.ori %170, %181 : vector<16x16xi1>
    %c8_i32_138 = arith.constant 8 : i32
    %183 = vector.broadcast %c8_i32_138 : i32 to vector<16x16xi32>
    %184 = arith.cmpi sge, %168, %183 : vector<16x16xi32>
    %c16_i32 = arith.constant 16 : i32
    %185 = vector.broadcast %c16_i32 : i32 to vector<16x16xi32>
    %186 = arith.cmpi slt, %168, %185 : vector<16x16xi32>
    %187 = arith.andi %184, %186 : vector<16x16xi1>
    %c8_i32_139 = arith.constant 8 : i32
    %188 = vector.broadcast %c8_i32_139 : i32 to vector<16x16xi32>
    %189 = arith.cmpi sge, %169, %188 : vector<16x16xi32>
    %190 = arith.andi %187, %189 : vector<16x16xi1>
    %c16_i32_140 = arith.constant 16 : i32
    %191 = vector.broadcast %c16_i32_140 : i32 to vector<16x16xi32>
    %192 = arith.cmpi slt, %169, %191 : vector<16x16xi32>
    %193 = arith.andi %190, %192 : vector<16x16xi1>
    %194 = arith.ori %182, %193 : vector<16x16xi1>
    %cst_141 = arith.constant 0.000000e+00 : f32
    %cst_142 = arith.constant -1.000000e+09 : f32
    %195 = vector.broadcast %cst_141 : f32 to vector<16x16xf32>
    %196 = vector.broadcast %cst_142 : f32 to vector<16x16xf32>
    %197 = arith.select %194, %195, %196 : vector<16x16xi1>, vector<16x16xf32>
    %c0_143 = arith.constant 0 : index
    %c0_144 = arith.constant 0 : index
    %198 = vector.load %arg2[%c0_143, %c0_144] : memref<1x16xf32, #tpu.memory_space<vmem>>, vector<1x16xf32>
    %cst_145 = arith.constant 1.000000e+00 : f32
    %199 = vector.broadcast %cst_145 : f32 to vector<1x16xf32>
    %200 = arith.subf %198, %199 : vector<1x16xf32>
    %cst_146 = arith.constant 1.000000e+09 : f32
    %201 = vector.broadcast %cst_146 : f32 to vector<1x16xf32>
    %202 = arith.mulf %200, %201 : vector<1x16xf32>
    %203 = vector.broadcast %202 : vector<1x16xf32> to vector<16x16xf32>
    %204 = arith.addf %197, %203 : vector<16x16xf32>
    %c0_147 = arith.constant 0 : index
    %c0_148 = arith.constant 0 : index
    %205 = vector.load %arg10[%c0_147, %c0_148] : memref<6x128xf32, #tpu.memory_space<vmem>>, vector<1x128xf32>
    %cst_149 = arith.constant 0.000000e+00 : f32
    %206 = vector.broadcast %cst_149 : f32 to vector<16x128xf32>
    %207 = vector.broadcast %205 : vector<1x128xf32> to vector<16x128xf32>
    %208 = arith.addf %206, %207 : vector<16x128xf32>
    %209 = vector.extract_strided_slice %167 {offsets = [0, 0], sizes = [16, 64], strides = [1, 1]} : vector<16x384xf32> to vector<16x64xf32>
    %cst_150 = arith.constant 1.250000e-01 : f32
    %210 = vector.broadcast %cst_150 : f32 to vector<16x64xf32>
    %211 = arith.mulf %209, %210 : vector<16x64xf32>
    %212 = vector.extract_strided_slice %167 {offsets = [0, 128], sizes = [16, 64], strides = [1, 1]} : vector<16x384xf32> to vector<16x64xf32>
    %213 = vector.extract_strided_slice %167 {offsets = [0, 256], sizes = [16, 64], strides = [1, 1]} : vector<16x384xf32> to vector<16x64xf32>
    %214 = arith.truncf %211 : vector<16x64xf32> to vector<16x64xbf16>
    %215 = arith.truncf %212 : vector<16x64xf32> to vector<16x64xbf16>
    %cst_151 = arith.constant dense<0.000000e+00> : vector<16x16xf32>
    %216 = tpu.matmul %214, %215, %cst_151 {dimension_numbers = #tpu.dot_dimension_numbers<[1], [1], [0], [0], [0, 0, 1, 0], [], []>} : vector<16x64xbf16>, vector<16x64xbf16>, vector<16x16xf32> -> vector<16x16xf32>
    %217 = arith.addf %216, %204 : vector<16x16xf32>
    %cst_152 = arith.constant dense<0xFF800000> : vector<16xf32>
    %218 = vector.multi_reduction <maximumf>, %217, %cst_152 [1] : vector<16x16xf32> to vector<16xf32>
    %219 = vector.shape_cast %218 : vector<16xf32> to vector<16x1xf32>
    %220 = vector.broadcast %219 : vector<16x1xf32> to vector<16x16xf32>
    %221 = arith.subf %217, %220 : vector<16x16xf32>
    %222 = math.exp %221 : vector<16x16xf32>
    %cst_153 = arith.constant dense<0.000000e+00> : vector<16xf32>
    %223 = vector.multi_reduction <add>, %222, %cst_153 [1] : vector<16x16xf32> to vector<16xf32>
    %224 = vector.shape_cast %223 : vector<16xf32> to vector<16x1xf32>
    %225 = tpu.reciprocal %224 {approx = true} : vector<16x1xf32> -> vector<16x1xf32>
    %226 = vector.broadcast %225 : vector<16x1xf32> to vector<16x16xf32>
    %227 = arith.mulf %222, %226 : vector<16x16xf32>
    %228 = arith.truncf %227 : vector<16x16xf32> to vector<16x16xbf16>
    %229 = arith.truncf %213 : vector<16x64xf32> to vector<16x64xbf16>
    %cst_154 = arith.constant dense<0.000000e+00> : vector<16x64xf32>
    %230 = tpu.matmul %228, %229, %cst_154 {dimension_numbers = #tpu.dot_dimension_numbers<[1], [0], [0], [1], [0, 0, 1, 1], [], []>} : vector<16x16xbf16>, vector<16x64xbf16>, vector<16x64xf32> -> vector<16x64xf32>
    %231 = arith.truncf %230 : vector<16x64xf32> to vector<16x64xbf16>
    %c0_155 = arith.constant 0 : index
    %c0_156 = arith.constant 0 : index
    %232 = vector.load %arg6[%c0_155, %c0_156] : memref<128x128xf32, #tpu.memory_space<vmem>>, vector<64x128xf32>
    %233 = arith.truncf %232 : vector<64x128xf32> to vector<64x128xbf16>
    %cst_157 = arith.constant dense<0.000000e+00> : vector<16x128xf32>
    %234 = tpu.matmul %231, %233, %cst_157 {dimension_numbers = #tpu.dot_dimension_numbers<[1], [0], [0], [1], [0, 0, 1, 1], [], []>} : vector<16x64xbf16>, vector<64x128xbf16>, vector<16x128xf32> -> vector<16x128xf32>
    %235 = arith.addf %208, %234 : vector<16x128xf32>
    %236 = vector.extract_strided_slice %167 {offsets = [0, 64], sizes = [16, 64], strides = [1, 1]} : vector<16x384xf32> to vector<16x64xf32>
    %cst_158 = arith.constant 1.250000e-01 : f32
    %237 = vector.broadcast %cst_158 : f32 to vector<16x64xf32>
    %238 = arith.mulf %236, %237 : vector<16x64xf32>
    %239 = vector.extract_strided_slice %167 {offsets = [0, 192], sizes = [16, 64], strides = [1, 1]} : vector<16x384xf32> to vector<16x64xf32>
    %240 = vector.extract_strided_slice %167 {offsets = [0, 320], sizes = [16, 64], strides = [1, 1]} : vector<16x384xf32> to vector<16x64xf32>
    %241 = arith.truncf %238 : vector<16x64xf32> to vector<16x64xbf16>
    %242 = arith.truncf %239 : vector<16x64xf32> to vector<16x64xbf16>
    %cst_159 = arith.constant dense<0.000000e+00> : vector<16x16xf32>
    %243 = tpu.matmul %241, %242, %cst_159 {dimension_numbers = #tpu.dot_dimension_numbers<[1], [1], [0], [0], [0, 0, 1, 0], [], []>} : vector<16x64xbf16>, vector<16x64xbf16>, vector<16x16xf32> -> vector<16x16xf32>
    %244 = arith.addf %243, %204 : vector<16x16xf32>
    %cst_160 = arith.constant dense<0xFF800000> : vector<16xf32>
    %245 = vector.multi_reduction <maximumf>, %244, %cst_160 [1] : vector<16x16xf32> to vector<16xf32>
    %246 = vector.shape_cast %245 : vector<16xf32> to vector<16x1xf32>
    %247 = vector.broadcast %246 : vector<16x1xf32> to vector<16x16xf32>
    %248 = arith.subf %244, %247 : vector<16x16xf32>
    %249 = math.exp %248 : vector<16x16xf32>
    %cst_161 = arith.constant dense<0.000000e+00> : vector<16xf32>
    %250 = vector.multi_reduction <add>, %249, %cst_161 [1] : vector<16x16xf32> to vector<16xf32>
    %251 = vector.shape_cast %250 : vector<16xf32> to vector<16x1xf32>
    %252 = tpu.reciprocal %251 {approx = true} : vector<16x1xf32> -> vector<16x1xf32>
    %253 = vector.broadcast %252 : vector<16x1xf32> to vector<16x16xf32>
    %254 = arith.mulf %249, %253 : vector<16x16xf32>
    %255 = arith.truncf %254 : vector<16x16xf32> to vector<16x16xbf16>
    %256 = arith.truncf %240 : vector<16x64xf32> to vector<16x64xbf16>
    %cst_162 = arith.constant dense<0.000000e+00> : vector<16x64xf32>
    %257 = tpu.matmul %255, %256, %cst_162 {dimension_numbers = #tpu.dot_dimension_numbers<[1], [0], [0], [1], [0, 0, 1, 1], [], []>} : vector<16x16xbf16>, vector<16x64xbf16>, vector<16x64xf32> -> vector<16x64xf32>
    %258 = arith.truncf %257 : vector<16x64xf32> to vector<16x64xbf16>
    %c64 = arith.constant 64 : index
    %c0_163 = arith.constant 0 : index
    %259 = vector.load %arg6[%c64, %c0_163] : memref<128x128xf32, #tpu.memory_space<vmem>>, vector<64x128xf32>
    %260 = arith.truncf %259 : vector<64x128xf32> to vector<64x128xbf16>
    %cst_164 = arith.constant dense<0.000000e+00> : vector<16x128xf32>
    %261 = tpu.matmul %258, %260, %cst_164 {dimension_numbers = #tpu.dot_dimension_numbers<[1], [0], [0], [1], [0, 0, 1, 1], [], []>} : vector<16x64xbf16>, vector<64x128xbf16>, vector<16x128xf32> -> vector<16x128xf32>
    %262 = arith.addf %235, %261 : vector<16x128xf32>
    %c1_165 = arith.constant 1 : index
    %c0_166 = arith.constant 0 : index
    %263 = vector.load %arg10[%c1_165, %c0_166] : memref<6x128xf32, #tpu.memory_space<vmem>>, vector<1x128xf32>
    %c2_167 = arith.constant 2 : index
    %c0_168 = arith.constant 0 : index
    %264 = vector.load %arg10[%c2_167, %c0_168] : memref<6x128xf32, #tpu.memory_space<vmem>>, vector<1x128xf32>
    %265 = arith.addf %262, %160 : vector<16x128xf32>
    %cst_169 = arith.constant dense<0.000000e+00> : vector<16xf32>
    %266 = vector.multi_reduction <add>, %265, %cst_169 [1] : vector<16x128xf32> to vector<16xf32>
    %267 = vector.shape_cast %266 : vector<16xf32> to vector<16x1xf32>
    %cst_170 = arith.constant 1.280000e+02 : f32
    %268 = vector.broadcast %cst_170 : f32 to vector<16x1xf32>
    %269 = arith.divf %267, %268 : vector<16x1xf32>
    %270 = vector.broadcast %269 : vector<16x1xf32> to vector<16x128xf32>
    %271 = arith.subf %265, %270 : vector<16x128xf32>
    %272 = arith.mulf %271, %271 : vector<16x128xf32>
    %cst_171 = arith.constant dense<0.000000e+00> : vector<16xf32>
    %273 = vector.multi_reduction <add>, %272, %cst_171 [1] : vector<16x128xf32> to vector<16xf32>
    %274 = vector.shape_cast %273 : vector<16xf32> to vector<16x1xf32>
    %cst_172 = arith.constant 1.280000e+02 : f32
    %275 = vector.broadcast %cst_172 : f32 to vector<16x1xf32>
    %276 = arith.divf %274, %275 : vector<16x1xf32>
    %cst_173 = arith.constant 9.99999974E-6 : f32
    %277 = vector.broadcast %cst_173 : f32 to vector<16x1xf32>
    %278 = arith.addf %276, %277 : vector<16x1xf32>
    %279 = math.rsqrt %278 : vector<16x1xf32>
    %280 = vector.broadcast %279 : vector<16x1xf32> to vector<16x128xf32>
    %281 = arith.mulf %271, %280 : vector<16x128xf32>
    %282 = vector.broadcast %263 : vector<1x128xf32> to vector<16x128xf32>
    %283 = arith.mulf %281, %282 : vector<16x128xf32>
    %284 = vector.broadcast %264 : vector<1x128xf32> to vector<16x128xf32>
    %285 = arith.addf %283, %284 : vector<16x128xf32>
    %286 = arith.truncf %285 : vector<16x128xf32> to vector<16x128xbf16>
    %c0_174 = arith.constant 0 : index
    %c0_175 = arith.constant 0 : index
    %287 = vector.load %arg7[%c0_174, %c0_175] : memref<128x256xf32, #tpu.memory_space<vmem>>, vector<128x256xf32>
    %288 = arith.truncf %287 : vector<128x256xf32> to vector<128x256xbf16>
    %cst_176 = arith.constant dense<0.000000e+00> : vector<16x256xf32>
    %289 = tpu.matmul %286, %288, %cst_176 {dimension_numbers = #tpu.dot_dimension_numbers<[1], [0], [0], [1], [0, 0, 1, 1], [], []>} : vector<16x128xbf16>, vector<128x256xbf16>, vector<16x256xf32> -> vector<16x256xf32>
    %c0_177 = arith.constant 0 : index
    %c0_178 = arith.constant 0 : index
    %290 = vector.load %arg8[%c0_177, %c0_178] : memref<1x256xf32, #tpu.memory_space<vmem>>, vector<1x256xf32>
    %291 = vector.broadcast %290 : vector<1x256xf32> to vector<16x256xf32>
    %292 = arith.addf %289, %291 : vector<16x256xf32>
    %293 = arith.mulf %292, %292 : vector<16x256xf32>
    %294 = arith.mulf %292, %293 : vector<16x256xf32>
    %cst_179 = arith.constant 4.471500e-02 : f32
    %295 = vector.broadcast %cst_179 : f32 to vector<16x256xf32>
    %296 = arith.mulf %295, %294 : vector<16x256xf32>
    %297 = arith.addf %292, %296 : vector<16x256xf32>
    %cst_180 = arith.constant 0.797884583 : f32
    %298 = vector.broadcast %cst_180 : f32 to vector<16x256xf32>
    %299 = arith.mulf %298, %297 : vector<16x256xf32>
    %300 = math.tanh %299 : vector<16x256xf32>
    %cst_181 = arith.constant 1.000000e+00 : f32
    %301 = vector.broadcast %cst_181 : f32 to vector<16x256xf32>
    %302 = arith.addf %301, %300 : vector<16x256xf32>
    %cst_182 = arith.constant 5.000000e-01 : f32
    %303 = vector.broadcast %cst_182 : f32 to vector<16x256xf32>
    %304 = arith.mulf %303, %302 : vector<16x256xf32>
    %305 = arith.mulf %292, %304 : vector<16x256xf32>
    %306 = arith.truncf %305 : vector<16x256xf32> to vector<16x256xbf16>
    %c0_183 = arith.constant 0 : index
    %c0_184 = arith.constant 0 : index
    %307 = vector.load %arg9[%c0_183, %c0_184] : memref<256x128xf32, #tpu.memory_space<vmem>>, vector<256x128xf32>
    %308 = arith.truncf %307 : vector<256x128xf32> to vector<256x128xbf16>
    %cst_185 = arith.constant dense<0.000000e+00> : vector<16x128xf32>
    %309 = tpu.matmul %306, %308, %cst_185 {dimension_numbers = #tpu.dot_dimension_numbers<[1], [0], [0], [1], [0, 0, 1, 1], [], []>} : vector<16x256xbf16>, vector<256x128xbf16>, vector<16x128xf32> -> vector<16x128xf32>
    %c3_186 = arith.constant 3 : index
    %c0_187 = arith.constant 0 : index
    %310 = vector.load %arg10[%c3_186, %c0_187] : memref<6x128xf32, #tpu.memory_space<vmem>>, vector<1x128xf32>
    %311 = vector.broadcast %310 : vector<1x128xf32> to vector<16x128xf32>
    %312 = arith.addf %309, %311 : vector<16x128xf32>
    %c4_188 = arith.constant 4 : index
    %c0_189 = arith.constant 0 : index
    %313 = vector.load %arg10[%c4_188, %c0_189] : memref<6x128xf32, #tpu.memory_space<vmem>>, vector<1x128xf32>
    %c5_190 = arith.constant 5 : index
    %c0_191 = arith.constant 0 : index
    %314 = vector.load %arg10[%c5_190, %c0_191] : memref<6x128xf32, #tpu.memory_space<vmem>>, vector<1x128xf32>
    %315 = arith.addf %312, %285 : vector<16x128xf32>
    %cst_192 = arith.constant dense<0.000000e+00> : vector<16xf32>
    %316 = vector.multi_reduction <add>, %315, %cst_192 [1] : vector<16x128xf32> to vector<16xf32>
    %317 = vector.shape_cast %316 : vector<16xf32> to vector<16x1xf32>
    %cst_193 = arith.constant 1.280000e+02 : f32
    %318 = vector.broadcast %cst_193 : f32 to vector<16x1xf32>
    %319 = arith.divf %317, %318 : vector<16x1xf32>
    %320 = vector.broadcast %319 : vector<16x1xf32> to vector<16x128xf32>
    %321 = arith.subf %315, %320 : vector<16x128xf32>
    %322 = arith.mulf %321, %321 : vector<16x128xf32>
    %cst_194 = arith.constant dense<0.000000e+00> : vector<16xf32>
    %323 = vector.multi_reduction <add>, %322, %cst_194 [1] : vector<16x128xf32> to vector<16xf32>
    %324 = vector.shape_cast %323 : vector<16xf32> to vector<16x1xf32>
    %cst_195 = arith.constant 1.280000e+02 : f32
    %325 = vector.broadcast %cst_195 : f32 to vector<16x1xf32>
    %326 = arith.divf %324, %325 : vector<16x1xf32>
    %cst_196 = arith.constant 9.99999974E-6 : f32
    %327 = vector.broadcast %cst_196 : f32 to vector<16x1xf32>
    %328 = arith.addf %326, %327 : vector<16x1xf32>
    %329 = math.rsqrt %328 : vector<16x1xf32>
    %330 = vector.broadcast %329 : vector<16x1xf32> to vector<16x128xf32>
    %331 = arith.mulf %321, %330 : vector<16x128xf32>
    %332 = vector.broadcast %313 : vector<1x128xf32> to vector<16x128xf32>
    %333 = arith.mulf %331, %332 : vector<16x128xf32>
    %334 = vector.broadcast %314 : vector<1x128xf32> to vector<16x128xf32>
    %335 = arith.addf %333, %334 : vector<16x128xf32>
    %c0_197 = arith.constant 0 : index
    %c0_198 = arith.constant 0 : index
    %336 = vector.load %arg11[%c0_197, %c0_198] : memref<16x128xf32, #tpu.memory_space<vmem>>, vector<16x128xf32>
    tpu.vector_store %arg11[%c0_197, %c0_198], %335 {strides = array<i32>} : memref<16x128xf32, #tpu.memory_space<vmem>>, vector<16x128xf32>,
    return
  }
  func.func @transform_0(%arg0: i32, %arg1: memref<16xi32, #tpu.memory_space<smem>>) -> (i32, i32) {
    %c0_i32 = arith.constant 0 : i32
    %c0_i32_0 = arith.constant 0 : i32
    %c0_i32_1 = arith.constant 0 : i32
    return %c0_i32, %c0_i32_0 : i32, i32
  }
  func.func @transform_2(%arg0: i32, %arg1: memref<16xi32, #tpu.memory_space<smem>>) -> (i32, i32) {
    %c0_i32 = arith.constant 0 : i32
    %c0_i32_0 = arith.constant 0 : i32
    %c0_i32_1 = arith.constant 0 : i32
    return %c0_i32, %c0_i32_0 : i32, i32
  }
  func.func @transform_3(%arg0: i32, %arg1: memref<16xi32, #tpu.memory_space<smem>>) -> (i32, i32) {
    %c0_i32 = arith.constant 0 : i32
    %c0_i32_0 = arith.constant 0 : i32
    %c0_i32_1 = arith.constant 0 : i32
    return %c0_i32, %c0_i32_0 : i32, i32
  }
  func.func @transform_4(%arg0: i32, %arg1: memref<16xi32, #tpu.memory_space<smem>>) -> (i32, i32) {
    %c0_i32 = arith.constant 0 : i32
    %c0_i32_0 = arith.constant 0 : i32
    %c0_i32_1 = arith.constant 0 : i32
    return %c0_i32, %c0_i32_0 : i32, i32
  }
  func.func @transform_5(%arg0: i32, %arg1: memref<16xi32, #tpu.memory_space<smem>>) -> (i32, i32) {
    %c0_i32 = arith.constant 0 : i32
    %c0_i32_0 = arith.constant 0 : i32
    %c0_i32_1 = arith.constant 0 : i32
    return %c0_i32, %c0_i32_0 : i32, i32
  }
  func.func @transform_6(%arg0: i32, %arg1: memref<16xi32, #tpu.memory_space<smem>>) -> (i32, i32) {
    %c0_i32 = arith.constant 0 : i32
    %c0_i32_0 = arith.constant 0 : i32
    %c0_i32_1 = arith.constant 0 : i32
    return %c0_i32, %c0_i32_0 : i32, i32
  }
  func.func @transform_7(%arg0: i32, %arg1: memref<16xi32, #tpu.memory_space<smem>>) -> (i32, i32) {
    %c0_i32 = arith.constant 0 : i32
    %c0_i32_0 = arith.constant 0 : i32
    %c0_i32_1 = arith.constant 0 : i32
    return %c0_i32, %c0_i32_0 : i32, i32
  }
  func.func @transform_8(%arg0: i32, %arg1: memref<16xi32, #tpu.memory_space<smem>>) -> (i32, i32) {
    %c0_i32 = arith.constant 0 : i32
    %c0_i32_0 = arith.constant 0 : i32
    %c0_i32_1 = arith.constant 0 : i32
    return %c0_i32, %c0_i32_0 : i32, i32
  }
  func.func @transform_9(%arg0: i32, %arg1: memref<16xi32, #tpu.memory_space<smem>>) -> (i32, i32) {
    %c0_i32 = arith.constant 0 : i32
    %c0_i32_0 = arith.constant 0 : i32
    %c0_i32_1 = arith.constant 0 : i32
    return %c0_i32, %c0_i32_0 : i32, i32
  }
}

</mosaic_0001>

<bundles_post_ra>
// kernel: diff_pruning_transformer_forward.2
= control target key start
LH: loop header
LB: loop body
LE: loop exit
PB: predicated region body
PF: predicated region fallthrough
CT: control target
= control target key end

     0   :  { %8 = vsyncpa [#allocation3], 0  ;;  %s2574_s0 = inlined_call_operand.hbm [shape: f32[1088,128], index: 0, kind: input, shape index: {}]   ;;  %s2575_s1 = inlined_call_operand.hbm [shape: f32[1088,128], index: 1, kind: input, shape index: {}]   ;;  %s2576_s2 = inlined_call_operand.hbm [shape: f32[1088,128], index: 2, kind: input, shape index: {}]   ;;  %s2577_s3 = inlined_call_operand.vmem [shape: f32[1088,128], index: 3, kind: output, shape index: {}]  }
   0x1   :  { %10 = vsyncpa [#allocation3 + $0x1], 0 }
   0x2   :  { %11 = vsyncpa [#allocation5], 0 }
   0x3   :  { %13 = vsyncpa [#allocation5 + $0x1], 0  ;;  %s2034_s12 = smov 0   ;;  %s2036_s13 = smov 0  }
   0x4   :  { %s2038_s14 = smov 0   ;;  %s2040_s15 = smov 0  }
   0x5 LB: > { %s2053_s16 = sadd.s32 4294967295, %s2007_s15   ;;  %s2056_s17 = sadd.s32 1, %s2007_s15   ;;  %s2007_s15 = sphi %s2040_s15, %s2591_s15   ;;  %s2003_s14 = sphi %s2038_s14, %s2590_s14   ;;  %s1999_s13 = sphi %s2036_s13, %s2589_s13   ;;  %s1995_s12 = sphi %s2034_s12, %s2588_s12  }
   0x6   : > { %s23_s18 = ssub.s32 %s2007_s15, %s2056_s17  ;;  %s26_s19 = sadd.s32 1, %s2003_s14 }
   0x7   : > { %p24_p0 = scmp.eq.s32.totalorder %s23_s18, 0  ;;  %p33_p1 = scmp.ne.s32.totalorder %s2003_s14, %s1999_s13 }
   0x8   : > { %p34_p2 = scmp.eq.s32.totalorder %s2007_s15, 0  ;;  %p39_p3 = scmp.ne.s32.totalorder %s1999_s13, %s1995_s12 }
   0x9   : > { %s2066_s20 = scalar_select %p24_p0, %s2003_s14, %s26_s19  }
   0xa   : > { %p35_p4 = por %p34_p2, %p33_p1  ;;  %p40_p5 = scmp.eq.s32.totalorder %s2053_s16, 0 }
   0xb   : > { %p1572_p6 = scmp.lt.s32.totalorder %s2007_s15, 2  ;;  %s141_s22 = sand.u32 1, %s2003_s14  }
   0xc   : > { %p2070_p7 = por %p40_p5, %p39_p3  ;;  %s2077_s23 = smul.u32 544, %s141_s22 }
   0xd   : > { %p2079_p8 = pnand %p1572_p6, %p35_p4  ;;  %s2084_s25 = smul.u32 8704, %s2007_s15 }
   0xe   : > { %s2579_s21 = scalar_select %p2070_p7, 1, 0 }
   0xf   : > { %s162_s26 = sand.u32 1, %s2007_s15   ;;  %s2091_s29 = scalar_lea.hbm %s2575_s1, %s2084_s25 }
  0x10   : > { %s166_s30 = scalar_lea.vmem [#allocation4], %s2077_s23  ;;  %s2098_s5 = scalar_lea.sflag [#allocation5], %s162_s26 }
  0x11   : > { %s173_s4 = sshll.u32 %s166_s30, 4  ;;  %s1879_s6 = scalar_lea.hbm %s2091_s29, 8704  ;;  %s2095_s4 = int_to_ptr.vmem [resolvable:$true] %s173_s4 }
  0x12   : > { %p1880_p11 = scmp.ne.s32.totalorder %s2091_s29, %s1879_s6  ;;  %p2104_p12 = pneg %p2079_p8 }
  0x13   : > { %s1884_s10 = scalar_lea.hbm %s2575_s1, 17408  ;;  %p1885_p1 = scmp.lt.u32.totalorder %s2091_s29, %s2575_s1 }
  0x14   : > { %p1882_p13 = pnand %p2104_p12, %p1880_p11  ;;  %p1886_p2 = scmp.lt.u32.totalorder %s1884_s10, %s1879_s6 }
  0x15   : > { %p1888_p4 = scmp.lt.u32.totalorder %s1879_s6, %s2091_s29 }
  0x16   : > { %p1883_p0 = pneg %p1882_p13  ;;  %p1887_p3 = por %p1886_p2, %p1885_p1 }
  0x18   : > { %p1889_p5 = por %p1888_p4, %p1887_p3 }
  0x1a   : > { %p1890_p6 = pnand %p1889_p5, %p1883_p0 }
  0x1c   : > { %1893 = shalt.err (!%p1890_p6)
}
  0x1d   : > { %s1894_s18 = scalar_lea.vmem %s2095_s4, 8704  ;;  %s2009_s19 = smov [#allocation4]  }
  0x1e   : > { %p1895_p11 = scmp.ne.s32.totalorder %s2095_s4, %s1894_s18  ;;  %s1899_s26 = sshll.u32 %s2009_s19, 4  ;;  %s1900_s26 = int_to_ptr.vmem [resolvable:$false] %s1899_s26 }
  0x1f   : > { %s1901_s27 = scalar_lea.vmem %s1900_s26, 17408  ;;  %p1902_p10 = scmp.lt.s32.totalorder %s2095_s4, %s1900_s26 }
  0x20   : > { %p1897_p13 = pnand %p1895_p11, %p2104_p12  ;;  %p1903_p7 = scmp.lt.s32.totalorder %s1901_s27, %s1894_s18 }
  0x22   : > { %p1898_p9 = pneg %p1897_p13  ;;  %p1904_p1 = por %p1903_p7, %p1902_p10 }
  0x24   : > { %p1905_p2 = pnand %p1904_p1, %p1898_p9 }
  0x26   : > { %1908 = shalt.err (!%p1905_p2)
}
  0x27   : > { %s2010_s28 = smov 128   ;;  %s2011_s30 = smov 8  }
  0x28   : > { %1568 = dma.hbm_to_vmem [thread:$0]  (!%p2079_p8), %s2091_s29, 8704, %s2095_s4, %s2098_s5, %s2010_s28, %s2010_s28, %s2011_s30  }
  0x29   : > { %p2582_p7 = scmp.lt.s32.totalorder %s2007_s15, 3  ;;  %p2583_p9 = scmp.ge.s32.totalorder %s2007_s15, 1 }
  0x2a   : > { %s2143_s10 = scalar_lea.hbm %s2574_s0, %s2084_s25  ;;  %s145_s11 = scalar_lea.vmem [#allocation2], %s2077_s23 }
  0x2b   : > { %p2135_p10 = pnand %p2583_p9, %p2582_p7  ;;  %s152_s12 = sshll.u32 %s145_s11, 4  ;;  %s2146_s12 = int_to_ptr.vmem [resolvable:$true] %s152_s12 }
  0x2c   : > { %s2152_s15 = scalar_lea.hbm %s2576_s2, %s2084_s25  ;;  %s2156_s18 = scalar_lea.sflag [#allocation3], %s141_s22 }
  0x2d   : > { %s2584_s6 = scalar_select %p2135_p10, 1, 0 }
  0x2e   : > { %s1909_s19 = scalar_lea.hbm %s2143_s10, 8704  ;;  %s1914_s8 = scalar_lea.hbm %s2574_s0, 17408 }
  0x2f   : > { %p1910_p0 = scmp.ne.s32.totalorder %s2143_s10, %s1909_s19  ;;  %p1915_p5 = scmp.lt.u32.totalorder %s2143_s10, %s2574_s0 }
  0x30   : > { %p1916_p6 = scmp.lt.u32.totalorder %s1914_s8, %s1909_s19  ;;  %p1918_p13 = scmp.lt.u32.totalorder %s1909_s19, %s2143_s10 }
  0x31   : > { %p1912_p3 = pnand %p1910_p0, %p2104_p12 }
  0x32   : > { %p1917_p11 = por %p1916_p6, %p1915_p5 }
  0x33   : > { %p1913_p4 = pneg %p1912_p3 }
  0x34   : > { %p1919_p1 = por %p1918_p13, %p1917_p11 }
  0x36   : > { %p1920_p2 = pnand %p1919_p1, %p1913_p4 }
  0x38   : > { %1923 = shalt.err (!%p1920_p2)
}
  0x39   : > { %s1924_s22 = scalar_lea.vmem %s2146_s12, 8704  ;;  %s2012_s25 = smov [#allocation2]  }
  0x3a   : > { %p1925_p7 = scmp.ne.s32.totalorder %s2146_s12, %s1924_s22  ;;  %s1929_s29 = sshll.u32 %s2012_s25, 4  ;;  %s1930_s29 = int_to_ptr.vmem [resolvable:$false] %s1929_s29 }
  0x3b   : > { %s1931_s4 = scalar_lea.vmem %s1930_s29, 17408  ;;  %p1932_p3 = scmp.lt.s32.totalorder %s2146_s12, %s1930_s29 }
  0x3c   : > { %p1927_p9 = pnand %p1925_p7, %p2104_p12  ;;  %p1933_p10 = scmp.lt.s32.totalorder %s1931_s4, %s1924_s22 }
  0x3e   : > { %p1928_p0 = pneg %p1927_p9  ;;  %p1934_p5 = por %p1933_p10, %p1932_p3 }
  0x40   : > { %p1935_p6 = pnand %p1934_p5, %p1928_p0 }
  0x42   : > { %1938 = shalt.err (!%p1935_p6)
}
  0x43   : > { %1565 = dma.hbm_to_vmem [thread:$0]  (!%p2079_p8), %s2143_s10, 8704, %s2146_s12, %s2156_s18, %s2010_s28, %s2010_s28, %s2011_s30  }
  0x44   : > { %s187_s19 = scalar_lea.vmem [#allocation6], %s2077_s23  ;;  %s1939_s27 = scalar_lea.hbm %s2152_s15, 8704 }
  0x45   : > { %s194_s26 = sshll.u32 %s187_s19, 4  ;;  %p1940_p10 = scmp.ne.s32.totalorder %s2152_s15, %s1939_s27  ;;  %s2184_s26 = int_to_ptr.vmem [resolvable:$true] %s194_s26 }
  0x46   : > { %s1944_s11 = scalar_lea.hbm %s2576_s2, 17408  ;;  %p1945_p13 = scmp.lt.u32.totalorder %s2152_s15, %s2576_s2 }
  0x47   : > { %p1942_p4 = pnand %p1940_p10, %p2104_p12  ;;  %p1946_p1 = scmp.lt.u32.totalorder %s1944_s11, %s1939_s27 }
  0x48   : > { %p1948_p7 = scmp.lt.u32.totalorder %s1939_s27, %s2152_s15 }
  0x49   : > { %p1943_p11 = pneg %p1942_p4  ;;  %p1947_p2 = por %p1946_p1, %p1945_p13 }
  0x4b   : > { %p1949_p9 = por %p1948_p7, %p1947_p2 }
  0x4d   : > { %p1950_p0 = pnand %p1949_p9, %p1943_p11 }
  0x4f   : > { %1953 = shalt.err (!%p1950_p0)
}
  0x50   : > { %s1954_s23 = scalar_lea.vmem %s2184_s26, 8704  ;;  %s2013_s10 = smov [#allocation6]  }
  0x51   : > { %p1955_p3 = scmp.ne.s32.totalorder %s2184_s26, %s1954_s23  ;;  %s1959_s12 = sshll.u32 %s2013_s10, 4  ;;  %s1960_s12 = int_to_ptr.vmem [resolvable:$false] %s1959_s12 }
  0x52   : > { %s1961_s18 = scalar_lea.vmem %s1960_s12, 17408  ;;  %p1962_p10 = scmp.lt.s32.totalorder %s2184_s26, %s1960_s12 }
  0x53   : > { %p1957_p5 = pnand %p1955_p3, %p2104_p12  ;;  %p1963_p4 = scmp.lt.s32.totalorder %s1961_s18, %s1954_s23 }
  0x55   : > { %p1958_p6 = pneg %p1957_p5  ;;  %p1964_p13 = por %p1963_p4, %p1962_p10 }
  0x57   : > { %p1965_p1 = pnand %p1964_p13, %p1958_p6 }
  0x59   : > { %1968 = shalt.err (!%p1965_p1)
}
  0x5a   : > { %1571 = dma.hbm_to_vmem [thread:$0]  (!%p2079_p8), %s2152_s15, 8704, %s2184_s26, %s2098_s5, %s2010_s28, %s2010_s28, %s2011_s30  }
  0x5b   : > { %p2585_p12 = scmp.ne.s32.totalorder %s2584_s6, 0 }
  0x5c   : > { %s208_s7 = sand.u32 (!%p2585_p12), 1, %s1999_s13   ;;  %p2586_p11 = scmp.ne.s32.totalorder (!%p2585_p12), %s2579_s21, 0 }
  0x5d   : > { %206 = sbr.rel (%p2585_p12) target bundleno = 333 (0x14d), region = 32  ;;  %s209_s4 = scalar_lea.sflag (!%p2585_p12), [#allocation3], %s208_s7 }
  0x5e   : > { %s2214_s29 = smul.u32 (!%p2585_p12), 544, %s208_s7 }
  0x60   : > { %s2217_s19 = scalar_lea.vmem (!%p2585_p12), [#allocation2], %s2214_s29 }
  0x64   : > { %1986 = dma.done.wait (%p2586_p11), %s209_s4, 8704  }
  0x65   : > { %1988 = vsyncadd (%p2586_p11), %s209_s4, 4294958592  ;;  %s217_s24 = sand.u32 1, %s2053_s16   ;;  %s2225_s28 = scalar_lea.vmem [#allocation4], %s2214_s29 }
  0x66   : > { %s218_s5 = scalar_lea.sflag [#allocation5], %s217_s24 }
  0x67   : > { %1990 = dma.done.wait (%p2586_p11), %s218_s5, 17408  }
  0x68   : > { %1992 = vsyncadd (%p2586_p11), %s218_s5, 4294949888  ;;  %v272_v0 = vld [vmem:[%s2217_s19] sm:$0xff]  ;;  %v273_v2 = vld [vmem:[%s2217_s19 + $0x8] sm:$0xff]  ;;  %s266_s21 = smul.u32 68, %s2053_s16  ;;  %s2277_s6 = scalar_lea.vmem [#allocation6], %s2214_s29 }
  0x69   : > { %v1479_v1 = vmul.f32 -1.442695, %v272_v0  ;;  %v1480_v3 = vmul.f32 -1.442695, %v273_v2  ;;  %v274_v4 = vld [vmem:[%s2217_s19 + $0x10] sm:$0xff]  ;;  %v275_v6 = vld [vmem:[%s2217_s19 + $0x18] sm:$0xff] }
  0x6a   : > { %v1481_v5 = vmul.f32 -1.442695, %v274_v4  ;;  %v1482_v7 = vmul.f32 -1.442695, %v275_v6  ;;  %v276_v8 = vld [vmem:[%s2217_s19 + $0x20] sm:$0xff]  ;;  %v277_v10 = vld [vmem:[%s2217_s19 + $0x28] sm:$0xff] }
  0x6b   : > { %1607 = vpow2.f32 %v1479_v1  ;;  %v1483_v9 = vmul.f32 -1.442695, %v276_v8  ;;  %v1484_v11 = vmul.f32 -1.442695, %v277_v10  ;;  %v278_v12 = vld [vmem:[%s2217_s19 + $0x30] sm:$0xff]  ;;  %v279_v14 = vld [vmem:[%s2217_s19 + $0x38] sm:$0xff] }
  0x6c   : > { %1609 = vpow2.f32 %v1480_v3  ;;  %v1485_v13 = vmul.f32 -1.442695, %v278_v12  ;;  %v1486_v15 = vmul.f32 -1.442695, %v279_v14  ;;  %v280_v16 = vld [vmem:[%s2217_s19 + $0x40] sm:$0xff]  ;;  %v281_v18 = vld [vmem:[%s2217_s19 + $0x48] sm:$0xff] }
  0x6d   : > { %1611 = vpow2.f32 %v1481_v5  ;;  %v1487_v17 = vmul.f32 -1.442695, %v280_v16  ;;  %v1488_v19 = vmul.f32 -1.442695, %v281_v18  ;;  %v282_v20 = vld [vmem:[%s2217_s19 + $0x50] sm:$0xff]  ;;  %v283_v22 = vld [vmem:[%s2217_s19 + $0x58] sm:$0xff] }
  0x6e   : > { %1613 = vpow2.f32 %v1482_v7  ;;  %v1489_v21 = vmul.f32 -1.442695, %v282_v20  ;;  %v1490_v23 = vmul.f32 -1.442695, %v283_v22  ;;  %v284_v24 = vld [vmem:[%s2217_s19 + $0x60] sm:$0xff]  ;;  %v285_v45 = vld [vmem:[%s2217_s19 + $0x68] sm:$0xff] }
  0x6f   : > { %1615 = vpow2.f32 %v1483_v9  ;;  %v1491_v26 = vmul.f32 -1.442695, %v284_v24  ;;  %v286_v48 = vld [vmem:[%s2217_s19 + $0x70] sm:$0xff]  ;;  %v287_v51 = vld [vmem:[%s2217_s19 + $0x78] sm:$0xff]  ;;  %v288_v52 = vld [vmem:[%s2217_s19 + $0x80] sm:$0xff]  ;;  %p2251_p8 = scmp.lt.s32.totalorder %s266_s21, 135 }
  0x70   : > { %1617 = vpow2.f32 %v1484_v11  ;;  %v1492_v55 = vmul.f32 -1.442695, %v285_v45  ;;  %v289_v56 = vld [vmem:[%s2217_s19 + $0x88] sm:$0xff]  ;;  %v290_v57 = vld [vmem:[%s2217_s19 + $0x90] sm:$0xff]  ;;  %v1493_v60 = vmul.f32 -1.442695, %v286_v48 }
  0x71   : > { %1619 = vpow2.f32 %v1485_v13  ;;  %v291_v61 = vld [vmem:[%s2217_s19 + $0x98] sm:$0xff]  ;;  %v1494_v0 = vmul.f32 -1.442695, %v287_v51  ;;  %v1495_v1 = vmul.f32 -1.442695, %v288_v52  ;;  %v292_v2 = vld [vmem:[%s2217_s19 + $0xa0] sm:$0xff] }
  0x72   : > { %1621 = vpow2.f32 %v1486_v15  ;;  %v2259_v5 = vmul.f32 -1.442695, %v289_v56  ;;  %v2261_v6 = vmul.f32 -1.442695, %v290_v57  ;;  %s2593_s21 = smov (!%p2251_p8, %s266_s21), 135  ;;  %v1088_v20 = vld [vmem:[%s2225_s28] sm:$0xff] }
  0x73   : > { %1623 = vpow2.f32 %v1487_v17  ;;  %v2269_v10 = vmul.f32 -1.442695, %v291_v61  ;;  %v2271_v14 = vmul.f32 -1.442695, %v292_v2  ;;  %s1478_s16 = sshll.u32 %s2593_s21, 3  ;;  %v1092_v48 = vld [vmem:[%s2225_s28 + $0x20] sm:$0xff] }
  0x74   : > { %1625 = vpow2.f32 %v1488_v19  ;;  %s2286_s27 = scalar_lea.vmem %s2577_s3, %s1478_s16  ;;  %v1093_v56 = vld [vmem:[%s2225_s28 + $0x28] sm:$0xff]  ;;  %v1024_v61 = vld [vmem:[%s2277_s6 + $0x20] sm:$0xff] }
  0x75   : > { %v1608_v25 = vpop.eup %1607  ;;  %1627 = vpow2.f32 %v1489_v21 }
  0x76   : > { %v1610_v27 = vpop.eup %1609  ;;  %v544_v28 = vadd.f32 1.0, %v1608_v25  ;;  %1629 = vpow2.f32 %v1490_v23 }
  0x77   : > { %v1612_v29 = vpop.eup %1611  ;;  %v545_v30 = vadd.f32 1.0, %v1610_v27  ;;  %1631 = vpow2.f32 %v1491_v26  ;;  %v1089_v26 = vld [vmem:[%s2225_s28 + $0x8] sm:$0xff] }
  0x78   : > { %v1614_v31 = vpop.eup %1613  ;;  %1633 = vrcp.f32 %v544_v28  ;;  %v546_v32 = vadd.f32 1.0, %v1612_v29 }
  0x79   : > { %v1616_v33 = vpop.eup %1615  ;;  %1635 = vrcp.f32 %v545_v30  ;;  %v547_v34 = vadd.f32 1.0, %v1614_v31  ;;  %v1020_v31 = vld [vmem:[%s2277_s6] sm:$0xff] }
  0x7a   : > { %v1618_v35 = vpop.eup %1617  ;;  %1637 = vrcp.f32 %v546_v32  ;;  %v548_v36 = vadd.f32 1.0, %v1616_v33  ;;  %v1090_v33 = vld [vmem:[%s2225_s28 + $0x10] sm:$0xff] }
  0x7b   : > { %v1620_v37 = vpop.eup %1619  ;;  %1639 = vrcp.f32 %v547_v34  ;;  %v549_v38 = vadd.f32 1.0, %v1618_v35 }
  0x7c   : > { %v1622_v39 = vpop.eup %1621  ;;  %1641 = vrcp.f32 %v548_v36  ;;  %v550_v40 = vadd.f32 1.0, %v1620_v37 }
  0x7d   : > { %v1624_v41 = vpop.eup %1623  ;;  %1643 = vrcp.f32 %v549_v38  ;;  %v551_v42 = vadd.f32 1.0, %v1622_v39  ;;  %v1021_v39 = vld [vmem:[%s2277_s6 + $0x8] sm:$0xff] }
  0x7e   : > { %v1626_v43 = vpop.eup %1625  ;;  %1645 = vrcp.f32 %v550_v40  ;;  %v552_v44 = vadd.f32 1.0, %v1624_v41  ;;  %v1091_v41 = vld [vmem:[%s2225_s28 + $0x18] sm:$0xff] }
  0x7f   : > { %v1628_v46 = vpop.eup %1627  ;;  %1647 = vrcp.f32 %v551_v42  ;;  %v553_v47 = vadd.f32 1.0, %v1626_v43 }
  0x80   : > { %v1630_v49 = vpop.eup %1629  ;;  %1649 = vrcp.f32 %v552_v44  ;;  %v554_v50 = vadd.f32 1.0, %v1628_v46  ;;  %v1022_v46 = vld [vmem:[%s2277_s6 + $0x10] sm:$0xff] }
  0x81   : > { %v1632_v53 = vpop.eup %1631  ;;  %1651 = vrcp.f32 %v553_v47  ;;  %v555_v54 = vadd.f32 1.0, %v1630_v49 }
  0x82   : > { %v1634_v58 = vpop.eup %1633  ;;  %1653 = vrcp.f32 %v554_v50  ;;  %v556_v59 = vadd.f32 1.0, %v1632_v53 }
  0x83   : > { %v1636_v62 = vpop.eup %1635  ;;  %v748_v63 = vmul.f32 3.0, %v1634_v58  ;;  %1655 = vrcp.f32 %v555_v54  ;;  %v1023_v54 = vld [vmem:[%s2277_s6 + $0x18] sm:$0xff] }
  0x84   : > { %v1638_v3 = vpop.eup %1637  ;;  %v749_v4 = vmul.f32 3.0, %v1636_v62  ;;  %1657 = vrcp.f32 %v556_v59 }
  0x85   : > { %v1640_v7 = vpop.eup %1639  ;;  %v816_v8 = vadd.f32 -1.5, %v748_v63  ;;  %v750_v9 = vmul.f32 3.0, %v1638_v3  ;;  %1659 = vpow2.f32 %v1492_v55  ;;  %v1094_v63 = vld [vmem:[%s2225_s28 + $0x30] sm:$0xff] }
  0x86   : > { %v1642_v11 = vpop.eup %1641  ;;  %v817_v12 = vadd.f32 -1.5, %v749_v4  ;;  %v751_v13 = vmul.f32 3.0, %v1640_v7  ;;  %1661 = vpow2.f32 %v1493_v60  ;;  %v1025_v4 = vld [vmem:[%s2277_s6 + $0x28] sm:$0xff] }
  0x87   : > { %v1644_v15 = vpop.eup %1643  ;;  %v884_v16 = vmax.f32 %v816_v8, 0.0  ;;  %v818_v17 = vadd.f32 -1.5, %v750_v9  ;;  %v752_v18 = vmul.f32 3.0, %v1642_v11  ;;  %1663 = vpow2.f32 %v1494_v0  ;;  %v1095_v8 = vld [vmem:[%s2225_s28 + $0x38] sm:$0xff] }
  0x88   : > { %v1646_v19 = vpop.eup %1645  ;;  %v885_v21 = vmax.f32 %v817_v12, 0.0  ;;  %v819_v22 = vadd.f32 -1.5, %v751_v13  ;;  %v753_v23 = vmul.f32 3.0, %v1644_v15  ;;  %1665 = vpow2.f32 %v1495_v1  ;;  %v1026_v15 = vld [vmem:[%s2277_s6 + $0x30] sm:$0xff] }
  0x89   : > { %v1648_v24 = vpop.eup %1647  ;;  %v952_v25 = vmin.f32 %v884_v16, 1.0  ;;  %v886_v27 = vmax.f32 %v818_v17, 0.0  ;;  %v820_v28 = vadd.f32 -1.5, %v752_v18  ;;  %v754_v29 = vmul.f32 3.0, %v1646_v19 }
  0x8a   : > { %v1650_v30 = vpop.eup %1649  ;;  %v953_v32 = vmin.f32 %v885_v21, 1.0  ;;  %v887_v34 = vmax.f32 %v819_v22, 0.0  ;;  %v821_v35 = vadd.f32 -1.5, %v753_v23  ;;  %v755_v36 = vmul.f32 3.0, %v1648_v24  ;;  %v1027_v21 = vld [vmem:[%s2277_s6 + $0x38] sm:$0xff] }
  0x8b   : > { %v1652_v37 = vpop.eup %1651  ;;  %v1156_v38 = vmul.f32 %v1088_v20, %v952_v25  ;;  %v954_v40 = vmin.f32 %v886_v27, 1.0  ;;  %v888_v42 = vmax.f32 %v820_v28, 0.0  ;;  %v822_v43 = vadd.f32 -1.5, %v754_v29 }
  0x8c   : > { %v1654_v44 = vpop.eup %1653  ;;  %v1157_v45 = vmul.f32 %v1089_v26, %v953_v32  ;;  %v955_v47 = vmin.f32 %v887_v34, 1.0  ;;  %v889_v49 = vmax.f32 %v821_v35, 0.0  ;;  %v823_v50 = vadd.f32 -1.5, %v755_v36  ;;  %v1096_v34 = vld [vmem:[%s2225_s28 + $0x40] sm:$0xff] }
  0x8d   : > { %v1656_v51 = vpop.eup %1655  ;;  %v1224_v52 = vadd.f32 %v1156_v38, %v1020_v31  ;;  %v1158_v53 = vmul.f32 %v1090_v33, %v954_v40  ;;  %v956_v55 = vmin.f32 %v888_v42, 1.0  ;;  %v890_v57 = vmax.f32 %v822_v43, 0.0  ;;  %v1028_v43 = vld [vmem:[%s2277_s6 + $0x40] sm:$0xff] }
  0x8e   : > { %v1658_v58 = vpop.eup %1657  ;;  %v1225_v59 = vadd.f32 %v1157_v45, %v1021_v39  ;;  %v1159_v60 = vmul.f32 %v1091_v41, %v955_v47  ;;  %v957_v62 = vmin.f32 %v889_v49, 1.0  ;;  %v891_v0 = vmax.f32 %v823_v50, 0.0  ;;  %v1097_v39 = vld [vmem:[%s2225_s28 + $0x48] sm:$0xff]  ;;  %v1098_v45 = vld [vmem:[%s2225_s28 + $0x50] sm:$0xff] }
  0x8f   : > { %v1660_v1 = vpop.eup %1659  ;;  %1292 = vst [vmem:[%s2286_s27] sm:$0xff] %v1224_v52  ;;  %v1226_v2 = vadd.f32 %v1158_v53, %v1022_v46  ;;  %v1160_v3 = vmul.f32 %v1092_v48, %v956_v55  ;;  %v958_v7 = vmin.f32 %v890_v57, 1.0  ;;  %v756_v9 = vmul.f32 3.0, %v1650_v30  ;;  %v1029_v49 = vld [vmem:[%s2277_s6 + $0x48] sm:$0xff]  ;;  %v1030_v55 = vld [vmem:[%s2277_s6 + $0x50] sm:$0xff]  ;;  %v1100_v57 = vld [vmem:[%s2225_s28 + $0x60] sm:$0xff] }
  0x90   : > { %v1662_v11 = vpop.eup %1661  ;;  %1293 = vst [vmem:[%s2286_s27 + $0x8] sm:$0xff] %v1225_v59  ;;  %v1227_v12 = vadd.f32 %v1159_v60, %v1023_v54  ;;  %v1161_v13 = vmul.f32 %v1093_v56, %v957_v62  ;;  %v959_v16 = vmin.f32 %v891_v0, 1.0  ;;  %v757_v17 = vmul.f32 3.0, %v1652_v37  ;;  %v293_v53 = vld [vmem:[%s2217_s19 + $0xa8] sm:$0xff]  ;;  %v294_v59 = vld [vmem:[%s2217_s19 + $0xb0] sm:$0xff]  ;;  %v1031_v62 = vld [vmem:[%s2277_s6 + $0x58] sm:$0xff] }
  0x91   : > { %v1664_v18 = vpop.eup %1663  ;;  %1294 = vst [vmem:[%s2286_s27 + $0x10] sm:$0xff] %v1226_v2  ;;  %v1228_v19 = vadd.f32 %v1160_v3, %v1024_v61  ;;  %v1162_v20 = vmul.f32 %v1094_v63, %v958_v7  ;;  %v824_v22 = vadd.f32 -1.5, %v756_v9  ;;  %v758_v23 = vmul.f32 3.0, %v1654_v44  ;;  %v295_v0 = vld [vmem:[%s2217_s19 + $0xb8] sm:$0xff]  ;;  %v1032_v3 = vld [vmem:[%s2277_s6 + $0x60] sm:$0xff] }
  0x92   : > { %v1666_v24 = vpop.eup %1665  ;;  %1295 = vst [vmem:[%s2286_s27 + $0x18] sm:$0xff] %v1227_v12  ;;  %v1229_v25 = vadd.f32 %v1161_v13, %v1025_v4  ;;  %v1163_v26 = vmul.f32 %v1095_v8, %v959_v16  ;;  %v825_v27 = vadd.f32 -1.5, %v757_v17  ;;  %v759_v28 = vmul.f32 3.0, %v1656_v51  ;;  %v1099_v51 = vld [vmem:[%s2225_s28 + $0x58] sm:$0xff]  ;;  %v296_v7 = vld [vmem:[%s2217_s19 + $0xc0] sm:$0xff] }
  0x93   : > { %1296 = vst [vmem:[%s2286_s27 + $0x20] sm:$0xff] %v1228_v19  ;;  %v1230_v29 = vadd.f32 %v1162_v20, %v1026_v15  ;;  %v892_v30 = vmax.f32 %v824_v22, 0.0  ;;  %v826_v31 = vadd.f32 -1.5, %v758_v23  ;;  %v760_v32 = vmul.f32 3.0, %v1658_v58  ;;  %v298_v15 = vld [vmem:[%s2217_s19 + $0xd0] sm:$0xff] }
  0x94   : > { %1297 = vst [vmem:[%s2286_s27 + $0x28] sm:$0xff] %v1229_v25  ;;  %v1231_v33 = vadd.f32 %v1163_v26, %v1027_v21  ;;  %v893_v35 = vmax.f32 %v825_v27, 0.0  ;;  %v827_v36 = vadd.f32 -1.5, %v759_v28  ;;  %v557_v37 = vadd.f32 1.0, %v1660_v1 }
  0x95   : > { %1298 = vst [vmem:[%s2286_s27 + $0x30] sm:$0xff] %v1230_v29  ;;  %v960_v38 = vmin.f32 %v892_v30, 1.0  ;;  %v894_v40 = vmax.f32 %v826_v31, 0.0  ;;  %v828_v41 = vadd.f32 -1.5, %v760_v32  ;;  %v558_v42 = vadd.f32 1.0, %v1662_v11 }
  0x96   : > { %1299 = vst [vmem:[%s2286_s27 + $0x38] sm:$0xff] %v1231_v33  ;;  %v961_v44 = vmin.f32 %v893_v35, 1.0  ;;  %v895_v46 = vmax.f32 %v827_v36, 0.0  ;;  %1667 = vrcp.f32 %v557_v37  ;;  %v559_v47 = vadd.f32 1.0, %v1664_v18  ;;  %v299_v18 = vld [vmem:[%s2217_s19 + $0xd8] sm:$0xff]  ;;  %v1101_v37 = vld [vmem:[%s2225_s28 + $0x68] sm:$0xff] }
  0x97   : > { %v1164_v48 = vmul.f32 %v1096_v34, %v960_v38  ;;  %v962_v50 = vmin.f32 %v894_v40, 1.0  ;;  %v896_v52 = vmax.f32 %v828_v41, 0.0  ;;  %1669 = vrcp.f32 %v558_v42  ;;  %v1102_v42 = vld [vmem:[%s2225_s28 + $0x70] sm:$0xff] }
  0x98   : > { %v1165_v54 = vmul.f32 %v1097_v39, %v961_v44  ;;  %v963_v56 = vmin.f32 %v895_v46, 1.0  ;;  %1671 = vrcp.f32 %v559_v47  ;;  %v560_v58 = vadd.f32 1.0, %v1666_v24  ;;  %v1033_v47 = vld [vmem:[%s2277_s6 + $0x68] sm:$0xff] }
  0x99   : > { %v1232_v60 = vadd.f32 %v1164_v48, %v1028_v43  ;;  %v1166_v61 = vmul.f32 %v1098_v45, %v962_v50  ;;  %v964_v63 = vmin.f32 %v896_v52, 1.0  ;;  %1673 = vpow2.f32 %v2259_v5  ;;  %v297_v5 = vld [vmem:[%s2217_s19 + $0xc8] sm:$0xff] }
  0x9a   : > { %v1233_v1 = vadd.f32 %v1165_v54, %v1029_v49  ;;  %v1167_v2 = vmul.f32 %v1099_v51, %v963_v56  ;;  %1675 = vrcp.f32 %v560_v58  ;;  %v1500_v4 = vmul.f32 -1.442695, %v293_v53  ;;  %v1103_v49 = vld [vmem:[%s2225_s28 + $0x78] sm:$0xff]  ;;  %v1034_v53 = vld [vmem:[%s2277_s6 + $0x70] sm:$0xff] }
  0x9b   : > { %1300 = vst [vmem:[%s2286_s27 + $0x40] sm:$0xff] %v1232_v60  ;;  %v1234_v8 = vadd.f32 %v1166_v61, %v1030_v55  ;;  %v1168_v9 = vmul.f32 %v1100_v57, %v964_v63  ;;  %1677 = vpow2.f32 %v2261_v6  ;;  %v1501_v11 = vmul.f32 -1.442695, %v294_v59  ;;  %v300_v6 = vld [vmem:[%s2217_s19 + $0xe0] sm:$0xff]  ;;  %v1035_v58 = vld [vmem:[%s2277_s6 + $0x78] sm:$0xff] }
  0x9c   : > { %1301 = vst [vmem:[%s2286_s27 + $0x48] sm:$0xff] %v1233_v1  ;;  %v1235_v12 = vadd.f32 %v1167_v2, %v1031_v62  ;;  %1679 = vpow2.f32 %v2269_v10  ;;  %v1502_v13 = vmul.f32 -1.442695, %v295_v0  ;;  %v1503_v17 = vmul.f32 -1.442695, %v296_v7  ;;  %v1104_v59 = vld [vmem:[%s2225_s28 + $0x80] sm:$0xff] }
  0x9d   : > { %1302 = vst [vmem:[%s2286_s27 + $0x50] sm:$0xff] %v1234_v8  ;;  %v1236_v16 = vadd.f32 %v1168_v9, %v1032_v3  ;;  %1681 = vpow2.f32 %v2271_v14  ;;  %v1504_v19 = vmul.f32 -1.442695, %v297_v5  ;;  %v1505_v20 = vmul.f32 -1.442695, %v298_v15  ;;  %v1036_v7 = vld [vmem:[%s2277_s6 + $0x80] sm:$0xff] }
  0x9e   : > { %1303 = vst [vmem:[%s2286_s27 + $0x58] sm:$0xff] %v1235_v12  ;;  %1683 = vpow2.f32 %v1500_v4  ;;  %v1506_v22 = vmul.f32 -1.442695, %v299_v18  ;;  %v1507_v24 = vmul.f32 -1.442695, %v300_v6 }
  0x9f   : > { %1304 = vst [vmem:[%s2286_s27 + $0x60] sm:$0xff] %v1236_v16  ;;  %1685 = vpow2.f32 %v1501_v11 }
  0xa0   : > { %v1668_v21 = vpop.eup %1667  ;;  %1687 = vpow2.f32 %v1502_v13  ;;  %v301_v13 = vld [vmem:[%s2217_s19 + $0xe8] sm:$0xff] }
  0xa1   : > { %v1670_v23 = vpop.eup %1669  ;;  %v761_v10 = vmul.f32 3.0, %v1668_v21  ;;  %1689 = vpow2.f32 %v1503_v17  ;;  %v302_v17 = vld [vmem:[%s2217_s19 + $0xf0] sm:$0xff] }
  0xa2   : > { %v1672_v25 = vpop.eup %1671  ;;  %v762_v26 = vmul.f32 3.0, %v1670_v23  ;;  %1691 = vpow2.f32 %v1504_v19  ;;  %v1508_v23 = vmul.f32 -1.442695, %v301_v13 }
  0xa3   : > { %v1674_v14 = vpop.eup %1673  ;;  %v829_v27 = vadd.f32 -1.5, %v761_v10  ;;  %v763_v28 = vmul.f32 3.0, %v1672_v25  ;;  %1693 = vpow2.f32 %v1505_v20  ;;  %v303_v20 = vld [vmem:[%s2217_s19 + $0xf8] sm:$0xff]  ;;  %v304_v25 = vld [vmem:[%s2217_s19 + $0x100] sm:$0xff] }
  0xa4   : > { %v1676_v29 = vpop.eup %1675  ;;  %v830_v30 = vadd.f32 -1.5, %v762_v26  ;;  %v561_v31 = vadd.f32 1.0, %v1674_v14  ;;  %1695 = vpow2.f32 %v1506_v22  ;;  %v1510_v14 = vmul.f32 -1.442695, %v303_v20 }
  0xa5   : > { %v1678_v32 = vpop.eup %1677  ;;  %v897_v33 = vmax.f32 %v829_v27, 0.0  ;;  %v831_v34 = vadd.f32 -1.5, %v763_v28  ;;  %v764_v35 = vmul.f32 3.0, %v1676_v29  ;;  %1697 = vpow2.f32 %v1507_v24 }
  0xa6   : > { %v1680_v36 = vpop.eup %1679  ;;  %v898_v38 = vmax.f32 %v830_v30, 0.0  ;;  %1699 = vrcp.f32 %v561_v31  ;;  %v562_v39 = vadd.f32 1.0, %v1678_v32  ;;  %v1509_v24 = vmul.f32 -1.442695, %v302_v17  ;;  %v305_v30 = vld [vmem:[%s2217_s19 + $0x108] sm:$0xff]  ;;  %v306_v31 = vld [vmem:[%s2217_s19 + $0x110] sm:$0xff] }
  0xa7   : > { %v1682_v40 = vpop.eup %1681  ;;  %v965_v41 = vmin.f32 %v897_v33, 1.0  ;;  %v899_v43 = vmax.f32 %v831_v34, 0.0  ;;  %v832_v44 = vadd.f32 -1.5, %v764_v35  ;;  %v563_v45 = vadd.f32 1.0, %v1680_v36 }
  0xa8   : > { %v1684_v46 = vpop.eup %1683  ;;  %v966_v48 = vmin.f32 %v898_v38, 1.0  ;;  %1701 = vrcp.f32 %v562_v39  ;;  %v564_v50 = vadd.f32 1.0, %v1682_v40  ;;  %v1511_v34 = vmul.f32 -1.442695, %v304_v25  ;;  %v307_v38 = vld [vmem:[%s2217_s19 + $0x118] sm:$0xff]  ;;  %v1105_v40 = vld [vmem:[%s2225_s28 + $0x88] sm:$0xff] }
  0xa9   : > { %v1686_v51 = vpop.eup %1685  ;;  %v1169_v52 = vmul.f32 %v1101_v37, %v965_v41  ;;  %v967_v54 = vmin.f32 %v899_v43, 1.0  ;;  %v900_v55 = vmax.f32 %v832_v44, 0.0  ;;  %1703 = vrcp.f32 %v563_v45 }
  0xaa   : > { %v1688_v56 = vpop.eup %1687  ;;  %v1170_v57 = vmul.f32 %v1102_v42, %v966_v48  ;;  %1705 = vrcp.f32 %v564_v50  ;;  %v565_v60 = vadd.f32 1.0, %v1684_v46  ;;  %v566_v61 = vadd.f32 1.0, %v1686_v51  ;;  %v1037_v50 = vld [vmem:[%s2277_s6 + $0x88] sm:$0xff]  ;;  %v1106_v51 = vld [vmem:[%s2225_s28 + $0x90] sm:$0xff] }
  0xab   : > { %v1690_v62 = vpop.eup %1689  ;;  %v1237_v63 = vadd.f32 %v1169_v52, %v1033_v47  ;;  %v1171_v0 = vmul.f32 %v1103_v49, %v967_v54  ;;  %v968_v1 = vmin.f32 %v900_v55, 1.0  ;;  %v567_v2 = vadd.f32 1.0, %v1688_v56 }
  0xac   : > { %v1692_v3 = vpop.eup %1691  ;;  %v1238_v4 = vadd.f32 %v1170_v57, %v1034_v53  ;;  %1707 = vrcp.f32 %v565_v60  ;;  %v568_v8 = vadd.f32 1.0, %v1690_v62  ;;  %v2353_v42 = vmul.f32 -1.442695, %v305_v30  ;;  %v1038_v62 = vld [vmem:[%s2277_s6 + $0x90] sm:$0xff] }
  0xad   : > { %v1694_v9 = vpop.eup %1693  ;;  %1305 = vst [vmem:[%s2286_s27 + $0x68] sm:$0xff] %v1237_v63  ;;  %v1239_v11 = vadd.f32 %v1171_v0, %v1035_v58  ;;  %v1172_v5 = vmul.f32 %v1104_v59, %v968_v1  ;;  %1709 = vrcp.f32 %v566_v61  ;;  %v569_v12 = vadd.f32 1.0, %v1692_v3  ;;  %v1107_v58 = vld [vmem:[%s2225_s28 + $0x98] sm:$0xff]  ;;  %v1108_v0 = vld [vmem:[%s2225_s28 + $0xa0] sm:$0xff] }
  0xae   : > { %v1696_v15 = vpop.eup %1695  ;;  %1306 = vst [vmem:[%s2286_s27 + $0x70] sm:$0xff] %v1238_v4  ;;  %1711 = vrcp.f32 %v567_v2  ;;  %v570_v16 = vadd.f32 1.0, %v1694_v9  ;;  %v2355_v43 = vmul.f32 -1.442695, %v306_v31  ;;  %v2359_v54 = vmul.f32 -1.442695, %v307_v38 }
  0xaf   : > { %v1698_v18 = vpop.eup %1697  ;;  %1307 = vst [vmem:[%s2286_s27 + $0x78] sm:$0xff] %v1239_v11  ;;  %v1240_v19 = vadd.f32 %v1172_v5, %v1036_v7  ;;  %1713 = vrcp.f32 %v568_v8  ;;  %v571_v6 = vadd.f32 1.0, %v1696_v15  ;;  %v1039_v9 = vld [vmem:[%s2277_s6 + $0x98] sm:$0xff]  ;;  %v1040_v15 = vld [vmem:[%s2277_s6 + $0xa0] sm:$0xff] }
  0xb0   : > { %v1700_v21 = vpop.eup %1699  ;;  %1715 = vrcp.f32 %v569_v12  ;;  %v572_v22 = vadd.f32 1.0, %v1698_v18 }
  0xb1   : > { %1308 = vst [vmem:[%s2286_s27 + $0x80] sm:$0xff] %v1240_v19  ;;  %v765_v10 = vmul.f32 3.0, %v1700_v21  ;;  %1717 = vrcp.f32 %v570_v16  ;;  %v1109_v16 = vld [vmem:[%s2225_s28 + $0xa8] sm:$0xff] }
  0xb2   : > { %v1702_v26 = vpop.eup %1701  ;;  %1719 = vrcp.f32 %v571_v6 }
  0xb3   : > { %v1704_v27 = vpop.eup %1703  ;;  %v833_v28 = vadd.f32 -1.5, %v765_v10  ;;  %v766_v29 = vmul.f32 3.0, %v1702_v26  ;;  %1721 = vrcp.f32 %v572_v22  ;;  %v1041_v26 = vld [vmem:[%s2277_s6 + $0xa8] sm:$0xff] }
  0xb4   : > { %v1706_v32 = vpop.eup %1705  ;;  %v767_v33 = vmul.f32 3.0, %v1704_v27  ;;  %1723 = vpow2.f32 %v1508_v23  ;;  %v1110_v23 = vld [vmem:[%s2225_s28 + $0xb0] sm:$0xff] }
  0xb5   : > { %v901_v35 = vmax.f32 %v833_v28, 0.0  ;;  %v834_v36 = vadd.f32 -1.5, %v766_v29  ;;  %v768_v37 = vmul.f32 3.0, %v1706_v32  ;;  %1725 = vpow2.f32 %v1509_v24  ;;  %v1042_v32 = vld [vmem:[%s2277_s6 + $0xb0] sm:$0xff] }
  0xb6   : > { %v1708_v39 = vpop.eup %1707  ;;  %v835_v41 = vadd.f32 -1.5, %v767_v33  ;;  %1727 = vpow2.f32 %v1510_v14  ;;  %v1111_v33 = vld [vmem:[%s2225_s28 + $0xb8] sm:$0xff] }
  0xb7   : > { %v1710_v44 = vpop.eup %1709  ;;  %v969_v45 = vmin.f32 %v901_v35, 1.0  ;;  %v902_v46 = vmax.f32 %v834_v36, 0.0  ;;  %v836_v47 = vadd.f32 -1.5, %v768_v37  ;;  %v769_v48 = vmul.f32 3.0, %v1708_v39 }
  0xb8   : > { %v1712_v49 = vpop.eup %1711  ;;  %v903_v52 = vmax.f32 %v835_v41, 0.0  ;;  %v770_v53 = vmul.f32 3.0, %v1710_v44  ;;  %1729 = vpow2.f32 %v1511_v34  ;;  %v1112_v34 = vld [vmem:[%s2225_s28 + $0xc0] sm:$0xff] }
  0xb9   : > { %v1714_v55 = vpop.eup %1713  ;;  %v1173_v56 = vmul.f32 %v1105_v40, %v969_v45  ;;  %v970_v57 = vmin.f32 %v902_v46, 1.0  ;;  %v904_v59 = vmax.f32 %v836_v47, 0.0  ;;  %v837_v60 = vadd.f32 -1.5, %v769_v48  ;;  %v1043_v45 = vld [vmem:[%s2277_s6 + $0xb8] sm:$0xff]  ;;  %v1044_v46 = vld [vmem:[%s2277_s6 + $0xc0] sm:$0xff] }
  0xba   : > { %v1716_v61 = vpop.eup %1715  ;;  %v971_v63 = vmin.f32 %v903_v52, 1.0  ;;  %v838_v1 = vadd.f32 -1.5, %v770_v53  ;;  %v771_v2 = vmul.f32 3.0, %v1712_v49  ;;  %v772_v3 = vmul.f32 3.0, %v1714_v55  ;;  %v1113_v55 = vld [vmem:[%s2225_s28 + $0xc8] sm:$0xff] }
  0xbb   : > { %v1718_v4 = vpop.eup %1717  ;;  %v1241_v7 = vadd.f32 %v1173_v56, %v1037_v50  ;;  %v1174_v8 = vmul.f32 %v1106_v51, %v970_v57  ;;  %v972_v11 = vmin.f32 %v904_v59, 1.0  ;;  %v905_v5 = vmax.f32 %v837_v60, 0.0 }
  0xbc   : > { %v1720_v12 = vpop.eup %1719  ;;  %v1175_v13 = vmul.f32 %v1107_v58, %v971_v63  ;;  %v906_v17 = vmax.f32 %v838_v1, 0.0  ;;  %v839_v18 = vadd.f32 -1.5, %v771_v2  ;;  %v840_v19 = vadd.f32 -1.5, %v772_v3  ;;  %v1045_v63 = vld [vmem:[%s2277_s6 + $0xc8] sm:$0xff] }
  0xbd   : > { %v1722_v6 = vpop.eup %1721  ;;  %1309 = vst [vmem:[%s2286_s27 + $0x88] sm:$0xff] %v1241_v7  ;;  %v1242_v20 = vadd.f32 %v1174_v8, %v1038_v62  ;;  %v1176_v21 = vmul.f32 %v1108_v0, %v972_v11  ;;  %v973_v22 = vmin.f32 %v905_v5, 1.0  ;;  %v773_v10 = vmul.f32 3.0, %v1716_v61  ;;  %v1114_v0 = vld [vmem:[%s2225_s28 + $0xd0] sm:$0xff]  ;;  %v1115_v7 = vld [vmem:[%s2225_s28 + $0xd8] sm:$0xff] }
  0xbe   : > { %v1724_v24 = vpop.eup %1723  ;;  %v1243_v25 = vadd.f32 %v1175_v13, %v1039_v9  ;;  %v974_v14 = vmin.f32 %v906_v17, 1.0  ;;  %v907_v27 = vmax.f32 %v839_v18, 0.0  ;;  %v908_v28 = vmax.f32 %v840_v19, 0.0  ;;  %v308_v9 = vld [vmem:[%s2217_s19 + $0x120] sm:$0xff]  ;;  %v1046_v11 = vld [vmem:[%s2277_s6 + $0xd0] sm:$0xff]  ;;  %v1047_v19 = vld [vmem:[%s2277_s6 + $0xd8] sm:$0xff] }
  0xbf   : > { %v1726_v29 = vpop.eup %1725  ;;  %1310 = vst [vmem:[%s2286_s27 + $0x90] sm:$0xff] %v1242_v20  ;;  %v1244_v30 = vadd.f32 %v1176_v21, %v1040_v15  ;;  %v1177_v31 = vmul.f32 %v1109_v16, %v973_v22  ;;  %v841_v35 = vadd.f32 -1.5, %v773_v10  ;;  %v774_v36 = vmul.f32 3.0, %v1718_v4  ;;  %v309_v16 = vld [vmem:[%s2217_s19 + $0x128] sm:$0xff]  ;;  %v310_v20 = vld [vmem:[%s2217_s19 + $0x130] sm:$0xff]  ;;  %v1048_v22 = vld [vmem:[%s2277_s6 + $0xe0] sm:$0xff] }
  0xc0   : > { %v1728_v37 = vpop.eup %1727  ;;  %1311 = vst [vmem:[%s2286_s27 + $0x98] sm:$0xff] %v1243_v25  ;;  %v1178_v38 = vmul.f32 %v1110_v23, %v974_v14  ;;  %v975_v39 = vmin.f32 %v907_v27, 1.0  ;;  %v976_v40 = vmin.f32 %v908_v28, 1.0  ;;  %v775_v41 = vmul.f32 3.0, %v1720_v12  ;;  %v1116_v12 = vld [vmem:[%s2225_s28 + $0xe0] sm:$0xff]  ;;  %v311_v10 = vld [vmem:[%s2217_s19 + $0x138] sm:$0xff] }
  0xc1   : > { %1312 = vst [vmem:[%s2286_s27 + $0xa0] sm:$0xff] %v1244_v30  ;;  %v1245_v44 = vadd.f32 %v1177_v31, %v1041_v26  ;;  %v909_v47 = vmax.f32 %v841_v35, 0.0  ;;  %v842_v48 = vadd.f32 -1.5, %v774_v36  ;;  %v776_v49 = vmul.f32 3.0, %v1722_v6  ;;  %v312_v14 = vld [vmem:[%s2217_s19 + $0x140] sm:$0xff]  ;;  %v313_v28 = vld [vmem:[%s2217_s19 + $0x148] sm:$0xff] }
  0xc2   : > { %v1730_v50 = vpop.eup %1729  ;;  %v1246_v51 = vadd.f32 %v1178_v38, %v1042_v32  ;;  %v1179_v52 = vmul.f32 %v1111_v33, %v975_v39  ;;  %v1180_v53 = vmul.f32 %v1112_v34, %v976_v40  ;;  %v843_v56 = vadd.f32 -1.5, %v775_v41  ;;  %v314_v31 = vld [vmem:[%s2217_s19 + $0x150] sm:$0xff]  ;;  %v315_v33 = vld [vmem:[%s2217_s19 + $0x158] sm:$0xff]  ;;  %v317_v38 = vld [vmem:[%s2217_s19 + $0x168] sm:$0xff] }
  0xc3   : > { %1313 = vst [vmem:[%s2286_s27 + $0xa8] sm:$0xff] %v1245_v44  ;;  %v977_v57 = vmin.f32 %v909_v47, 1.0  ;;  %v910_v58 = vmax.f32 %v842_v48, 0.0  ;;  %v844_v59 = vadd.f32 -1.5, %v776_v49  ;;  %v573_v60 = vadd.f32 1.0, %v1724_v24 }
  0xc4   : > { %1314 = vst [vmem:[%s2286_s27 + $0xb0] sm:$0xff] %v1246_v51  ;;  %v1247_v61 = vadd.f32 %v1179_v52, %v1043_v45  ;;  %v1248_v62 = vadd.f32 %v1180_v53, %v1044_v46  ;;  %v911_v1 = vmax.f32 %v843_v56, 0.0  ;;  %v574_v2 = vadd.f32 1.0, %v1726_v29 }
  0xc5   : > { %v1181_v3 = vmul.f32 %v1113_v55, %v977_v57  ;;  %v978_v4 = vmin.f32 %v910_v58, 1.0  ;;  %v912_v8 = vmax.f32 %v844_v59, 0.0  ;;  %1731 = vrcp.f32 %v573_v60  ;;  %v1117_v57 = vld [vmem:[%s2225_s28 + $0xe8] sm:$0xff] }
  0xc6   : > { %1315 = vst [vmem:[%s2286_s27 + $0xb8] sm:$0xff] %v1247_v61  ;;  %1316 = vst [vmem:[%s2286_s27 + $0xc0] sm:$0xff] %v1248_v62  ;;  %v979_v5 = vmin.f32 %v911_v1, 1.0  ;;  %1733 = vrcp.f32 %v574_v2  ;;  %v575_v13 = vadd.f32 1.0, %v1728_v37  ;;  %v576_v15 = vadd.f32 1.0, %v1730_v50 }
  0xc7   : > { %v1249_v17 = vadd.f32 %v1181_v3, %v1045_v63  ;;  %v1182_v18 = vmul.f32 %v1114_v0, %v978_v4  ;;  %v980_v6 = vmin.f32 %v912_v8, 1.0  ;;  %1735 = vpow2.f32 %v2353_v42  ;;  %v1118_v63 = vld [vmem:[%s2225_s28 + $0xf0] sm:$0xff]  ;;  %v1049_v3 = vld [vmem:[%s2277_s6 + $0xe8] sm:$0xff] }
  0xc8   : > { %v1183_v21 = vmul.f32 %v1115_v7, %v979_v5  ;;  %1737 = vrcp.f32 %v575_v13  ;;  %v1515_v23 = vmul.f32 -1.442695, %v308_v9  ;;  %v1516_v26 = vmul.f32 -1.442695, %v309_v16  ;;  %v1050_v5 = vld [vmem:[%s2277_s6 + $0xf0] sm:$0xff] }
  0xc9   : > { %1317 = vst [vmem:[%s2286_s27 + $0xc8] sm:$0xff] %v1249_v17  ;;  %v1250_v24 = vadd.f32 %v1182_v18, %v1046_v11  ;;  %v1184_v25 = vmul.f32 %v1116_v12, %v980_v6  ;;  %1739 = vrcp.f32 %v576_v15  ;;  %v1517_v42 = vmul.f32 -1.442695, %v310_v20  ;;  %v1119_v12 = vld [vmem:[%s2225_s28 + $0xf8] sm:$0xff] }
  0xca   : > { %v1251_v27 = vadd.f32 %v1183_v21, %v1047_v19  ;;  %1741 = vpow2.f32 %v2355_v43  ;;  %v1518_v30 = vmul.f32 -1.442695, %v311_v10  ;;  %v1519_v32 = vmul.f32 -1.442695, %v312_v14  ;;  %v316_v43 = vld [vmem:[%s2217_s19 + $0x160] sm:$0xff] }
  0xcb   : > { %1318 = vst [vmem:[%s2286_s27 + $0xd0] sm:$0xff] %v1250_v24  ;;  %v1252_v29 = vadd.f32 %v1184_v25, %v1048_v22  ;;  %1743 = vpow2.f32 %v2359_v54  ;;  %v1520_v34 = vmul.f32 -1.442695, %v313_v28  ;;  %v1521_v35 = vmul.f32 -1.442695, %v314_v31  ;;  %v1120_v19 = vld [vmem:[%s2225_s28 + $0x100] sm:$0xff] }
  0xcc   : > { %1319 = vst [vmem:[%s2286_s27 + $0xd8] sm:$0xff] %v1251_v27  ;;  %1745 = vpow2.f32 %v1515_v23  ;;  %v1522_v37 = vmul.f32 -1.442695, %v315_v33  ;;  %v1523_v44 = vmul.f32 -1.442695, %v316_v43  ;;  %v1051_v22 = vld [vmem:[%s2277_s6 + $0xf8] sm:$0xff] }
  0xcd   : > { %1320 = vst [vmem:[%s2286_s27 + $0xe0] sm:$0xff] %v1252_v29  ;;  %1747 = vpow2.f32 %v1516_v26  ;;  %v1524_v48 = vmul.f32 -1.442695, %v317_v38  ;;  %v318_v24 = vld [vmem:[%s2217_s19 + $0x170] sm:$0xff]  ;;  %v1052_v27 = vld [vmem:[%s2277_s6 + $0x100] sm:$0xff] }
  0xce   : > { %1749 = vpow2.f32 %v1517_v42  ;;  %v320_v38 = vld [vmem:[%s2217_s19 + $0x180] sm:$0xff] }
  0xcf   : > { %v1732_v36 = vpop.eup %1731  ;;  %1751 = vpow2.f32 %v1518_v30 }
  0xd0   : > { %v1734_v39 = vpop.eup %1733  ;;  %v777_v40 = vmul.f32 3.0, %v1732_v36  ;;  %1753 = vpow2.f32 %v1519_v32 }
  0xd1   : > { %v1736_v54 = vpop.eup %1735  ;;  %v778_v41 = vmul.f32 3.0, %v1734_v39  ;;  %1755 = vpow2.f32 %v1520_v34  ;;  %v1525_v34 = vmul.f32 -1.442695, %v318_v24 }
  0xd2   : > { %v1738_v45 = vpop.eup %1737  ;;  %v845_v46 = vadd.f32 -1.5, %v777_v40  ;;  %v577_v47 = vadd.f32 1.0, %v1736_v54  ;;  %1757 = vpow2.f32 %v1521_v35  ;;  %v319_v35 = vld [vmem:[%s2217_s19 + $0x178] sm:$0xff]  ;;  %v321_v54 = vld [vmem:[%s2217_s19 + $0x188] sm:$0xff] }
  0xd3   : > { %v1740_v49 = vpop.eup %1739  ;;  %v846_v50 = vadd.f32 -1.5, %v778_v41  ;;  %v779_v51 = vmul.f32 3.0, %v1738_v45  ;;  %1759 = vpow2.f32 %v1522_v37  ;;  %v322_v41 = vld [vmem:[%s2217_s19 + $0x190] sm:$0xff] }
  0xd4   : > { %v1742_v52 = vpop.eup %1741  ;;  %v913_v53 = vmax.f32 %v845_v46, 0.0  ;;  %v780_v55 = vmul.f32 3.0, %v1740_v49  ;;  %1761 = vrcp.f32 %v577_v47  ;;  %v1526_v46 = vmul.f32 -1.442695, %v319_v35  ;;  %v323_v47 = vld [vmem:[%s2217_s19 + $0x198] sm:$0xff] }
  0xd5   : > { %v1744_v56 = vpop.eup %1743  ;;  %v914_v58 = vmax.f32 %v846_v50, 0.0  ;;  %v847_v59 = vadd.f32 -1.5, %v779_v51  ;;  %v578_v60 = vadd.f32 1.0, %v1742_v52  ;;  %1763 = vpow2.f32 %v1523_v44  ;;  %v324_v52 = vld [vmem:[%s2217_s19 + $0x1a0] sm:$0xff] }
  0xd6   : > { %v1746_v61 = vpop.eup %1745  ;;  %v981_v62 = vmin.f32 %v913_v53, 1.0  ;;  %v848_v0 = vadd.f32 -1.5, %v780_v55  ;;  %v579_v1 = vadd.f32 1.0, %v1744_v56  ;;  %1765 = vpow2.f32 %v1524_v48 }
  0xd7   : > { %v1748_v2 = vpop.eup %1747  ;;  %v982_v4 = vmin.f32 %v914_v58, 1.0  ;;  %v915_v7 = vmax.f32 %v847_v59, 0.0  ;;  %1767 = vrcp.f32 %v578_v60  ;;  %v580_v8 = vadd.f32 1.0, %v1746_v61 }
  0xd8   : > { %v1750_v9 = vpop.eup %1749  ;;  %v1185_v11 = vmul.f32 %v1117_v57, %v981_v62  ;;  %v916_v13 = vmax.f32 %v848_v0, 0.0  ;;  %1769 = vrcp.f32 %v579_v1  ;;  %v581_v15 = vadd.f32 1.0, %v1748_v2 }
  0xd9   : > { %v1752_v16 = vpop.eup %1751  ;;  %v1186_v17 = vmul.f32 %v1118_v63, %v982_v4  ;;  %v983_v18 = vmin.f32 %v915_v7, 1.0  ;;  %1771 = vrcp.f32 %v580_v8  ;;  %v582_v6 = vadd.f32 1.0, %v1750_v9  ;;  %v1121_v63 = vld [vmem:[%s2225_s28 + $0x108] sm:$0xff] }
  0xda   : > { %v1754_v20 = vpop.eup %1753  ;;  %v1253_v21 = vadd.f32 %v1185_v11, %v1049_v3  ;;  %v984_v23 = vmin.f32 %v916_v13, 1.0  ;;  %1773 = vrcp.f32 %v581_v15  ;;  %v583_v10 = vadd.f32 1.0, %v1752_v16  ;;  %v1053_v11 = vld [vmem:[%s2277_s6 + $0x108] sm:$0xff] }
  0xdb   : > { %v1756_v25 = vpop.eup %1755  ;;  %v1254_v26 = vadd.f32 %v1186_v17, %v1050_v5  ;;  %v1187_v14 = vmul.f32 %v1119_v12, %v983_v18  ;;  %1775 = vrcp.f32 %v582_v6  ;;  %v584_v42 = vadd.f32 1.0, %v1754_v20  ;;  %v1122_v17 = vld [vmem:[%s2225_s28 + $0x110] sm:$0xff] }
  0xdc   : > { %v1758_v28 = vpop.eup %1757  ;;  %1321 = vst [vmem:[%s2286_s27 + $0xe8] sm:$0xff] %v1253_v21  ;;  %v1188_v29 = vmul.f32 %v1120_v19, %v984_v23  ;;  %1777 = vrcp.f32 %v583_v10  ;;  %v585_v30 = vadd.f32 1.0, %v1756_v25  ;;  %v1527_v51 = vmul.f32 -1.442695, %v320_v38  ;;  %v1056_v38 = vld [vmem:[%s2277_s6 + $0x120] sm:$0xff] }
  0xdd   : > { %v1760_v31 = vpop.eup %1759  ;;  %1322 = vst [vmem:[%s2286_s27 + $0xf0] sm:$0xff] %v1254_v26  ;;  %v1255_v32 = vadd.f32 %v1187_v14, %v1051_v22  ;;  %1779 = vrcp.f32 %v584_v42  ;;  %v586_v33 = vadd.f32 1.0, %v1758_v28  ;;  %v1528_v56 = vmul.f32 -1.442695, %v321_v54  ;;  %v1123_v22 = vld [vmem:[%s2225_s28 + $0x118] sm:$0xff]  ;;  %v1054_v14 = vld [vmem:[%s2277_s6 + $0x110] sm:$0xff] }
  0xde   : > { %v1762_v43 = vpop.eup %1761  ;;  %v1256_v36 = vadd.f32 %v1188_v29, %v1052_v27  ;;  %1781 = vrcp.f32 %v585_v30  ;;  %v587_v37 = vadd.f32 1.0, %v1760_v31  ;;  %v2426_v57 = vmul.f32 -1.442695, %v322_v41  ;;  %v1124_v42 = vld [vmem:[%s2225_s28 + $0x120] sm:$0xff] }
  0xdf   : > { %v1764_v39 = vpop.eup %1763  ;;  %1323 = vst [vmem:[%s2286_s27 + $0xf8] sm:$0xff] %v1255_v32  ;;  %v781_v40 = vmul.f32 3.0, %v1762_v43  ;;  %1783 = vrcp.f32 %v586_v33  ;;  %v2428_v61 = vmul.f32 -1.442695, %v323_v47  ;;  %v2431_v2 = vmul.f32 -1.442695, %v324_v52 }
  0xe0   : > { %v1766_v44 = vpop.eup %1765  ;;  %1324 = vst [vmem:[%s2286_s27 + $0x100] sm:$0xff] %v1256_v36  ;;  %1785 = vrcp.f32 %v587_v37  ;;  %v588_v45 = vadd.f32 1.0, %v1764_v39  ;;  %v1055_v32 = vld [vmem:[%s2277_s6 + $0x118] sm:$0xff]  ;;  %v1057_v47 = vld [vmem:[%s2277_s6 + $0x128] sm:$0xff] }
  0xe1   : > { %v1768_v48 = vpop.eup %1767  ;;  %v849_v49 = vadd.f32 -1.5, %v781_v40  ;;  %v589_v50 = vadd.f32 1.0, %v1766_v44  ;;  %1787 = vpow2.f32 %v1525_v34  ;;  %v1125_v34 = vld [vmem:[%s2225_s28 + $0x128] sm:$0xff]  ;;  %v1126_v40 = vld [vmem:[%s2225_s28 + $0x130] sm:$0xff] }
  0xe2   : > { %v1770_v53 = vpop.eup %1769  ;;  %v782_v55 = vmul.f32 3.0, %v1768_v48  ;;  %1789 = vrcp.f32 %v588_v45 }
  0xe3   : > { %v1772_v58 = vpop.eup %1771  ;;  %v917_v59 = vmax.f32 %v849_v49, 0.0  ;;  %v783_v60 = vmul.f32 3.0, %v1770_v53  ;;  %1791 = vrcp.f32 %v589_v50  ;;  %v1127_v49 = vld [vmem:[%s2225_s28 + $0x138] sm:$0xff] }
  0xe4   : > { %v1774_v62 = vpop.eup %1773  ;;  %v850_v0 = vadd.f32 -1.5, %v782_v55  ;;  %v784_v1 = vmul.f32 3.0, %v1772_v58  ;;  %1793 = vpow2.f32 %v1526_v46  ;;  %v1058_v55 = vld [vmem:[%s2277_s6 + $0x130] sm:$0xff]  ;;  %v1128_v58 = vld [vmem:[%s2225_s28 + $0x140] sm:$0xff] }
  0xe5   : > { %v1776_v3 = vpop.eup %1775  ;;  %v985_v4 = vmin.f32 %v917_v59, 1.0  ;;  %v851_v7 = vadd.f32 -1.5, %v783_v60  ;;  %v785_v8 = vmul.f32 3.0, %v1774_v62  ;;  %1795 = vpow2.f32 %v1527_v51 }
  0xe6   : > { %v1778_v9 = vpop.eup %1777  ;;  %v918_v5 = vmax.f32 %v850_v0, 0.0  ;;  %v852_v12 = vadd.f32 -1.5, %v784_v1  ;;  %v786_v13 = vmul.f32 3.0, %v1776_v3  ;;  %1797 = vpow2.f32 %v1528_v56  ;;  %v1059_v0 = vld [vmem:[%s2277_s6 + $0x138] sm:$0xff] }
  0xe7   : > { %v1780_v15 = vpop.eup %1779  ;;  %v1189_v16 = vmul.f32 %v1121_v63, %v985_v4  ;;  %v919_v18 = vmax.f32 %v851_v7, 0.0  ;;  %v853_v19 = vadd.f32 -1.5, %v785_v8  ;;  %v787_v6 = vmul.f32 3.0, %v1778_v9  ;;  %v1060_v9 = vld [vmem:[%s2277_s6 + $0x140] sm:$0xff] }
  0xe8   : > { %v1782_v20 = vpop.eup %1781  ;;  %v986_v21 = vmin.f32 %v918_v5, 1.0  ;;  %v920_v23 = vmax.f32 %v852_v12, 0.0  ;;  %v854_v10 = vadd.f32 -1.5, %v786_v13  ;;  %v788_v24 = vmul.f32 3.0, %v1780_v15 }
  0xe9   : > { %v1784_v25 = vpop.eup %1783  ;;  %v1257_v26 = vadd.f32 %v1189_v16, %v1053_v11  ;;  %v987_v27 = vmin.f32 %v919_v18, 1.0  ;;  %v921_v28 = vmax.f32 %v853_v19, 0.0  ;;  %v855_v29 = vadd.f32 -1.5, %v787_v6  ;;  %v1129_v16 = vld [vmem:[%s2225_s28 + $0x148] sm:$0xff] }
  0xea   : > { %v1786_v30 = vpop.eup %1785  ;;  %v1190_v31 = vmul.f32 %v1122_v17, %v986_v21  ;;  %v988_v33 = vmin.f32 %v920_v23, 1.0  ;;  %v922_v35 = vmax.f32 %v854_v10, 0.0  ;;  %v856_v43 = vadd.f32 -1.5, %v788_v24  ;;  %v1061_v23 = vld [vmem:[%s2277_s6 + $0x148] sm:$0xff] }
  0xeb   : > { %v1788_v36 = vpop.eup %1787  ;;  %1325 = vst [vmem:[%s2286_s27 + $0x108] sm:$0xff] %v1257_v26  ;;  %v1191_v37 = vmul.f32 %v1123_v22, %v987_v27  ;;  %v989_v39 = vmin.f32 %v921_v28, 1.0  ;;  %v923_v54 = vmax.f32 %v855_v29, 0.0  ;;  %v789_v41 = vmul.f32 3.0, %v1782_v20 }
  0xec   : > { %v1790_v44 = vpop.eup %1789  ;;  %v1258_v45 = vadd.f32 %v1190_v31, %v1054_v14  ;;  %v1192_v46 = vmul.f32 %v1124_v42, %v988_v33  ;;  %v990_v48 = vmin.f32 %v922_v35, 1.0  ;;  %v924_v50 = vmax.f32 %v856_v43, 0.0  ;;  %v1130_v14 = vld [vmem:[%s2225_s28 + $0x150] sm:$0xff]  ;;  %v325_v33 = vld [vmem:[%s2217_s19 + $0x1a8] sm:$0xff] }
  0xed   : > { %v1792_v51 = vpop.eup %1791  ;;  %v1259_v52 = vadd.f32 %v1191_v37, %v1055_v32  ;;  %v1193_v53 = vmul.f32 %v1125_v34, %v989_v39  ;;  %v991_v56 = vmin.f32 %v923_v54, 1.0  ;;  %v857_v59 = vadd.f32 -1.5, %v789_v41  ;;  %v1062_v35 = vld [vmem:[%s2277_s6 + $0x150] sm:$0xff]  ;;  %v1133_v41 = vld [vmem:[%s2225_s28 + $0x168] sm:$0xff] }
  0xee   : > { %v1794_v60 = vpop.eup %1793  ;;  %1326 = vst [vmem:[%s2286_s27 + $0x110] sm:$0xff] %v1258_v45  ;;  %v1260_v62 = vadd.f32 %v1192_v46, %v1056_v38  ;;  %v1194_v63 = vmul.f32 %v1126_v40, %v990_v48  ;;  %v992_v1 = vmin.f32 %v924_v50, 1.0  ;;  %v790_v3 = vmul.f32 3.0, %v1784_v25  ;;  %v326_v38 = vld [vmem:[%s2217_s19 + $0x1b0] sm:$0xff]  ;;  %v1063_v40 = vld [vmem:[%s2277_s6 + $0x158] sm:$0xff]  ;;  %v328_v50 = vld [vmem:[%s2217_s19 + $0x1c0] sm:$0xff] }
  0xef   : > { %v1796_v4 = vpop.eup %1795  ;;  %1327 = vst [vmem:[%s2286_s27 + $0x118] sm:$0xff] %v1259_v52  ;;  %v1261_v7 = vadd.f32 %v1193_v53, %v1057_v47  ;;  %v1195_v8 = vmul.f32 %v1127_v49, %v991_v56  ;;  %v925_v11 = vmax.f32 %v857_v59, 0.0  ;;  %v791_v5 = vmul.f32 3.0, %v1786_v30  ;;  %v1131_v30 = vld [vmem:[%s2225_s28 + $0x158] sm:$0xff]  ;;  %v1064_v47 = vld [vmem:[%s2277_s6 + $0x160] sm:$0xff]  ;;  %v1065_v53 = vld [vmem:[%s2277_s6 + $0x168] sm:$0xff] }
  0xf0   : > { %v1798_v12 = vpop.eup %1797  ;;  %1328 = vst [vmem:[%s2286_s27 + $0x120] sm:$0xff] %v1260_v62  ;;  %v1262_v13 = vadd.f32 %v1194_v63, %v1058_v55  ;;  %v1196_v15 = vmul.f32 %v1128_v58, %v992_v1  ;;  %v858_v17 = vadd.f32 -1.5, %v790_v3  ;;  %v792_v18 = vmul.f32 3.0, %v1790_v44  ;;  %v327_v45 = vld [vmem:[%s2217_s19 + $0x1b8] sm:$0xff]  ;;  %v329_v56 = vld [vmem:[%s2217_s19 + $0x1c8] sm:$0xff] }
  0xf1   : > { %1329 = vst [vmem:[%s2286_s27 + $0x128] sm:$0xff] %v1261_v7  ;;  %v1263_v19 = vadd.f32 %v1195_v8, %v1059_v0  ;;  %v993_v6 = vmin.f32 %v925_v11, 1.0  ;;  %v859_v20 = vadd.f32 -1.5, %v791_v5  ;;  %v793_v21 = vmul.f32 3.0, %v1792_v51  ;;  %v331_v0 = vld [vmem:[%s2217_s19 + $0x1d8] sm:$0xff]  ;;  %v333_v8 = vld [vmem:[%s2217_s19 + $0x1e8] sm:$0xff] }
  0xf2   : > { %1330 = vst [vmem:[%s2286_s27 + $0x130] sm:$0xff] %v1262_v13  ;;  %v1264_v22 = vadd.f32 %v1196_v15, %v1060_v9  ;;  %v926_v10 = vmax.f32 %v858_v17, 0.0  ;;  %v860_v24 = vadd.f32 -1.5, %v792_v18  ;;  %v590_v25 = vadd.f32 1.0, %v1788_v36  ;;  %v1132_v36 = vld [vmem:[%s2225_s28 + $0x160] sm:$0xff] }
  0xf3   : > { %1331 = vst [vmem:[%s2286_s27 + $0x138] sm:$0xff] %v1263_v19  ;;  %v1197_v26 = vmul.f32 %v1129_v16, %v993_v6  ;;  %v927_v27 = vmax.f32 %v859_v20, 0.0  ;;  %v861_v42 = vadd.f32 -1.5, %v793_v21  ;;  %v591_v28 = vadd.f32 1.0, %v1794_v60 }
  0xf4   : > { %1332 = vst [vmem:[%s2286_s27 + $0x140] sm:$0xff] %v1264_v22  ;;  %v994_v29 = vmin.f32 %v926_v10, 1.0  ;;  %v928_v31 = vmax.f32 %v860_v24, 0.0  ;;  %1799 = vrcp.f32 %v590_v25  ;;  %v592_v32 = vadd.f32 1.0, %v1796_v4  ;;  %v332_v4 = vld [vmem:[%s2217_s19 + $0x1e0] sm:$0xff]  ;;  %v1134_v25 = vld [vmem:[%s2225_s28 + $0x170] sm:$0xff] }
  0xf5   : > { %v1265_v34 = vadd.f32 %v1197_v26, %v1061_v23  ;;  %v995_v43 = vmin.f32 %v927_v27, 1.0  ;;  %v929_v37 = vmax.f32 %v861_v42, 0.0  ;;  %1801 = vrcp.f32 %v591_v28  ;;  %v1135_v28 = vld [vmem:[%s2225_s28 + $0x178] sm:$0xff] }
  0xf6   : > { %v1198_v39 = vmul.f32 %v1130_v14, %v994_v29  ;;  %v996_v54 = vmin.f32 %v928_v31, 1.0  ;;  %1803 = vrcp.f32 %v592_v32  ;;  %v593_v44 = vadd.f32 1.0, %v1798_v12 }
  0xf7   : > { %1333 = vst [vmem:[%s2286_s27 + $0x148] sm:$0xff] %v1265_v34  ;;  %v1199_v46 = vmul.f32 %v1131_v30, %v995_v43  ;;  %v997_v48 = vmin.f32 %v929_v37, 1.0  ;;  %1805 = vpow2.f32 %v2426_v57  ;;  %v1532_v49 = vmul.f32 -1.442695, %v325_v33  ;;  %v330_v57 = vld [vmem:[%s2217_s19 + $0x1d0] sm:$0xff] }
  0xf8   : > { %v1266_v51 = vadd.f32 %v1198_v39, %v1062_v35  ;;  %v1200_v52 = vmul.f32 %v1132_v36, %v996_v54  ;;  %1807 = vrcp.f32 %v593_v44  ;;  %v1533_v55 = vmul.f32 -1.442695, %v326_v38  ;;  %v1066_v33 = vld [vmem:[%s2277_s6 + $0x170] sm:$0xff]  ;;  %v1136_v35 = vld [vmem:[%s2225_s28 + $0x180] sm:$0xff]  ;;  %v1067_v38 = vld [vmem:[%s2277_s6 + $0x178] sm:$0xff] }
  0xf9   : > { %v1267_v58 = vadd.f32 %v1199_v46, %v1063_v40  ;;  %v1201_v59 = vmul.f32 %v1133_v41, %v997_v48  ;;  %1809 = vpow2.f32 %v2428_v61  ;;  %v1534_v60 = vmul.f32 -1.442695, %v327_v45  ;;  %v1068_v44 = vld [vmem:[%s2277_s6 + $0x180] sm:$0xff]  ;;  %v1137_v45 = vld [vmem:[%s2225_s28 + $0x188] sm:$0xff] }
  0xfa   : > { %1334 = vst [vmem:[%s2286_s27 + $0x150] sm:$0xff] %v1266_v51  ;;  %v1268_v62 = vadd.f32 %v1200_v52, %v1064_v47  ;;  %1811 = vpow2.f32 %v2431_v2  ;;  %v1535_v63 = vmul.f32 -1.442695, %v328_v50  ;;  %v1536_v3 = vmul.f32 -1.442695, %v329_v56  ;;  %v1069_v56 = vld [vmem:[%s2277_s6 + $0x188] sm:$0xff] }
  0xfb   : > { %1335 = vst [vmem:[%s2286_s27 + $0x158] sm:$0xff] %v1267_v58  ;;  %v1269_v1 = vadd.f32 %v1201_v59, %v1065_v53  ;;  %1813 = vpow2.f32 %v1532_v49  ;;  %v1537_v7 = vmul.f32 -1.442695, %v330_v57  ;;  %v1538_v61 = vmul.f32 -1.442695, %v331_v0 }
  0xfc   : > { %1336 = vst [vmem:[%s2286_s27 + $0x160] sm:$0xff] %v1268_v62  ;;  %1815 = vpow2.f32 %v1533_v55  ;;  %v1539_v11 = vmul.f32 -1.442695, %v332_v4  ;;  %v1540_v2 = vmul.f32 -1.442695, %v333_v8 }
  0xfd   : > { %1337 = vst [vmem:[%s2286_s27 + $0x168] sm:$0xff] %v1269_v1  ;;  %1817 = vpow2.f32 %v1534_v60 }
  0xfe   : > { %v1800_v9 = vpop.eup %1799  ;;  %1819 = vpow2.f32 %v1535_v63  ;;  %v334_v63 = vld [vmem:[%s2217_s19 + $0x1f0] sm:$0xff] }
  0xff   : > { %v1802_v5 = vpop.eup %1801  ;;  %v794_v12 = vmul.f32 3.0, %v1800_v9  ;;  %1821 = vpow2.f32 %v1536_v3  ;;  %v335_v3 = vld [vmem:[%s2217_s19 + $0x1f8] sm:$0xff] }
 0x100   : > { %v1804_v13 = vpop.eup %1803  ;;  %v795_v15 = vmul.f32 3.0, %v1802_v5  ;;  %1823 = vpow2.f32 %v1537_v7  ;;  %v1541_v5 = vmul.f32 -1.442695, %v334_v63  ;;  %v1142_v63 = vld [vmem:[%s2225_s28 + $0x1b0] sm:$0xff] }
 0x101   : > { %v1806_v16 = vpop.eup %1805  ;;  %v862_v17 = vadd.f32 -1.5, %v794_v12  ;;  %v796_v18 = vmul.f32 3.0, %v1804_v13  ;;  %1825 = vpow2.f32 %v1538_v61  ;;  %v336_v61 = vld [vmem:[%s2217_s19 + $0x200] sm:$0xff]  ;;  %v337_v13 = vld [vmem:[%s2217_s19 + $0x208] sm:$0xff] }
 0x102   : > { %v1808_v19 = vpop.eup %1807  ;;  %v863_v6 = vadd.f32 -1.5, %v795_v15  ;;  %v594_v20 = vadd.f32 1.0, %v1806_v16  ;;  %1827 = vpow2.f32 %v1539_v11  ;;  %v1543_v16 = vmul.f32 -1.442695, %v336_v61 }
 0x103   : > { %v1810_v21 = vpop.eup %1809  ;;  %v930_v22 = vmax.f32 %v862_v17, 0.0  ;;  %v864_v23 = vadd.f32 -1.5, %v796_v18  ;;  %v797_v10 = vmul.f32 3.0, %v1808_v19  ;;  %1829 = vpow2.f32 %v1540_v2 }
 0x104   : > { %v1812_v24 = vpop.eup %1811  ;;  %v931_v26 = vmax.f32 %v863_v6, 0.0  ;;  %1831 = vrcp.f32 %v594_v20  ;;  %v595_v14 = vadd.f32 1.0, %v1810_v21  ;;  %v1542_v2 = vmul.f32 -1.442695, %v335_v3  ;;  %v338_v6 = vld [vmem:[%s2217_s19 + $0x210] sm:$0xff] }
 0x105   : > { %v1814_v27 = vpop.eup %1813  ;;  %v998_v42 = vmin.f32 %v930_v22, 1.0  ;;  %v932_v29 = vmax.f32 %v864_v23, 0.0  ;;  %v865_v30 = vadd.f32 -1.5, %v797_v10  ;;  %v596_v31 = vadd.f32 1.0, %v1812_v24 }
 0x106   : > { %v1816_v32 = vpop.eup %1815  ;;  %v999_v34 = vmin.f32 %v931_v26, 1.0  ;;  %1833 = vrcp.f32 %v595_v14  ;;  %v597_v43 = vadd.f32 1.0, %v1814_v27  ;;  %v1544_v22 = vmul.f32 -1.442695, %v337_v13  ;;  %v1138_v14 = vld [vmem:[%s2225_s28 + $0x190] sm:$0xff] }
 0x107   : > { %v1818_v36 = vpop.eup %1817  ;;  %v1202_v37 = vmul.f32 %v1134_v25, %v998_v42  ;;  %v1000_v39 = vmin.f32 %v932_v29, 1.0  ;;  %v933_v40 = vmax.f32 %v865_v30, 0.0  ;;  %1835 = vrcp.f32 %v596_v31  ;;  %v339_v25 = vld [vmem:[%s2217_s19 + $0x218] sm:$0xff] }
 0x108   : > { %v1820_v54 = vpop.eup %1819  ;;  %v1203_v41 = vmul.f32 %v1135_v28, %v999_v34  ;;  %1837 = vrcp.f32 %v597_v43  ;;  %v598_v46 = vadd.f32 1.0, %v1816_v32  ;;  %v599_v47 = vadd.f32 1.0, %v1818_v36  ;;  %v1070_v34 = vld [vmem:[%s2277_s6 + $0x190] sm:$0xff] }
 0x109   : > { %v1822_v48 = vpop.eup %1821  ;;  %v1270_v49 = vadd.f32 %v1202_v37, %v1066_v33  ;;  %v1204_v50 = vmul.f32 %v1136_v35, %v1000_v39  ;;  %v1001_v51 = vmin.f32 %v933_v40, 1.0  ;;  %v600_v52 = vadd.f32 1.0, %v1820_v54  ;;  %v1139_v35 = vld [vmem:[%s2225_s28 + $0x198] sm:$0xff]  ;;  %v1140_v54 = vld [vmem:[%s2225_s28 + $0x1a0] sm:$0xff] }
 0x10a   : > { %v1824_v53 = vpop.eup %1823  ;;  %v1271_v55 = vadd.f32 %v1203_v41, %v1067_v38  ;;  %1839 = vrcp.f32 %v598_v46  ;;  %v601_v58 = vadd.f32 1.0, %v1822_v48  ;;  %v2502_v42 = vmul.f32 -1.442695, %v338_v6  ;;  %v1071_v46 = vld [vmem:[%s2277_s6 + $0x198] sm:$0xff]  ;;  %v1141_v48 = vld [vmem:[%s2225_s28 + $0x1a8] sm:$0xff] }
 0x10b   : > { %v1826_v59 = vpop.eup %1825  ;;  %1338 = vst [vmem:[%s2286_s27 + $0x170] sm:$0xff] %v1270_v49  ;;  %v1272_v60 = vadd.f32 %v1204_v50, %v1068_v44  ;;  %v1205_v57 = vmul.f32 %v1137_v45, %v1001_v51  ;;  %1841 = vrcp.f32 %v599_v47  ;;  %v602_v62 = vadd.f32 1.0, %v1824_v53  ;;  %v1075_v6 = vld [vmem:[%s2277_s6 + $0x1b8] sm:$0xff] }
 0x10c   : > { %v1828_v0 = vpop.eup %1827  ;;  %1339 = vst [vmem:[%s2286_s27 + $0x178] sm:$0xff] %v1271_v55  ;;  %1843 = vrcp.f32 %v600_v52  ;;  %v603_v1 = vadd.f32 1.0, %v1826_v59  ;;  %v2506_v37 = vmul.f32 -1.442695, %v339_v25 }
 0x10d   : > { %v1830_v4 = vpop.eup %1829  ;;  %1340 = vst [vmem:[%s2286_s27 + $0x180] sm:$0xff] %v1272_v60  ;;  %v1273_v7 = vadd.f32 %v1205_v57, %v1069_v56  ;;  %1845 = vrcp.f32 %v601_v58  ;;  %v604_v8 = vadd.f32 1.0, %v1828_v0  ;;  %v1072_v56 = vld [vmem:[%s2277_s6 + $0x1a0] sm:$0xff] }
 0x10e   : > { %v1832_v9 = vpop.eup %1831  ;;  %1847 = vrcp.f32 %v602_v62  ;;  %v605_v11 = vadd.f32 1.0, %v1830_v4  ;;  %v1073_v62 = vld [vmem:[%s2277_s6 + $0x1a8] sm:$0xff] }
 0x10f   : > { %1341 = vst [vmem:[%s2286_s27 + $0x188] sm:$0xff] %v1273_v7  ;;  %v798_v12 = vmul.f32 3.0, %v1832_v9  ;;  %1849 = vrcp.f32 %v603_v1  ;;  %v1143_v9 = vld [vmem:[%s2225_s28 + $0x1b8] sm:$0xff] }
 0x110   : > { %v1834_v15 = vpop.eup %1833  ;;  %1851 = vrcp.f32 %v604_v8 }
 0x111   : > { %v1836_v17 = vpop.eup %1835  ;;  %v866_v18 = vadd.f32 -1.5, %v798_v12  ;;  %v799_v19 = vmul.f32 3.0, %v1834_v15  ;;  %1853 = vrcp.f32 %v605_v11 }
 0x112   : > { %v1838_v20 = vpop.eup %1837  ;;  %v800_v21 = vmul.f32 3.0, %v1836_v17  ;;  %1855 = vpow2.f32 %v1541_v5 }
 0x113   : > { %v934_v23 = vmax.f32 %v866_v18, 0.0  ;;  %v867_v10 = vadd.f32 -1.5, %v799_v19  ;;  %v801_v24 = vmul.f32 3.0, %v1838_v20  ;;  %1857 = vpow2.f32 %v1542_v2  ;;  %v1074_v2 = vld [vmem:[%s2277_s6 + $0x1b0] sm:$0xff]  ;;  %v1144_v20 = vld [vmem:[%s2225_s28 + $0x1c0] sm:$0xff] }
 0x114   : > { %v1840_v26 = vpop.eup %1839  ;;  %v868_v27 = vadd.f32 -1.5, %v800_v21  ;;  %1859 = vpow2.f32 %v1543_v16  ;;  %v1145_v21 = vld [vmem:[%s2225_s28 + $0x1c8] sm:$0xff] }
 0x115   : > { %v1842_v28 = vpop.eup %1841  ;;  %v1002_v29 = vmin.f32 %v934_v23, 1.0  ;;  %v935_v30 = vmax.f32 %v867_v10, 0.0  ;;  %v869_v31 = vadd.f32 -1.5, %v801_v24  ;;  %v802_v32 = vmul.f32 3.0, %v1840_v26 }
 0x116   : > { %v1844_v33 = vpop.eup %1843  ;;  %v936_v43 = vmax.f32 %v868_v27, 0.0  ;;  %v803_v36 = vmul.f32 3.0, %v1842_v28  ;;  %1861 = vpow2.f32 %v1544_v22  ;;  %v1076_v28 = vld [vmem:[%s2277_s6 + $0x1c0] sm:$0xff] }
 0x117   : > { %v1846_v38 = vpop.eup %1845  ;;  %v1206_v39 = vmul.f32 %v1138_v14, %v1002_v29  ;;  %v1003_v40 = vmin.f32 %v935_v30, 1.0  ;;  %v937_v41 = vmax.f32 %v869_v31, 0.0  ;;  %v870_v44 = vadd.f32 -1.5, %v802_v32  ;;  %v1077_v29 = vld [vmem:[%s2277_s6 + $0x1c8] sm:$0xff] }
 0x118   : > { %v1848_v45 = vpop.eup %1847  ;;  %v1004_v47 = vmin.f32 %v936_v43, 1.0  ;;  %v871_v49 = vadd.f32 -1.5, %v803_v36  ;;  %v804_v50 = vmul.f32 3.0, %v1844_v33  ;;  %v805_v51 = vmul.f32 3.0, %v1846_v38  ;;  %v1146_v36 = vld [vmem:[%s2225_s28 + $0x1d0] sm:$0xff] }
 0x119   : > { %v1850_v52 = vpop.eup %1849  ;;  %v1274_v53 = vadd.f32 %v1206_v39, %v1070_v34  ;;  %v1207_v55 = vmul.f32 %v1139_v35, %v1003_v40  ;;  %v1005_v58 = vmin.f32 %v937_v41, 1.0  ;;  %v938_v59 = vmax.f32 %v870_v44, 0.0 }
 0x11a   : > { %v1852_v60 = vpop.eup %1851  ;;  %v1208_v57 = vmul.f32 %v1140_v54, %v1004_v47  ;;  %v939_v0 = vmax.f32 %v871_v49, 0.0  ;;  %v872_v1 = vadd.f32 -1.5, %v804_v50  ;;  %v873_v3 = vadd.f32 -1.5, %v805_v51  ;;  %v1147_v47 = vld [vmem:[%s2225_s28 + $0x1d8] sm:$0xff] }
 0x11b   : > { %v1854_v4 = vpop.eup %1853  ;;  %1342 = vst [vmem:[%s2286_s27 + $0x190] sm:$0xff] %v1274_v53  ;;  %v1275_v7 = vadd.f32 %v1207_v55, %v1071_v46  ;;  %v1209_v8 = vmul.f32 %v1141_v48, %v1005_v58  ;;  %v1006_v61 = vmin.f32 %v938_v59, 1.0  ;;  %v806_v11 = vmul.f32 3.0, %v1848_v45  ;;  %v1078_v46 = vld [vmem:[%s2277_s6 + $0x1d0] sm:$0xff]  ;;  %v1079_v55 = vld [vmem:[%s2277_s6 + $0x1d8] sm:$0xff]  ;;  %v1149_v58 = vld [vmem:[%s2225_s28 + $0x1e8] sm:$0xff] }
 0x11c   : > { %v1856_v5 = vpop.eup %1855  ;;  %v1276_v12 = vadd.f32 %v1208_v57, %v1072_v56  ;;  %v1007_v13 = vmin.f32 %v939_v0, 1.0  ;;  %v940_v15 = vmax.f32 %v872_v1, 0.0  ;;  %v941_v16 = vmax.f32 %v873_v3, 0.0  ;;  %v1081_v3 = vld [vmem:[%s2277_s6 + $0x1e8] sm:$0xff] }
 0x11d   : > { %v1858_v17 = vpop.eup %1857  ;;  %1343 = vst [vmem:[%s2286_s27 + $0x198] sm:$0xff] %v1275_v7  ;;  %v1277_v18 = vadd.f32 %v1209_v8, %v1073_v62  ;;  %v1210_v19 = vmul.f32 %v1142_v63, %v1006_v61  ;;  %v874_v22 = vadd.f32 -1.5, %v806_v11  ;;  %v807_v23 = vmul.f32 3.0, %v1850_v52  ;;  %v1148_v52 = vld [vmem:[%s2225_s28 + $0x1e0] sm:$0xff] }
 0x11e   : > { %v1860_v10 = vpop.eup %1859  ;;  %1344 = vst [vmem:[%s2286_s27 + $0x1a0] sm:$0xff] %v1276_v12  ;;  %v1211_v24 = vmul.f32 %v1143_v9, %v1007_v13  ;;  %v1008_v25 = vmin.f32 %v940_v15, 1.0  ;;  %v1009_v26 = vmin.f32 %v941_v16, 1.0  ;;  %v808_v14 = vmul.f32 3.0, %v1852_v60  ;;  %v1080_v63 = vld [vmem:[%s2277_s6 + $0x1e0] sm:$0xff] }
 0x11f   : > { %1345 = vst [vmem:[%s2286_s27 + $0x1a8] sm:$0xff] %v1277_v18  ;;  %v1278_v27 = vadd.f32 %v1210_v19, %v1074_v2  ;;  %v942_v30 = vmax.f32 %v874_v22, 0.0  ;;  %v875_v31 = vadd.f32 -1.5, %v807_v23  ;;  %v809_v32 = vmul.f32 3.0, %v1854_v4 }
 0x120   : > { %v1862_v33 = vpop.eup %1861  ;;  %v1279_v34 = vadd.f32 %v1211_v24, %v1075_v6  ;;  %v1212_v35 = vmul.f32 %v1144_v20, %v1008_v25  ;;  %v1213_v43 = vmul.f32 %v1145_v21, %v1009_v26  ;;  %v876_v38 = vadd.f32 -1.5, %v808_v14  ;;  %v1150_v20 = vld [vmem:[%s2225_s28 + $0x1f0] sm:$0xff]  ;;  %v1151_v24 = vld [vmem:[%s2225_s28 + $0x1f8] sm:$0xff] }
 0x121   : > { %1346 = vst [vmem:[%s2286_s27 + $0x1b0] sm:$0xff] %v1278_v27  ;;  %v1010_v39 = vmin.f32 %v942_v30, 1.0  ;;  %v943_v40 = vmax.f32 %v875_v31, 0.0  ;;  %v877_v54 = vadd.f32 -1.5, %v809_v32  ;;  %v606_v41 = vadd.f32 1.0, %v1856_v5  ;;  %v1082_v26 = vld [vmem:[%s2277_s6 + $0x1f0] sm:$0xff] }
 0x122   : > { %1347 = vst [vmem:[%s2286_s27 + $0x1b8] sm:$0xff] %v1279_v34  ;;  %v1280_v44 = vadd.f32 %v1212_v35, %v1076_v28  ;;  %v1281_v45 = vadd.f32 %v1213_v43, %v1077_v29  ;;  %v944_v48 = vmax.f32 %v876_v38, 0.0  ;;  %v607_v49 = vadd.f32 1.0, %v1858_v17  ;;  %v1083_v29 = vld [vmem:[%s2277_s6 + $0x1f8] sm:$0xff]  ;;  %v1152_v30 = vld [vmem:[%s2225_s28 + $0x200] sm:$0xff]  ;;  %v1153_v34 = vld [vmem:[%s2225_s28 + $0x208] sm:$0xff] }
 0x123   : > { %v1214_v50 = vmul.f32 %v1146_v36, %v1010_v39  ;;  %v1011_v51 = vmin.f32 %v943_v40, 1.0  ;;  %v945_v53 = vmax.f32 %v877_v54, 0.0  ;;  %1863 = vrcp.f32 %v606_v41  ;;  %v1084_v43 = vld [vmem:[%s2277_s6 + $0x200] sm:$0xff]  ;;  %v1085_v40 = vld [vmem:[%s2277_s6 + $0x208] sm:$0xff] }
 0x124   : > { %1348 = vst [vmem:[%s2286_s27 + $0x1c0] sm:$0xff] %v1280_v44  ;;  %1349 = vst [vmem:[%s2286_s27 + $0x1c8] sm:$0xff] %v1281_v45  ;;  %v1012_v56 = vmin.f32 %v944_v48, 1.0  ;;  %1865 = vrcp.f32 %v607_v49  ;;  %v608_v59 = vadd.f32 1.0, %v1860_v10  ;;  %v609_v60 = vadd.f32 1.0, %v1862_v33 }
 0x125   : > { %v1282_v57 = vadd.f32 %v1214_v50, %v1078_v46  ;;  %v1215_v62 = vmul.f32 %v1147_v47, %v1011_v51  ;;  %v1013_v0 = vmin.f32 %v945_v53, 1.0  ;;  %1867 = vpow2.f32 %v2502_v42  ;;  %v1154_v51 = vld [vmem:[%s2225_s28 + $0x210] sm:$0xff] }
 0x126   : > { %v1216_v1 = vmul.f32 %v1148_v52, %v1012_v56  ;;  %1869 = vrcp.f32 %v608_v59  ;;  %v1155_v59 = vld [vmem:[%s2225_s28 + $0x218] sm:$0xff] }
 0x127   : > { %1350 = vst [vmem:[%s2286_s27 + $0x1d0] sm:$0xff] %v1282_v57  ;;  %v1283_v4 = vadd.f32 %v1215_v62, %v1079_v55  ;;  %v1217_v7 = vmul.f32 %v1149_v58, %v1013_v0  ;;  %1871 = vrcp.f32 %v609_v60  ;;  %v1086_v55 = vld [vmem:[%s2277_s6 + $0x210] sm:$0xff]  ;;  %v1087_v62 = vld [vmem:[%s2277_s6 + $0x218] sm:$0xff] }
 0x128   : > { %v1284_v8 = vadd.f32 %v1216_v1, %v1080_v63  ;;  %1873 = vpow2.f32 %v2506_v37 }
 0x129   : > { %1351 = vst [vmem:[%s2286_s27 + $0x1d8] sm:$0xff] %v1283_v4  ;;  %v1285_v61 = vadd.f32 %v1217_v7, %v1081_v3 }
 0x12a   : > { %1352 = vst [vmem:[%s2286_s27 + $0x1e0] sm:$0xff] %v1284_v8 }
 0x12b   : > { %1353 = vst [vmem:[%s2286_s27 + $0x1e8] sm:$0xff] %v1285_v61 }
 0x12d   : > { %v1864_v9 = vpop.eup %1863 }
 0x12e   : > { %v1866_v11 = vpop.eup %1865  ;;  %v810_v5 = vmul.f32 3.0, %v1864_v9 }
 0x12f   : > { %v1868_v12 = vpop.eup %1867  ;;  %v811_v42 = vmul.f32 3.0, %v1866_v11 }
 0x130   : > { %v1870_v2 = vpop.eup %1869  ;;  %v878_v13 = vadd.f32 -1.5, %v810_v5  ;;  %v610_v15 = vadd.f32 1.0, %v1868_v12 }
 0x131   : > { %v1872_v16 = vpop.eup %1871  ;;  %v879_v17 = vadd.f32 -1.5, %v811_v42  ;;  %v812_v18 = vmul.f32 3.0, %v1870_v2 }
 0x132   : > { %v1874_v19 = vpop.eup %1873  ;;  %v946_v37 = vmax.f32 %v878_v13, 0.0  ;;  %v813_v6 = vmul.f32 3.0, %v1872_v16  ;;  %1875 = vrcp.f32 %v610_v15 }
 0x133   : > { %v947_v21 = vmax.f32 %v879_v17, 0.0  ;;  %v880_v22 = vadd.f32 -1.5, %v812_v18  ;;  %v611_v23 = vadd.f32 1.0, %v1874_v19 }
 0x134   : > { %v1014_v10 = vmin.f32 %v946_v37, 1.0  ;;  %v881_v25 = vadd.f32 -1.5, %v813_v6 }
 0x135   : > { %v1015_v14 = vmin.f32 %v947_v21, 1.0  ;;  %v948_v27 = vmax.f32 %v880_v22, 0.0  ;;  %1877 = vrcp.f32 %v611_v23 }
 0x136   : > { %v1218_v28 = vmul.f32 %v1150_v20, %v1014_v10  ;;  %v949_v31 = vmax.f32 %v881_v25, 0.0 }
 0x137   : > { %v1219_v32 = vmul.f32 %v1151_v24, %v1015_v14  ;;  %v1016_v33 = vmin.f32 %v948_v27, 1.0 }
 0x138   : > { %v1286_v35 = vadd.f32 %v1218_v28, %v1082_v26  ;;  %v1017_v36 = vmin.f32 %v949_v31, 1.0 }
 0x139   : > { %v1287_v38 = vadd.f32 %v1219_v32, %v1083_v29  ;;  %v1220_v39 = vmul.f32 %v1152_v30, %v1016_v33 }
 0x13a   : > { %1354 = vst [vmem:[%s2286_s27 + $0x1f0] sm:$0xff] %v1286_v35  ;;  %v1221_v54 = vmul.f32 %v1153_v34, %v1017_v36 }
 0x13b   : > { %1355 = vst [vmem:[%s2286_s27 + $0x1f8] sm:$0xff] %v1287_v38  ;;  %v1288_v41 = vadd.f32 %v1220_v39, %v1084_v43 }
 0x13c   : > { %v1876_v44 = vpop.eup %1875  ;;  %v1289_v45 = vadd.f32 %v1221_v54, %v1085_v40 }
 0x13d   : > { %1356 = vst [vmem:[%s2286_s27 + $0x200] sm:$0xff] %v1288_v41  ;;  %v814_v46 = vmul.f32 3.0, %v1876_v44 }
 0x13e   : > { %1357 = vst [vmem:[%s2286_s27 + $0x208] sm:$0xff] %v1289_v45 }
 0x13f   : > { %v1878_v47 = vpop.eup %1877  ;;  %v882_v48 = vadd.f32 -1.5, %v814_v46 }
 0x140   : > { %v815_v49 = vmul.f32 3.0, %v1878_v47 }
 0x141   : > { %v950_v50 = vmax.f32 %v882_v48, 0.0 }
 0x142   : > { %v883_v52 = vadd.f32 -1.5, %v815_v49 }
 0x143   : > { %v1018_v53 = vmin.f32 %v950_v50, 1.0 }
 0x144   : > { %v951_v56 = vmax.f32 %v883_v52, 0.0 }
 0x145   : > { %v1222_v58 = vmul.f32 %v1154_v51, %v1018_v53 }
 0x146   : > { %v1019_v60 = vmin.f32 %v951_v56, 1.0 }
 0x147   : > { %v1290_v57 = vadd.f32 %v1222_v58, %v1086_v55 }
 0x148   : > { %v1223_v63 = vmul.f32 %v1155_v59, %v1019_v60 }
 0x149   : > { %1358 = vst [vmem:[%s2286_s27 + $0x210] sm:$0xff] %v1290_v57 }
 0x14a   : > { %v1291_v0 = vadd.f32 %v1223_v63, %v1087_v62 }
 0x14c   : > { %1359 = vst [vmem:[%s2286_s27 + $0x218] sm:$0xff] %v1291_v0 }
 0x14d PF: > { %p16_p2 = scmp.ge.s32.totalorder %s2056_s17, 4   ;;  %s2588_s12 = smov %s1999_s13 }
 0x14e   : > { %s2589_s13 = smov %s2003_s14  ;;  %s2590_s14 = smov %s2066_s20 }
 0x14f   : > { %s2591_s15 = smov %s2056_s17  ;;  %18 = sbr.rel (!%p16_p2) target bundleno = 5 (0x5), region = 96 }
 0x156   :  { %1382 = vsyncpa [#allocation3], 1 }
 0x157   :  { %1384 = vsyncpa [#allocation3 + $0x1], 1 }
 0x158   :  { %1385 = vsyncpa [#allocation5], 1 }
 0x159   :  { %1387 = vsyncpa [#allocation5 + $0x1], 1 }

// kernel: diff_pruning_transformer_forward.3
= control target key start
LH: loop header
LB: loop body
LE: loop exit
PB: predicated region body
PF: predicated region fallthrough
CT: control target
= control target key end

     0   :  { %s2993_s0 = inlined_call_operand.vmem [shape: s32[16], index: 0, kind: input, shape index: {}]   ;;  %s2994_s1 = inlined_call_operand.vmem [shape: f32[1,16], index: 1, kind: input, shape index: {}]   ;;  %s2995_s2 = inlined_call_operand.vmem [shape: f32[50,128], index: 2, kind: input, shape index: {}]   ;;  %s2996_s3 = inlined_call_operand.vmem [shape: f32[128,384], index: 3, kind: input, shape index: {}]   ;;  %s2997_s4 = inlined_call_operand.vmem [shape: f32[1,384], index: 4, kind: input, shape index: {}]   ;;  %s2998_s5 = inlined_call_operand.vmem [shape: f32[128,128], index: 5, kind: input, shape index: {}]   ;;  %s2999_s6 = inlined_call_operand.vmem [shape: f32[128,256], index: 6, kind: input, shape index: {}]   ;;  %s3000_s7 = inlined_call_operand.vmem [shape: f32[1,256], index: 7, kind: input, shape index: {}]   ;;  %s3001_s8 = inlined_call_operand.vmem [shape: f32[256,128], index: 8, kind: input, shape index: {}]   ;;  %s3002_s9 = inlined_call_operand.vmem [shape: f32[6,128], index: 9, kind: input, shape index: {}]   ;;  %s3003_s10 = inlined_call_operand.hbm [shape: f32[16,128], index: 10, kind: output, shape index: {}]  }
   0x1   :  { %s15_s15 = sshll.u32 %s2993_s0, 4  ;;  %s16_s15 = int_to_ptr.vmem [resolvable:$true] %s15_s15 }
   0x2   :  { %s2278_s16 = scalar_lea.vmem %s16_s15, 16  ;;  %p2283_p1 = scmp.lt.s32.totalorder %s16_s15, %s16_s15 }
   0x3   :  { %p2279_p0 = scmp.ne.s32.totalorder %s16_s15, %s2278_s16  ;;  %p2284_p2 = scmp.lt.s32.totalorder %s2278_s16, %s2278_s16 }
   0x5   :  { %p2285_p3 = por %p2284_p2, %p2283_p1 }
   0x7   :  { %p2286_p4 = pnand %p2285_p3, %p2279_p0 }
   0x9   :  { %2289 = shalt.err (!%p2286_p4)  }
   0xa   :  { %s2348_s17 = smov [#allocation5]  }
   0xb   :  { %18 = dma.vmem_to_smem %s16_s15, 16, %s2348_s17, [#allocation4] }
   0xc   :  { %2312 = dma.done.wait [#allocation4], 16 }
   0xd   :  { %2313 = vsyncadd [#allocation4], 4294967280 }
   0xe   :  { %20 = sfence }
   0xf   :  { %21 = vsyncpa [#allocation7], 0  ;;  %s39_s18 = sld [smem:[#allocation5]] }
  0x15   :  { %s40_s21 = scalar_lea.vmem %s2995_s2, %s39_s18 }
  0x16   :  { %v58_v0 = vld [vmem:[%s40_s21] sm:$0x1] }
  0x17   :  { %59 = vst [vmem:[#allocation2] sm:$0x1] %v58_v0 }
  0x18   :  { %84 = vsyncadd [#allocation3], 16  ;;  %s2076_s0 = sld [smem:[#allocation5 + $0x1]] }
  0x1e   :  { %s86_s24 = scalar_lea.vmem %s2995_s2, %s2076_s0 }
  0x1f   :  { %v106_v1 = vld [vmem:[%s86_s24] sm:$0x1] }
  0x20   :  { %107 = vst [vmem:[#allocation2 + $0x1] sm:$0x1] %v106_v1 }
  0x21   :  { %132 = vsyncadd [#allocation3 + $0x1], 16  ;;  %s2077_s25 = sld [smem:[#allocation5 + $0x2]] }
  0x27   :  { %s134_s28 = scalar_lea.vmem %s2995_s2, %s2077_s25 }
  0x28   :  { %v154_v2 = vld [vmem:[%s134_s28] sm:$0x1] }
  0x29   :  { %155 = vst [vmem:[#allocation2 + $0x2] sm:$0x1] %v154_v2 }
  0x2a   :  { %180 = vsyncadd [#allocation3 + $0x2], 16  ;;  %s2078_s29 = sld [smem:[#allocation5 + $0x3]] }
  0x30   :  { %s182_s12 = scalar_lea.vmem %s2995_s2, %s2078_s29 }
  0x31   :  { %v202_v3 = vld [vmem:[%s182_s12] sm:$0x1] }
  0x32   :  { %203 = vst [vmem:[#allocation2 + $0x3] sm:$0x1] %v202_v3 }
  0x33   :  { %228 = vsyncadd [#allocation3 + $0x3], 16  ;;  %s2079_s13 = sld [smem:[#allocation5 + $0x4]] }
  0x39   :  { %s230_s16 = scalar_lea.vmem %s2995_s2, %s2079_s13 }
  0x3a   :  { %v250_v4 = vld [vmem:[%s230_s16] sm:$0x1] }
  0x3b   :  { %251 = vst [vmem:[#allocation2 + $0x4] sm:$0x1] %v250_v4 }
  0x3c   :  { %276 = vsyncadd [#allocation3 + $0x4], 16  ;;  %s2080_s17 = sld [smem:[#allocation5 + $0x5]] }
  0x42   :  { %s278_s20 = scalar_lea.vmem %s2995_s2, %s2080_s17 }
  0x43   :  { %v298_v5 = vld [vmem:[%s278_s20] sm:$0x1] }
  0x44   :  { %299 = vst [vmem:[#allocation2 + $0x5] sm:$0x1] %v298_v5 }
  0x45   :  { %324 = vsyncadd [#allocation3 + $0x5], 16  ;;  %s2081_s21 = sld [smem:[#allocation5 + $0x6]] }
  0x4b   :  { %s326_s23 = scalar_lea.vmem %s2995_s2, %s2081_s21 }
  0x4c   :  { %v346_v6 = vld [vmem:[%s326_s23] sm:$0x1] }
  0x4d   :  { %347 = vst [vmem:[#allocation2 + $0x6] sm:$0x1] %v346_v6 }
  0x4e   :  { %372 = vsyncadd [#allocation3 + $0x6], 16  ;;  %s2082_s24 = sld [smem:[#allocation5 + $0x7]] }
  0x54   :  { %s374_s27 = scalar_lea.vmem %s2995_s2, %s2082_s24 }
  0x55   :  { %v394_v7 = vld [vmem:[%s374_s27] sm:$0x1] }
  0x56   :  { %395 = vst [vmem:[#allocation2 + $0x7] sm:$0x1] %v394_v7 }
  0x57   :  { %420 = vsyncadd [#allocation3 + $0x7], 16  ;;  %s2083_s28 = sld [smem:[#allocation5 + $0x8]] }
  0x5d   :  { %s422_s11 = scalar_lea.vmem %s2995_s2, %s2083_s28 }
  0x5e   :  { %v442_v8 = vld [vmem:[%s422_s11] sm:$0x1] }
  0x5f   :  { %443 = vst [vmem:[#allocation2 + $0x8] sm:$0x1] %v442_v8 }
  0x60   :  { %468 = vsyncadd [#allocation3 + $0x8], 16  ;;  %s2084_s12 = sld [smem:[#allocation5 + $0x9]] }
  0x66   :  { %s470_s15 = scalar_lea.vmem %s2995_s2, %s2084_s12 }
  0x67   :  { %v490_v9 = vld [vmem:[%s470_s15] sm:$0x1] }
  0x68   :  { %491 = vst [vmem:[#allocation2 + $0x9] sm:$0x1] %v490_v9 }
  0x69   :  { %516 = vsyncadd [#allocation3 + $0x9], 16  ;;  %s2085_s16 = sld [smem:[#allocation5 + $0xa]] }
  0x6f   :  { %s518_s19 = scalar_lea.vmem %s2995_s2, %s2085_s16 }
  0x70   :  { %v538_v10 = vld [vmem:[%s518_s19] sm:$0x1] }
  0x71   :  { %539 = vst [vmem:[#allocation2 + $0xa] sm:$0x1] %v538_v10 }
  0x72   :  { %564 = vsyncadd [#allocation3 + $0xa], 16  ;;  %s2086_s20 = sld [smem:[#allocation5 + $0xb]] }
  0x78   :  { %s566_s22 = scalar_lea.vmem %s2995_s2, %s2086_s20 }
  0x79   :  { %v586_v11 = vld [vmem:[%s566_s22] sm:$0x1] }
  0x7a   :  { %587 = vst [vmem:[#allocation2 + $0xb] sm:$0x1] %v586_v11 }
  0x7b   :  { %612 = vsyncadd [#allocation3 + $0xb], 16  ;;  %s2087_s23 = sld [smem:[#allocation5 + $0xc]] }
  0x81   :  { %s614_s26 = scalar_lea.vmem %s2995_s2, %s2087_s23 }
  0x82   :  { %v634_v12 = vld [vmem:[%s614_s26] sm:$0x1] }
  0x83   :  { %635 = vst [vmem:[#allocation2 + $0xc] sm:$0x1] %v634_v12 }
  0x84   :  { %660 = vsyncadd [#allocation3 + $0xc], 16  ;;  %s2088_s27 = sld [smem:[#allocation5 + $0xd]] }
  0x8a   :  { %s662_s30 = scalar_lea.vmem %s2995_s2, %s2088_s27 }
  0x8b   :  { %v682_v13 = vld [vmem:[%s662_s30] sm:$0x1] }
  0x8c   :  { %683 = vst [vmem:[#allocation2 + $0xd] sm:$0x1] %v682_v13 }
  0x8d   :  { %708 = vsyncadd [#allocation3 + $0xd], 16  ;;  %s2089_s11 = sld [smem:[#allocation5 + $0xe]] }
  0x93   :  { %s710_s14 = scalar_lea.vmem %s2995_s2, %s2089_s11 }
  0x94   :  { %v730_v14 = vld [vmem:[%s710_s14] sm:$0x1] }
  0x95   :  { %731 = vst [vmem:[#allocation2 + $0xe] sm:$0x1] %v730_v14 }
  0x96   :  { %756 = vsyncadd [#allocation3 + $0xe], 16  ;;  %s2090_s15 = sld [smem:[#allocation5 + $0xf]] }
  0x9c   :  { %s758_s18 = scalar_lea.vmem %s2995_s2, %s2090_s15 }
  0x9d   :  { %v778_v15 = vld [vmem:[%s758_s18] sm:$0x1] }
  0x9e   :  { %779 = vst [vmem:[#allocation2 + $0xf] sm:$0x1] %v778_v15 }
  0x9f   :  { %804 = vsyncadd [#allocation3 + $0xf], 16 }
  0xa0   :  { %2314 = dma.done.wait [#allocation3], 16 }
  0xa1   :  { %2315 = vsyncadd [#allocation3], 4294967280 }
  0xa2   :  { %2316 = dma.done.wait [#allocation3 + $0x1], 16 }
  0xa3   :  { %2317 = vsyncadd [#allocation3 + $0x1], 4294967280 }
  0xa4   :  { %2318 = dma.done.wait [#allocation3 + $0x2], 16 }
  0xa5   :  { %2319 = vsyncadd [#allocation3 + $0x2], 4294967280 }
  0xa6   :  { %2320 = dma.done.wait [#allocation3 + $0x3], 16 }
  0xa7   :  { %2321 = vsyncadd [#allocation3 + $0x3], 4294967280 }
  0xa8   :  { %2322 = dma.done.wait [#allocation3 + $0x4], 16 }
  0xa9   :  { %2323 = vsyncadd [#allocation3 + $0x4], 4294967280 }
  0xaa   :  { %2324 = dma.done.wait [#allocation3 + $0x5], 16 }
  0xab   :  { %2325 = vsyncadd [#allocation3 + $0x5], 4294967280 }
  0xac   :  { %2326 = dma.done.wait [#allocation3 + $0x6], 16 }
  0xad   :  { %2327 = vsyncadd [#allocation3 + $0x6], 4294967280 }
  0xae   :  { %2328 = dma.done.wait [#allocation3 + $0x7], 16 }
  0xaf   :  { %2329 = vsyncadd [#allocation3 + $0x7], 4294967280 }
  0xb0   :  { %2330 = dma.done.wait [#allocation3 + $0x8], 16 }
  0xb1   :  { %2331 = vsyncadd [#allocation3 + $0x8], 4294967280 }
  0xb2   :  { %2332 = dma.done.wait [#allocation3 + $0x9], 16 }
  0xb3   :  { %2333 = vsyncadd [#allocation3 + $0x9], 4294967280 }
  0xb4   :  { %2334 = dma.done.wait [#allocation3 + $0xa], 16 }
  0xb5   :  { %2335 = vsyncadd [#allocation3 + $0xa], 4294967280 }
  0xb6   :  { %2336 = dma.done.wait [#allocation3 + $0xb], 16 }
  0xb7   :  { %2337 = vsyncadd [#allocation3 + $0xb], 4294967280 }
  0xb8   :  { %2338 = dma.done.wait [#allocation3 + $0xc], 16 }
  0xb9   :  { %2339 = vsyncadd [#allocation3 + $0xc], 4294967280 }
  0xba   :  { %2340 = dma.done.wait [#allocation3 + $0xd], 16 }
  0xbb   :  { %2341 = vsyncadd [#allocation3 + $0xd], 4294967280 }
  0xbc   :  { %2342 = dma.done.wait [#allocation3 + $0xe], 16 }
  0xbd   :  { %2343 = vsyncadd [#allocation3 + $0xe], 4294967280 }
  0xbe   :  { %2344 = dma.done.wait [#allocation3 + $0xf], 16 }
  0xbf   :  { %2345 = vsyncadd [#allocation3 + $0xf], 4294967280  ;;  %v2349_v16 = vmov 0   ;;  %v2350_v17 = vmov 0.0   ;;  %v858_v18 = vld [vmem:[%s2996_s3 + $0x8] sm:$0xff]  ;;  %v861_v19 = vld [vmem:[%s2996_s3 + $0x20] sm:$0xff] }
  0xc0   :  { %978 = vmatprep.mubr.bf16.mxu0 %v2349_v16  ;;  %2169 = vmatprep.subr.bf16.mxu1 %v2350_v17  ;;  %v857_v20 = vld [vmem:[%s2996_s3] sm:$0xff]  ;;  %v906_v21 = vpack.c.bf16 %v861_v19, %v858_v18  ;;  %v860_v22 = vld [vmem:[%s2996_s3 + $0x18] sm:$0xff]  ;;  %v867_v24 = vld [vmem:[%s2996_s3 + $0x50] sm:$0xff]  ;;  %vm2351_vm0 = vmmov 0   ;;  %vm1084_vm1 = vcmask 523264   ;;  %vm1132_vm6 = vcmask 130048  }
  0xc1   :  { %v864_v23 = vld [vmem:[%s2996_s3 + $0x38] sm:$0xff]  ;;  %v905_v25 = vpack.c.bf16 %v860_v22, %v857_v20  ;;  %v863_v27 = vld [vmem:[%s2996_s3 + $0x30] sm:$0xff]  ;;  %v866_v28 = vld [vmem:[%s2996_s3 + $0x48] sm:$0xff]  ;;  %2185 = vmatprep.mubr.msk.bf16.mxu1 %vm2351_vm0, %v2350_v17  ;;  %s2354_s19 = smov [#allocation6]  }
  0xc2   :  { %v909_v26 = vpack.c.bf16 %v867_v24, %v864_v23  ;;  %v870_v29 = vld [vmem:[%s2996_s3 + $0x68] sm:$0xff]  ;;  %946 = vmatprep.subr.bf16.mxu0 %v906_v21  ;;  %v873_v30 = vld [vmem:[%s2996_s3 + $0x80] sm:$0xff]  ;;  %v908_v31 = vpack.c.bf16 %v866_v28, %v863_v27  ;;  %v872_v34 = vld [vmem:[%s2996_s3 + $0x78] sm:$0xff]  ;;  %s1763_s20 = sshll.u32 %s2354_s19, 4  ;;  %s1764_s20 = int_to_ptr.vmem [resolvable:$true] %s1763_s20 }
  0xc3   :  { %947 = vmatpush1.bf16.msra.mxu0 %v905_v25  ;;  %v912_v32 = vpack.c.bf16 %v873_v30, %v870_v29  ;;  %v869_v33 = vld [vmem:[%s2996_s3 + $0x60] sm:$0xff]  ;;  %v876_v35 = vld [vmem:[%s2996_s3 + $0x98] sm:$0xff]  ;;  %v879_v36 = vld [vmem:[%s2996_s3 + $0xb0] sm:$0xff]  ;;  %s2290_s21 = scalar_lea.vmem %s1764_s20, 256  ;;  %p2295_p6 = scmp.lt.s32.totalorder %s1764_s20, %s1764_s20 }
  0xc4   :  { %948 = vmatprep.subr.bf16.mxu0 %v909_v26  ;;  %v911_v37 = vpack.c.bf16 %v872_v34, %v869_v33  ;;  %v915_v38 = vpack.c.bf16 %v879_v36, %v876_v35  ;;  %v875_v39 = vld [vmem:[%s2996_s3 + $0x90] sm:$0xff]  ;;  %v878_v40 = vld [vmem:[%s2996_s3 + $0xa8] sm:$0xff]  ;;  %v885_v42 = vld [vmem:[%s2996_s3 + $0xe0] sm:$0xff]  ;;  %p2291_p5 = scmp.ne.s32.totalorder %s1764_s20, %s2290_s21  ;;  %p2296_p7 = scmp.lt.s32.totalorder %s2290_s21, %s2290_s21 }
  0xc5   :  { %v882_v41 = vld [vmem:[%s2996_s3 + $0xc8] sm:$0xff]  ;;  %v859_v43 = vld [vmem:[%s2996_s3 + $0x10] sm:$0xff]  ;;  %v914_v45 = vpack.c.bf16 %v878_v40, %v875_v39  ;;  %v865_v47 = vld [vmem:[%s2996_s3 + $0x40] sm:$0xff] }
  0xc6   :  { %v862_v44 = vld [vmem:[%s2996_s3 + $0x28] sm:$0xff]  ;;  %v868_v48 = vld [vmem:[%s2996_s3 + $0x58] sm:$0xff]  ;;  %v918_v49 = vpack.c.bf16 %v885_v42, %v882_v41  ;;  %v881_v50 = vld [vmem:[%s2996_s3 + $0xc0] sm:$0xff]  ;;  %p2297_p8 = por %p2296_p7, %p2295_p6 }
  0xc7   :  { %949 = vmatpush1.bf16.msra.mxu0 %v908_v31  ;;  %v907_v46 = vpack.c.bf16 %v862_v44, %v859_v43  ;;  %v884_v51 = vld [vmem:[%s2996_s3 + $0xd8] sm:$0xff]  ;;  %v891_v53 = vld [vmem:[%s2996_s3 + $0x110] sm:$0xff]  ;;  %v910_v54 = vpack.c.bf16 %v868_v48, %v865_v47  ;;  %v874_v56 = vld [vmem:[%s2996_s3 + $0x88] sm:$0xff]  ;;  %v931_v31 = vlaneseq }
  0xc8   :  { %950 = vmatprep.subr.bf16.mxu0 %v912_v32  ;;  %v888_v52 = vld [vmem:[%s2996_s3 + $0xf8] sm:$0xff]  ;;  %v871_v55 = vld [vmem:[%s2996_s3 + $0x70] sm:$0xff]  ;;  %v917_v57 = vpack.c.bf16 %v884_v51, %v881_v50  ;;  %v890_v60 = vld [vmem:[%s2996_s3 + $0x108] sm:$0xff]  ;;  %p2298_p9 = pnand %p2297_p8, %p2291_p5 }
  0xc9   :  { %2170 = vmatpush3.bf16.msra.mxu1 %v907_v46  ;;  %v921_v58 = vpack.c.bf16 %v891_v53, %v888_v52  ;;  %v887_v59 = vld [vmem:[%s2996_s3 + $0xf0] sm:$0xff]  ;;  %v894_v61 = vld [vmem:[%s2996_s3 + $0x128] sm:$0xff]  ;;  %v897_v62 = vld [vmem:[%s2996_s3 + $0x140] sm:$0xff]  ;;  %v913_v63 = vpack.c.bf16 %v874_v56, %v871_v55  ;;  %v2630_v32 = vshrl.u32 %v931_v31, 7 }
  0xca   :  { %2171 = vmatprep.subr.bf16.mxu1 %v2350_v17  ;;  %v877_v0 = vld [vmem:[%s2996_s3 + $0xa0] sm:$0xff]  ;;  %v880_v1 = vld [vmem:[%s2996_s3 + $0xb8] sm:$0xff]  ;;  %v920_v2 = vpack.c.bf16 %v890_v60, %v887_v59  ;;  %v924_v3 = vpack.c.bf16 %v897_v62, %v894_v61  ;;  %v903_v7 = vld [vmem:[%s2996_s3 + $0x170] sm:$0xff]  ;;  %v1034_v62 = vand.u32 127, %v931_v31 }
  0xcb   :  { %951 = vmatpush1.bf16.msra.mxu0 %v911_v37  ;;  %v893_v4 = vld [vmem:[%s2996_s3 + $0x120] sm:$0xff]  ;;  %v896_v5 = vld [vmem:[%s2996_s3 + $0x138] sm:$0xff]  ;;  %v916_v8 = vpack.c.bf16 %v880_v1, %v877_v0  ;;  %v883_v9 = vld [vmem:[%s2996_s3 + $0xd0] sm:$0xff]  ;;  %v2633_v33 = vsub.s32 0, %v2630_v32  ;;  %v937_v35 = vsub.s32 1, %v2630_v32  ;;  %v941_v51 = vsub.s32 2, %v2630_v32 }
  0xcc   :  { %952 = vmatprep.subr.bf16.mxu0 %v915_v38  ;;  %v900_v6 = vld [vmem:[%s2996_s3 + $0x158] sm:$0xff]  ;;  %v886_v10 = vld [vmem:[%s2996_s3 + $0xe8] sm:$0xff]  ;;  %v923_v11 = vpack.c.bf16 %v896_v5, %v893_v4  ;;  %v899_v13 = vld [vmem:[%s2996_s3 + $0x150] sm:$0xff]  ;;  %vm1053_vm2 = vcmp.ge.s32.totalorder %v1034_v62, 8  ;;  %vm1056_vm3 = vcmp.lt.s32.totalorder %v1034_v62, 16  ;;  %vm1044_vm4 = vcmp.lt.s32.totalorder %v1034_v62, 8 }
  0xcd   :  { %2172 = vmatpush3.bf16.msra.mxu1 %v910_v54  ;;  %v927_v12 = vpack.c.bf16 %v903_v7, %v900_v6  ;;  %v902_v14 = vld [vmem:[%s2996_s3 + $0x168] sm:$0xff]  ;;  %v919_v15 = vpack.c.bf16 %v886_v10, %v883_v9  ;;  %v889_v18 = vld [vmem:[%s2996_s3 + $0x100] sm:$0xff]  ;;  %v892_v19 = vld [vmem:[%s2996_s3 + $0x118] sm:$0xff]  ;;  %v2352_v1 = vmov -1e+09  }
  0xce   :  { %2173 = vmatprep.subr.bf16.mxu1 %v2350_v17  ;;  %v926_v20 = vpack.c.bf16 %v902_v14, %v899_v13  ;;  %v2601_v21 = vld [vmem:[#allocation2] sm:$0xff]  ;;  %v2603_v22 = vld [vmem:[#allocation2 + $0x8] sm:$0xff]  ;;  %v922_v23 = vpack.c.bf16 %v892_v19, %v889_v18  ;;  %v895_v25 = vld [vmem:[%s2996_s3 + $0x130] sm:$0xff] }
  0xcf   :  { %953 = vmatpush1.bf16.msra.mxu0 %v914_v45  ;;  %v856_v24 = vpack.c.bf16 %v2603_v22, %v2601_v21  ;;  %v898_v26 = vld [vmem:[%s2996_s3 + $0x148] sm:$0xff]  ;;  %v901_v28 = vld [vmem:[%s2996_s3 + $0x160] sm:$0xff]  ;;  %v904_v29 = vld [vmem:[%s2996_s3 + $0x178] sm:$0xff] }
  0xd0   :  { %954 = vmatprep.subr.bf16.mxu0 %v918_v49  ;;  %v925_v27 = vpack.c.bf16 %v898_v26, %v895_v25  ;;  %v928_v30 = vpack.c.bf16 %v904_v29, %v901_v28  ;;  %v929_v34 = vld [vmem:[%s2997_s4] sm:$0x7]  ;;  %vm1058_vm5 = vmand %vm1053_vm2, %vm1056_vm3  ;;  %v1203_v29 = vld [vmem:[%s2998_s5 + $0x8] sm:$0xff] }
  0xd1   :  { %2174 = vmatpush3.bf16.msra.mxu1 %v913_v63  ;;  %v934_v36 = vrot.slane %v929_v34, %v2633_v33  ;;  %v938_v38 = vrot.slane %v929_v34, %v937_v35  ;;  %v942_v52 = vrot.slane %v929_v34, %v941_v51  ;;  %v1063_v60 = vld [vmem:[%s2994_s1] sm:$0x1]  ;;  %s2353_s1 = smov 64   ;;  %v1205_v34 = vld [vmem:[%s2998_s5 + $0x18] sm:$0xff] }
  0xd2   :  { %2175 = vmatprep.subr.bf16.mxu1 %v2350_v17  ;;  %v2091_v61 = vadd.f32 -1.0, %v1063_v60  ;;  %v1202_v28 = vld [vmem:[%s2998_s5] sm:$0xff]  ;;  %v1209_v51 = vld [vmem:[%s2998_s5 + $0x38] sm:$0xff] }
  0xd3   :  { %955 = vmatpush1.bf16.msra.mxu0 %v917_v57  ;;  %v1210_v31 = vpack.c.bf16 %v1203_v29, %v1202_v28 }
  0xd4   :  { %956 = vmatprep.subr.bf16.mxu0 %v921_v58  ;;  %v1065_v63 = vmul.f32 1e+09, %v2091_v61 }
  0xd5   :  { %2176 = vmatpush3.bf16.msra.mxu1 %v916_v8 }
  0xd6   :  { %2177 = vmatprep.subr.bf16.mxu1 %v2350_v17  ;;  %v1070_v0 = vrot.slane %v1065_v63, %v2633_v33 }
  0xd7   :  { %957 = vmatpush1.bf16.msra.mxu0 %v920_v2  ;;  %v1061_v2 = vsel %vm1044_vm4, 0.0, %v2352_v1 }
  0xd8   :  { %958 = vmatprep.subr.bf16.mxu0 %v924_v3  ;;  %v1062_v3 = vsel %vm1058_vm5, 0.0, %v2352_v1  ;;  %v2656_v4 = vadd.f32 %v1070_v0, %v1061_v2 }
  0xd9   :  { %2178 = vmatpush3.bf16.msra.mxu1 %v919_v15  ;;  %v2658_v5 = vadd.f32 %v1070_v0, %v1062_v3 }
  0xda   :  { %2179 = vmatprep.subr.bf16.mxu1 %v2350_v17 }
  0xdb   :  { %959 = vmatpush1.bf16.msra.mxu0 %v923_v11 }
  0xdc   :  { %960 = vmatprep.subr.bf16.mxu0 %v927_v12 }
  0xdd   :  { %2180 = vmatpush3.bf16.msra.mxu1 %v922_v23 }
  0xde   :  { %2181 = vmatprep.subr.bf16.mxu1 %v2350_v17 }
  0xdf   :  { %961 = vmatpush1.bf16.msra.mxu0 %v926_v20 }
  0xe0   :  { %2201 = vmatprep.subr.bf16.mxu0 %v2350_v17 }
  0xe1   :  { %2182 = vmatpush3.bf16.msra.mxu1 %v925_v27 }
  0xe2   :  { %979 = vmatmul.mubr.bf16.vlgmr.msra.gmra.mrb[0].mxu0 %v856_v24  ;;  %2183 = vmatprep.subr.bf16.mxu1 %v2350_v17 }
  0xe3   :  { %2209 = vmatprep.mubr.msk.bf16.mxu0 %vm2351_vm0, %v2350_v17  ;;  %2202 = vmatpush3.bf16.msra.mxu0 %v1210_v31 }
  0xe4   :  { %2203 = vmatprep.subr.bf16.mxu0 %v2350_v17 }
  0xe5   :  { %2184 = vmatpush3.bf16.msra.mxu1 %v928_v30  ;;  %v1204_v30 = vld [vmem:[%s2998_s5 + $0x10] sm:$0xff] }
  0xe6   :  { %2189 = vmatprep.subr.bf16.mxu1 %v2350_v17 }
  0xe8   :  { %2186 = vmatmul.mubr.bf16.vlgmr.msra.gmra.mrb[0].mxu1 %v856_v24 }
  0xe9   :  { %2191 = vmatprep.mubr.msk.bf16.mxu1 %vm2351_vm0, %v2350_v17 }
 0x1b5   :  { %v980_v37 = vpop.f32.mrb[0].mxu0 }
 0x1b6   :  { %v981_v39 = vadd.f32 %v980_v37, %v934_v36  ;;  %v982_v40 = vpop.f32.mrb[1].mxu0  ;;  %v1206_v37 = vld [vmem:[%s2998_s5 + $0x20] sm:$0xff] }
 0x1b7   :  { %v984_v41 = vpop.f32.mrb[2].mxu0  ;;  %v983_v44 = vadd.f32 %v982_v40, %v938_v38 }
 0x1b8   :  { %v985_v42 = vadd.f32 %v984_v41, %v934_v36  ;;  %v986_v43 = vpop.f32.mrb[3].mxu0  ;;  %v1080_v46 = vmul.f32 0.125, %v981_v39  ;;  %v1211_v36 = vpack.c.bf16 %v1205_v34, %v1204_v30 }
 0x1b9   :  { %v987_v45 = vadd.f32 %v986_v43, %v938_v38  ;;  %v1207_v38 = vld [vmem:[%s2998_s5 + $0x28] sm:$0xff] }
 0x1ba   :  { %v1081_v47 = vmul.f32 0.125, %v985_v42  ;;  %2204 = vmatpush3.bf16.msra.mxu0 %v1211_v36  ;;  %v1212_v39 = vpack.c.bf16 %v1207_v38, %v1206_v37 }
 0x1bb   :  { %v1083_v48 = vpack.c.bf16 %v987_v45, %v983_v44  ;;  %v1023_v53 = vpop.f32.mrb[0].mxu1  ;;  %2205 = vmatprep.subr.bf16.mxu0 %v2350_v17 }
 0x1bc   :  { %v1082_v49 = vpack.c.bf16 %v1081_v47, %v1080_v46  ;;  %v1024_v54 = vadd.f32 %v1023_v53, %v942_v52  ;;  %v2187_v55 = vpop.f32.mrb[1].mxu1 }
 0x1bd   :  { %v1089_v50 = vsel %vm1084_vm1, %v1083_v48, 0  ;;  %v1026_v56 = vpop.f32.mrb[2].mxu1 }
 0x1be   :  { %2190 = vmatpush3.bf16.xpose.msra.mxu1 %v1089_v50  ;;  %v1027_v57 = vadd.f32 %v1026_v56, %v942_v52  ;;  %v2188_v58 = vpop.f32.mrb[3].mxu1  ;;  %2206 = vmatpush3.bf16.msra.mxu0 %v1212_v39  ;;  %v1208_v50 = vld [vmem:[%s2998_s5 + $0x30] sm:$0xff] }
 0x1bf   :  { %2195 = vmatprep.subr.bf16.mxu1 %v2350_v17  ;;  %2207 = vmatprep.subr.bf16.mxu0 %v2350_v17  ;;  %v1213_v52 = vpack.c.bf16 %v1209_v51, %v1208_v50 }
 0x1c0   :  { %v2648_v59 = vpack.c.bf16 %v1027_v57, %v1024_v54 }
 0x1c2   :  { %2208 = vmatpush3.bf16.msra.mxu0 %v1213_v52 }
 0x1c3   :  { %2225 = vmatprep.subr.bf16.mxu0 %v2350_v17 }
 0x1c5   :  { %2192 = vmatmul.mubr.msk.bf16.vlgmr.msra.gmra.mrb[4].mxu1 %vm1084_vm1, %v1082_v49 }
 0x1c6   :  { %2197 = vmatprep.mubr.msk.bf16.mxu1 %vm2351_vm0, %v2350_v17  ;;  %2196 = vmatpush3.bf16.msra.mxu1 %v2648_v59 }
 0x1c7   :  { %2213 = vmatprep.subr.bf16.mxu1 %v2350_v17 }
 0x298   :  { %v1125_v6 = vpop.f32.mrb[4].mxu1 }
 0x299   :  { %v1126_v7 = vadd.f32 %v1125_v6, %v2656_v4  ;;  %v2193_v8 = vpop.f32.mrb[5].mxu1 }
 0x29a   :  { %v1128_v9 = vpop.f32.mrb[6].mxu1 }
 0x29b   :  { %v1129_v10 = vadd.f32 %v1128_v9, %v2658_v5  ;;  %v2194_v11 = vpop.f32.mrb[7].mxu1  ;;  %v1133_v12 = vsel %vm1132_vm6, %v1126_v7, -inf }
 0x29c   :  { %1134 = vmax.xlane.f32.xlu0 %v1133_v12 }
 0x29d   :  { %v1136_v13 = vsel %vm1132_vm6, %v1129_v10, -inf }
 0x2a0   :  { %1137 = vmax.xlane.f32.xlu0 %v1136_v13  ;;  %v1385_v13 = vld [vmem:[%s2998_s5 + $0x40] sm:$0xff] }
 0x2b6   :  { %1264 = vrot.lane.b32.xlu0 %v1083_v48, %s2353_s1 }
 0x329   :  { %v1135_v14 = vpop.xlane.xlu0 %1134 }
 0x32a   :  { %v1139_v15 = vsub.f32 %v1126_v7, %v1135_v14  ;;  %v1386_v14 = vld [vmem:[%s2998_s5 + $0x48] sm:$0xff] }
 0x32c   :  { %v1141_v18 = vmul.f32 1.442695, %v1139_v15  ;;  %v1387_v15 = vld [vmem:[%s2998_s5 + $0x50] sm:$0xff] }
 0x32d   :  { %v1138_v19 = vpop.xlane.xlu0 %1137 }
 0x32e   :  { %2246 = vpow2.f32 %v1141_v18  ;;  %v1140_v20 = vsub.f32 %v1129_v10, %v1138_v19  ;;  %v1393_v18 = vpack.c.bf16 %v1386_v14, %v1385_v13  ;;  %v1388_v19 = vld [vmem:[%s2998_s5 + $0x58] sm:$0xff] }
 0x32f   :  { %v1494_v13 = vld [vmem:[%s2999_s6 + $0x58] sm:$0xff] }
 0x330   :  { %v1143_v23 = vmul.f32 1.442695, %v1140_v20  ;;  %v1394_v20 = vpack.c.bf16 %v1388_v19, %v1387_v15  ;;  %v1491_v15 = vld [vmem:[%s2999_s6 + $0x40] sm:$0xff] }
 0x331   :  { %v1265_v46 = vpop.permute.xlu0 %1264 }
 0x332   :  { %2248 = vpow2.f32 %v1143_v23  ;;  %v1270_v48 = vsel %vm1084_vm1, %v1265_v46, 0  ;;  %v1390_v23 = vld [vmem:[%s2998_s5 + $0x68] sm:$0xff] }
 0x338   :  { %v2247_v24 = vpop.eup %2246 }
 0x339   :  { %v1145_v25 = vsel %vm1132_vm6, %v2247_v24, 0.0 }
 0x33a   :  { %1146 = vadd.xlane.f32.xlu1 %v1145_v25 }
 0x33c   :  { %v2249_v26 = vpop.eup %2248 }
 0x33d   :  { %v1148_v27 = vsel %vm1132_vm6, %v2249_v26, 0.0 }
 0x33e   :  { %1149 = vadd.xlane.f32.xlu1 %v1148_v27 }
 0x34f   :  { %1261 = vrot.lane.b32.xlu1 %v1082_v49, %s2353_s1 }
 0x3c7   :  { %v1147_v40 = vpop.xlane.xlu1 %1146 }
 0x3c8   :  { %2250 = vrcp.f32 %v1147_v40  ;;  %v1392_v40 = vld [vmem:[%s2998_s5 + $0x78] sm:$0xff] }
 0x3cb   :  { %v1150_v41 = vpop.xlane.xlu1 %1149 }
 0x3cc   :  { %2252 = vrcp.f32 %v1150_v41 }
 0x3cf   :  { %v1262_v49 = vpop.permute.xlu1 %1261 }
 0x3d2   :  { %v2251_v42 = vpop.eup %2250 }
 0x3d3   :  { %v1153_v44 = vmul.f32 %v2251_v42, %v2247_v24 }
 0x3d6   :  { %v2253_v43 = vpop.eup %2252 }
 0x3d7   :  { %v1154_v45 = vmul.f32 %v2253_v43, %v2249_v26 }
 0x3d9   :  { %v1155_v47 = vpack.c.bf16 %v1154_v45, %v1153_v44 }
 0x3db   :  { %2198 = vmatmul.mubr.msk.bf16.vlgmr.msra.gmra.mrb[8].mxu1 %vm1132_vm6, %v1155_v47 }
 0x3dc   :  { %2214 = vmatpush3.bf16.xpose.msra.mxu1 %v1270_v48  ;;  %2215 = vmatprep.mubr.msk.bf16.mxu1 %vm2351_vm0, %v2350_v17 }
 0x3dd   :  { %2219 = vmatprep.subr.bf16.mxu1 %v2350_v17 }
 0x3e3   :  { %2216 = vmatmul.mubr.msk.bf16.vlgmr.msra.gmra.mrb[12].mxu1 %vm1084_vm1, %v1262_v49 }
 0x3e4   :  { %2221 = vmatprep.mubr.msk.bf16.mxu1 %vm2351_vm0, %v2350_v17 }
 0x4ae   :  { %v1194_v53 = vpop.f32.mrb[8].mxu1 }
 0x4af   :  { %v2199_v54 = vpop.f32.mrb[9].mxu1 }
 0x4b0   :  { %v1197_v55 = vpop.f32.mrb[10].mxu1 }
 0x4b1   :  { %v1201_v56 = vpack.c.bf16 %v1197_v55, %v1194_v53  ;;  %v2200_v57 = vpop.f32.mrb[11].mxu1 }
 0x4b2   :  { %v1484_v57 = vld [vmem:[%s2999_s6 + $0x8] sm:$0xff] }
 0x4b3   :  { %2210 = vmatmul.mubr.msk.bf16.vlgmr.msra.gmra.mrb[4].mxu0 %vm1084_vm1, %v1201_v56 }
 0x4b4   :  { %2233 = vmatprep.mubr.msk.bf16.mxu0 %vm2351_vm0, %v2350_v17  ;;  %2226 = vmatpush3.bf16.msra.mxu0 %v1393_v18  ;;  %v1493_v18 = vld [vmem:[%s2999_s6 + $0x50] sm:$0xff] }
 0x4b5   :  { %2227 = vmatprep.subr.bf16.mxu0 %v2350_v17  ;;  %v1519_v19 = vpack.c.bf16 %v1493_v18, %v1491_v15  ;;  %v1644_v18 = vld [vmem:[%s3001_s8 + $0xa0] sm:$0xff] }
 0x4b6   :  { %v1306_v58 = vpop.f32.mrb[12].mxu1 }
 0x4b7   :  { %v1307_v60 = vadd.f32 %v1306_v58, %v2656_v4  ;;  %v2217_v61 = vpop.f32.mrb[13].mxu1  ;;  %v1486_v58 = vld [vmem:[%s2999_s6 + $0x18] sm:$0xff] }
 0x4b8   :  { %v1309_v62 = vpop.f32.mrb[14].mxu1  ;;  %2228 = vmatpush3.bf16.msra.mxu0 %v1394_v20  ;;  %v1516_v61 = vpack.c.bf16 %v1486_v58, %v1484_v57  ;;  %v1496_v20 = vld [vmem:[%s2999_s6 + $0x68] sm:$0xff] }
 0x4b9   :  { %v1310_v63 = vadd.f32 %v1309_v62, %v2658_v5  ;;  %v2218_v0 = vpop.f32.mrb[15].mxu1  ;;  %v1313_v1 = vsel %vm1132_vm6, %v1307_v60, -inf  ;;  %2229 = vmatprep.subr.bf16.mxu0 %v2350_v17  ;;  %v1490_v62 = vld [vmem:[%s2999_s6 + $0x38] sm:$0xff] }
 0x4ba   :  { %1314 = vmax.xlane.f32.xlu1 %v1313_v1 }
 0x4bb   :  { %v1316_v2 = vsel %vm1132_vm6, %v1310_v63, -inf }
 0x4bc   :  { %1317 = vmax.xlane.f32.xlu0 %v1316_v2 }
 0x547   :  { %v1315_v3 = vpop.xlane.xlu1 %1314 }
 0x548   :  { %v1319_v6 = vsub.f32 %v1307_v60, %v1315_v3  ;;  %v1483_v60 = vld [vmem:[%s2999_s6] sm:$0xff] }
 0x549   :  { %v1318_v7 = vpop.xlane.xlu0 %1317 }
 0x54a   :  { %v1321_v8 = vmul.f32 1.442695, %v1319_v6  ;;  %v1320_v9 = vsub.f32 %v1310_v63, %v1318_v7 }
 0x54c   :  { %2254 = vpow2.f32 %v1321_v8  ;;  %v1323_v10 = vmul.f32 1.442695, %v1320_v9 }
 0x54e   :  { %2256 = vpow2.f32 %v1323_v10 }
 0x556   :  { %v2255_v4 = vpop.eup %2254 }
 0x557   :  { %v1325_v11 = vsel %vm1132_vm6, %v2255_v4, 0.0 }
 0x558   :  { %v2257_v12 = vpop.eup %2256  ;;  %1326 = vadd.xlane.f32.xlu0 %v1325_v11  ;;  %v1489_v11 = vld [vmem:[%s2999_s6 + $0x30] sm:$0xff] }
 0x559   :  { %v1328_v5 = vsel %vm1132_vm6, %v2257_v12, 0.0 }
 0x55a   :  { %1329 = vadd.xlane.f32.xlu1 %v1328_v5  ;;  %v1492_v5 = vld [vmem:[%s2999_s6 + $0x48] sm:$0xff] }
 0x55b   :  { %v1520_v14 = vpack.c.bf16 %v1494_v13, %v1492_v5  ;;  %v1626_v13 = vld [vmem:[%s3001_s8 + $0x10] sm:$0xff] }
 0x56e   :  { %1337 = vrot.lane.b32.xlu0 %v2648_v59, %s2353_s1  ;;  %v1389_v59 = vld [vmem:[%s2998_s5 + $0x60] sm:$0xff] }
 0x56f   :  { %v1395_v24 = vpack.c.bf16 %v1390_v23, %v1389_v59  ;;  %v1498_v59 = vld [vmem:[%s2999_s6 + $0x78] sm:$0xff] }
 0x570   :  { %v1522_v23 = vpack.c.bf16 %v1498_v59, %v1496_v20  ;;  %v1628_v59 = vld [vmem:[%s3001_s8 + $0x20] sm:$0xff] }
 0x571   :  { %2230 = vmatpush3.bf16.msra.mxu0 %v1395_v24  ;;  %v1495_v24 = vld [vmem:[%s2999_s6 + $0x60] sm:$0xff] }
 0x572   :  { %2231 = vmatprep.subr.bf16.mxu0 %v2350_v17  ;;  %v1391_v17 = vld [vmem:[%s2998_s5 + $0x70] sm:$0xff] }
 0x573   :  { %v1396_v41 = vpack.c.bf16 %v1392_v40, %v1391_v17  ;;  %v1505_v17 = vld [vmem:[%s2999_s6 + $0xb0] sm:$0xff] }
 0x575   :  { %2232 = vmatpush3.bf16.msra.mxu0 %v1396_v41  ;;  %v1508_v41 = vld [vmem:[%s2999_s6 + $0xc8] sm:$0xff] }
 0x586   :  { %v1251_v25 = vpop.f32.mrb[4].mxu0 }
 0x587   :  { %v2211_v26 = vpop.f32.mrb[5].mxu0 }
 0x588   :  { %v1254_v27 = vpop.f32.mrb[6].mxu0 }
 0x589   :  { %v2212_v28 = vpop.f32.mrb[7].mxu0 }
 0x58a   :  { %v1502_v28 = vld [vmem:[%s2999_s6 + $0x98] sm:$0xff] }
 0x5e5   :  { %v1327_v29 = vpop.xlane.xlu0 %1326 }
 0x5e6   :  { %2258 = vrcp.f32 %v1327_v29 }
 0x5e7   :  { %v1330_v30 = vpop.xlane.xlu1 %1329 }
 0x5e8   :  { %2260 = vrcp.f32 %v1330_v30  ;;  %v1499_v30 = vld [vmem:[%s2999_s6 + $0x80] sm:$0xff] }
 0x5e9   :  { %v1338_v31 = vpop.permute.xlu0 %1337 }
 0x5ea   :  { %2220 = vmatpush3.bf16.msra.mxu1 %v1338_v31  ;;  %v1501_v31 = vld [vmem:[%s2999_s6 + $0x90] sm:$0xff] }
 0x5eb   :  { %1543 = vmatprep.subr.bf16.mxu1 %v1516_v61  ;;  %v2099_v61 = vld [vmem:[%s3002_s9 + $0x1] ss:$0 sm:$0xff] }
 0x5f0   :  { %v2259_v34 = vpop.eup %2258 }
 0x5f1   :  { %v1333_v37 = vmul.f32 %v2259_v34, %v2255_v4  ;;  %v1487_v4 = vld [vmem:[%s2999_s6 + $0x20] sm:$0xff]  ;;  %v1523_v34 = vpack.c.bf16 %v1501_v31, %v1499_v30 }
 0x5f2   :  { %v2261_v36 = vpop.eup %2260  ;;  %v1648_v31 = vld [vmem:[%s3001_s8 + $0xc0] sm:$0xff] }
 0x5f3   :  { %v1334_v38 = vmul.f32 %v2261_v36, %v2257_v12  ;;  %v1517_v12 = vpack.c.bf16 %v1489_v11, %v1487_v4  ;;  %v1504_v36 = vld [vmem:[%s2999_s6 + $0xa8] sm:$0xff]  ;;  %v1642_v11 = vld [vmem:[%s3001_s8 + $0x90] sm:$0xff] }
 0x5f5   :  { %v1335_v39 = vpack.c.bf16 %v1334_v38, %v1333_v37  ;;  %v1506_v37 = vld [vmem:[%s2999_s6 + $0xb8] sm:$0xff] }
 0x5f6   :  { %v1526_v38 = vpack.c.bf16 %v1506_v37, %v1504_v36  ;;  %v1632_v37 = vld [vmem:[%s3001_s8 + $0x40] sm:$0xff] }
 0x5f7   :  { %2222 = vmatmul.mubr.msk.bf16.vlgmr.msra.gmra.mrb[16].mxu1 %vm1132_vm6, %v1335_v39  ;;  %v1503_v39 = vld [vmem:[%s2999_s6 + $0xa0] sm:$0xff] }
 0x5f8   :  { %1575 = vmatprep.mubr.bf16.mxu1 %v2349_v16  ;;  %v2092_v16 = vld [vmem:[%s3002_s9] ss:$0 sm:$0xff]  ;;  %v1525_v40 = vpack.c.bf16 %v1505_v17, %v1503_v39  ;;  %v1650_v17 = vld [vmem:[%s3001_s8 + $0xd0] sm:$0xff] }
 0x5f9   :  { %v1258_v47 = vadd.f32 %v2092_v16, %v1251_v25  ;;  %v1259_v49 = vadd.f32 %v2092_v16, %v1254_v27  ;;  %v1497_v25 = vld [vmem:[%s2999_s6 + $0x70] sm:$0xff]  ;;  %v1500_v27 = vld [vmem:[%s2999_s6 + $0x88] sm:$0xff] }
 0x5fa   :  { %v1521_v26 = vpack.c.bf16 %v1497_v25, %v1495_v24  ;;  %v1524_v29 = vpack.c.bf16 %v1502_v28, %v1500_v27  ;;  %v1512_v16 = vld [vmem:[%s2999_s6 + $0xe8] sm:$0xff]  ;;  %v1646_v25 = vld [vmem:[%s3001_s8 + $0xb0] sm:$0xff] }
 0x5fb   :  { %v1630_v28 = vld [vmem:[%s3001_s8 + $0x30] sm:$0xff] }
 0x6ca   :  { %v1377_v42 = vpop.f32.mrb[16].mxu1 }
 0x6cb   :  { %v2223_v43 = vpop.f32.mrb[17].mxu1 }
 0x6cc   :  { %v1380_v44 = vpop.f32.mrb[18].mxu1 }
 0x6cd   :  { %v1384_v45 = vpack.c.bf16 %v1380_v44, %v1377_v42  ;;  %v2224_v46 = vpop.f32.mrb[19].mxu1  ;;  %v1510_v42 = vld [vmem:[%s2999_s6 + $0xd8] sm:$0xff]  ;;  %v1507_v44 = vld [vmem:[%s2999_s6 + $0xc0] sm:$0xff] }
 0x6ce   :  { %v1528_v43 = vpack.c.bf16 %v1510_v42, %v1508_v41  ;;  %v1634_v42 = vld [vmem:[%s3001_s8 + $0x50] sm:$0xff] }
 0x6cf   :  { %2234 = vmatmul.mubr.msk.bf16.vlgmr.msra.gmra.mrb[8].mxu0 %vm1084_vm1, %v1384_v45  ;;  %v1509_v45 = vld [vmem:[%s2999_s6 + $0xd0] sm:$0xff] }
 0x6d0   :  { %v1527_v46 = vpack.c.bf16 %v1509_v45, %v1507_v44  ;;  %v1652_v45 = vld [vmem:[%s3001_s8 + $0xe0] sm:$0xff] }
 0x7a2   :  { %v1434_v48 = vpop.f32.mrb[8].mxu0 }
 0x7a3   :  { %v1441_v50 = vadd.f32 %v1434_v48, %v1258_v47  ;;  %v2235_v51 = vpop.f32.mrb[9].mxu0  ;;  %v1514_v47 = vld [vmem:[%s2999_s6 + $0xf8] sm:$0xff]  ;;  %v1511_v48 = vld [vmem:[%s2999_s6 + $0xe0] sm:$0xff] }
 0x7a4   :  { %v1437_v52 = vpop.f32.mrb[10].mxu0 }
 0x7a5   :  { %v1442_v53 = vadd.f32 %v1437_v52, %v1259_v49  ;;  %v2236_v54 = vpop.f32.mrb[11].mxu0  ;;  %v1445_v55 = vadd.f32 %v1441_v50, %v2601_v21  ;;  %v1485_v21 = vld [vmem:[%s2999_s6 + $0x10] sm:$0xff]  ;;  %v1530_v49 = vpack.c.bf16 %v1514_v47, %v1512_v16  ;;  %v1636_v47 = vld [vmem:[%s3001_s8 + $0x60] sm:$0xff] }
 0x7a6   :  { %v1515_v63 = vpack.c.bf16 %v1485_v21, %v1483_v60  ;;  %v1513_v50 = vld [vmem:[%s2999_s6 + $0xf0] sm:$0xff] }
 0x7a7   :  { %1447 = vadd.xlane.f32.xlu1 %v1445_v55  ;;  %v1446_v56 = vadd.f32 %v1442_v53, %v2603_v22  ;;  %v1488_v22 = vld [vmem:[%s2999_s6 + $0x28] sm:$0xff]  ;;  %v1529_v51 = vpack.c.bf16 %v1513_v50, %v1511_v48  ;;  %v1654_v50 = vld [vmem:[%s3001_s8 + $0xf0] sm:$0xff] }
 0x7a8   :  { %v1518_v0 = vpack.c.bf16 %v1490_v62, %v1488_v22  ;;  %1544 = vmatpush1.bf16.msra.mxu1 %v1515_v63  ;;  %v2100_v63 = vld [vmem:[%s3002_s9 + $0x2] ss:$0 sm:$0xff]  ;;  %v1637_v48 = vld [vmem:[%s3001_s8 + $0x68] sm:$0xff] }
 0x7aa   :  { %1545 = vmatprep.subr.bf16.mxu1 %v1518_v0 }
 0x7ab   :  { %1449 = vadd.xlane.f32.xlu1 %v1446_v56 }
 0x7ac   :  { %1546 = vmatpush1.bf16.msra.mxu1 %v1517_v12  ;;  %v1643_v12 = vld [vmem:[%s3001_s8 + $0x98] sm:$0xff] }
 0x7ad   :  { %1547 = vmatprep.subr.bf16.mxu1 %v1520_v14  ;;  %v1665_v5 = vpack.c.bf16 %v1643_v12, %v1642_v11  ;;  %v1627_v14 = vld [vmem:[%s3001_s8 + $0x18] sm:$0xff] }
 0x7ae   :  { %v1657_v15 = vpack.c.bf16 %v1627_v14, %v1626_v13 }
 0x7b0   :  { %1548 = vmatpush1.bf16.msra.mxu1 %v1519_v19  ;;  %v1645_v19 = vld [vmem:[%s3001_s8 + $0xa8] sm:$0xff] }
 0x7b1   :  { %1549 = vmatprep.subr.bf16.mxu1 %v1522_v23  ;;  %v1666_v20 = vpack.c.bf16 %v1645_v19, %v1644_v18  ;;  %v1629_v23 = vld [vmem:[%s3001_s8 + $0x28] sm:$0xff] }
 0x7b2   :  { %v1658_v24 = vpack.c.bf16 %v1629_v23, %v1628_v59 }
 0x7b4   :  { %1550 = vmatpush1.bf16.msra.mxu1 %v1521_v26  ;;  %v1647_v26 = vld [vmem:[%s3001_s8 + $0xb8] sm:$0xff] }
 0x7b5   :  { %1551 = vmatprep.subr.bf16.mxu1 %v1524_v29  ;;  %v1667_v27 = vpack.c.bf16 %v1647_v26, %v1646_v25  ;;  %v1631_v29 = vld [vmem:[%s3001_s8 + $0x38] sm:$0xff] }
 0x7b6   :  { %v1659_v30 = vpack.c.bf16 %v1631_v29, %v1630_v28 }
 0x7b8   :  { %1552 = vmatpush1.bf16.msra.mxu1 %v1523_v34  ;;  %v1649_v34 = vld [vmem:[%s3001_s8 + $0xc8] sm:$0xff] }
 0x7b9   :  { %1553 = vmatprep.subr.bf16.mxu1 %v1526_v38  ;;  %v1668_v36 = vpack.c.bf16 %v1649_v34, %v1648_v31  ;;  %v1633_v38 = vld [vmem:[%s3001_s8 + $0x48] sm:$0xff] }
 0x7ba   :  { %v1660_v39 = vpack.c.bf16 %v1633_v38, %v1632_v37 }
 0x7bc   :  { %1554 = vmatpush1.bf16.msra.mxu1 %v1525_v40  ;;  %v1651_v40 = vld [vmem:[%s3001_s8 + $0xd8] sm:$0xff] }
 0x7bd   :  { %1555 = vmatprep.subr.bf16.mxu1 %v1528_v43  ;;  %v1669_v41 = vpack.c.bf16 %v1651_v40, %v1650_v17  ;;  %v1635_v43 = vld [vmem:[%s3001_s8 + $0x58] sm:$0xff] }
 0x7be   :  { %v1661_v44 = vpack.c.bf16 %v1635_v43, %v1634_v42 }
 0x7c0   :  { %1556 = vmatpush1.bf16.msra.mxu1 %v1527_v46  ;;  %v1653_v46 = vld [vmem:[%s3001_s8 + $0xe8] sm:$0xff] }
 0x7c1   :  { %1557 = vmatprep.subr.bf16.mxu1 %v1530_v49  ;;  %v1670_v16 = vpack.c.bf16 %v1653_v46, %v1652_v45  ;;  %v1662_v49 = vpack.c.bf16 %v1637_v48, %v1636_v47  ;;  %v2101_v45 = vld [vmem:[%s3002_s9 + $0x3] ss:$0 sm:$0xff] }
 0x7c4   :  { %1558 = vmatpush1.bf16.msra.mxu1 %v1529_v51  ;;  %v1655_v51 = vld [vmem:[%s3001_s8 + $0xf8] sm:$0xff] }
 0x834   :  { %v1448_v1 = vpop.xlane.xlu1 %1447 }
 0x835   :  { %v1452_v2 = vmul.f32 0.0078125, %v1448_v1 }
 0x837   :  { %v2768_v3 = vsub.f32 %v1445_v55, %v1452_v2 }
 0x838   :  { %v1450_v6 = vpop.xlane.xlu1 %1449 }
 0x839   :  { %v1453_v7 = vmul.f32 0.0078125, %v1450_v6  ;;  %v1456_v8 = vmul.f32 %v2768_v3, %v2768_v3  ;;  %v1640_v6 = vld [vmem:[%s3001_s8 + $0x80] sm:$0xff] }
 0x83b   :  { %v2772_v9 = vsub.f32 %v1446_v56, %v1453_v7  ;;  %1458 = vadd.xlane.f32.xlu1 %v1456_v8  ;;  %v1641_v7 = vld [vmem:[%s3001_s8 + $0x88] sm:$0xff] }
 0x83c   :  { %v1664_v8 = vpack.c.bf16 %v1641_v7, %v1640_v6 }
 0x83d   :  { %v1457_v10 = vmul.f32 %v2772_v9, %v2772_v9 }
 0x83e   :  { %2147 = vmatprep.subr.bf16.mxu0 %v1664_v8 }
 0x83f   :  { %1460 = vadd.xlane.f32.xlu1 %v1457_v10  ;;  %v1625_v10 = vld [vmem:[%s3001_s8 + $0x8] sm:$0xff] }
 0x8c8   :  { %v1459_v52 = vpop.xlane.xlu1 %1458 }
 0x8c9   :  { %v1462_v53 = vmul.f32 0.0078125, %v1459_v52  ;;  %v1638_v52 = vld [vmem:[%s3001_s8 + $0x70] sm:$0xff] }
 0x8cb   :  { %v1464_v54 = vadd.f32 1e-05, %v1462_v53  ;;  %v1671_v53 = vpack.c.bf16 %v1655_v51, %v1654_v50 }
 0x8cc   :  { %v1461_v55 = vpop.xlane.xlu1 %1460 }
 0x8cd   :  { %2262 = vrsqrt.f32 %v1464_v54  ;;  %v1463_v56 = vmul.f32 0.0078125, %v1461_v55  ;;  %v1639_v54 = vld [vmem:[%s3001_s8 + $0x78] sm:$0xff] }
 0x8ce   :  { %v1663_v55 = vpack.c.bf16 %v1639_v54, %v1638_v52 }
 0x8cf   :  { %v1465_v57 = vadd.f32 1e-05, %v1463_v56  ;;  %v1531_v56 = vld [vmem:[%s3000_s7] sm:$0x3] }
 0x8d1   :  { %2264 = vrsqrt.f32 %v1465_v57  ;;  %v1536_v57 = vrot.slane %v1531_v56, %v2633_v33 }
 0x8d7   :  { %v2263_v58 = vpop.eup %2262 }
 0x8d8   :  { %v1468_v60 = vmul.f32 %v2263_v58, %v2768_v3  ;;  %v1540_v58 = vrot.slane %v1531_v56, %v937_v35 }
 0x8da   :  { %v1474_v62 = vmul.f32 %v2099_v61, %v1468_v60 }
 0x8db   :  { %v2265_v21 = vpop.eup %2264 }
 0x8dc   :  { %v1469_v22 = vmul.f32 %v2265_v21, %v2772_v9  ;;  %v2862_v1 = vadd.f32 %v2100_v63, %v1474_v62  ;;  %v1624_v9 = vld [vmem:[%s3001_s8] sm:$0xff] }
 0x8dd   :  { %v1656_v4 = vpack.c.bf16 %v1625_v10, %v1624_v9 }
 0x8de   :  { %v1475_v0 = vmul.f32 %v2099_v61, %v1469_v22 }
 0x8df   :  { %2148 = vmatpush3.bf16.msra.mxu0 %v1656_v4 }
 0x8e0   :  { %v2864_v2 = vadd.f32 %v2100_v63, %v1475_v0  ;;  %2149 = vmatprep.subr.bf16.mxu0 %v1665_v5 }
 0x8e2   :  { %v1482_v3 = vpack.c.bf16 %v2864_v2, %v2862_v1 }
 0x8e3   :  { %2150 = vmatpush3.bf16.msra.mxu0 %v1657_v15 }
 0x8e4   :  { %1576 = vmatmul.mubr.bf16.vlgmr.msra.gmra.mrb[20].mxu1 %v1482_v3  ;;  %2151 = vmatprep.subr.bf16.mxu0 %v1666_v20 }
 0x8e7   :  { %2152 = vmatpush3.bf16.msra.mxu0 %v1658_v24 }
 0x8e8   :  { %2153 = vmatprep.subr.bf16.mxu0 %v1667_v27 }
 0x8eb   :  { %2154 = vmatpush3.bf16.msra.mxu0 %v1659_v30 }
 0x8ec   :  { %2155 = vmatprep.subr.bf16.mxu0 %v1668_v36 }
 0x8ef   :  { %2156 = vmatpush3.bf16.msra.mxu0 %v1660_v39 }
 0x8f0   :  { %2157 = vmatprep.subr.bf16.mxu0 %v1669_v41 }
 0x8f3   :  { %2158 = vmatpush3.bf16.msra.mxu0 %v1661_v44 }
 0x8f4   :  { %2159 = vmatprep.subr.bf16.mxu0 %v1670_v16 }
 0x8f7   :  { %2160 = vmatpush3.bf16.msra.mxu0 %v1662_v49 }
 0x8f8   :  { %2161 = vmatprep.subr.bf16.mxu0 %v1671_v53 }
 0x8fb   :  { %2162 = vmatpush3.bf16.msra.mxu0 %v1663_v55 }
 0x9b7   :  { %v1577_v60 = vpop.f32.mrb[20].mxu1 }
 0x9b8   :  { %v1578_v61 = vadd.f32 %v1577_v60, %v1536_v57  ;;  %v1579_v21 = vpop.f32.mrb[21].mxu1 }
 0x9b9   :  { %v1580_v22 = vadd.f32 %v1579_v21, %v1540_v58  ;;  %v1581_v62 = vpop.f32.mrb[22].mxu1 }
 0x9ba   :  { %v1586_v63 = vmul.f32 %v1578_v61, %v1578_v61  ;;  %v1582_v0 = vadd.f32 %v1581_v62, %v1536_v57  ;;  %v1583_v3 = vpop.f32.mrb[23].mxu1 }
 0x9bb   :  { %v1587_v6 = vmul.f32 %v1580_v22, %v1580_v22  ;;  %v1584_v7 = vadd.f32 %v1583_v3, %v1540_v58 }
 0x9bc   :  { %v1590_v8 = vmul.f32 %v1586_v63, %v1578_v61  ;;  %v1588_v9 = vmul.f32 %v1582_v0, %v1582_v0 }
 0x9bd   :  { %v1591_v10 = vmul.f32 %v1587_v6, %v1580_v22  ;;  %v1589_v4 = vmul.f32 %v1584_v7, %v1584_v7  ;;  %v2102_v6 = vld [vmem:[%s3002_s9 + $0x4] ss:$0 sm:$0xff] }
 0x9be   :  { %v1594_v11 = vmul.f32 0.044715, %v1590_v8  ;;  %v1592_v12 = vmul.f32 %v1588_v9, %v1582_v0  ;;  %v2103_v8 = vld [vmem:[%s3002_s9 + $0x5] ss:$0 sm:$0xff] }
 0x9bf   :  { %v1595_v33 = vmul.f32 0.044715, %v1591_v10  ;;  %v1593_v5 = vmul.f32 %v1589_v4, %v1584_v7 }
 0x9c0   :  { %v1598_v32 = vadd.f32 %v1594_v11, %v1578_v61  ;;  %v1596_v35 = vmul.f32 0.044715, %v1592_v12 }
 0x9c1   :  { %v1599_v13 = vadd.f32 %v1595_v33, %v1580_v22  ;;  %v1597_v14 = vmul.f32 0.044715, %v1593_v5 }
 0x9c2   :  { %v1602_v15 = vmul.f32 0.7978846, %v1598_v32  ;;  %v1600_v18 = vadd.f32 %v1596_v35, %v1582_v0 }
 0x9c3   :  { %v1603_v19 = vmul.f32 0.7978846, %v1599_v13  ;;  %v1601_v20 = vadd.f32 %v1597_v14, %v1584_v7 }
 0x9c4   :  { %2266 = vtanh.f32 %v1602_v15  ;;  %v1604_v59 = vmul.f32 0.7978846, %v1600_v18 }
 0x9c5   :  { %2268 = vtanh.f32 %v1603_v19  ;;  %v1605_v23 = vmul.f32 0.7978846, %v1601_v20 }
 0x9c6   :  { %2270 = vtanh.f32 %v1604_v59 }
 0x9c7   :  { %2272 = vtanh.f32 %v1605_v23 }
 0x9ce   :  { %v2267_v24 = vpop.eup %2266 }
 0x9cf   :  { %v2269_v25 = vpop.eup %2268  ;;  %v1610_v26 = vadd.f32 1.0, %v2267_v24 }
 0x9d0   :  { %v2271_v27 = vpop.eup %2270  ;;  %v1611_v28 = vadd.f32 1.0, %v2269_v25 }
 0x9d1   :  { %v2273_v29 = vpop.eup %2272  ;;  %v1614_v30 = vmul.f32 0.5, %v1610_v26  ;;  %v1612_v31 = vadd.f32 1.0, %v2271_v27 }
 0x9d2   :  { %v1613_v34 = vadd.f32 1.0, %v2273_v29  ;;  %v1615_v36 = vmul.f32 0.5, %v1611_v28 }
 0x9d3   :  { %v1616_v37 = vmul.f32 0.5, %v1612_v31  ;;  %v1618_v39 = vmul.f32 %v1614_v30, %v1578_v61 }
 0x9d4   :  { %v1617_v38 = vmul.f32 0.5, %v1613_v34  ;;  %v1619_v40 = vmul.f32 %v1615_v36, %v1580_v22 }
 0x9d5   :  { %v1620_v17 = vmul.f32 %v1616_v37, %v1582_v0 }
 0x9d6   :  { %v1621_v41 = vmul.f32 %v1617_v38, %v1584_v7 }
 0x9d7   :  { %v1622_v42 = vpack.c.bf16 %v1620_v17, %v1618_v39 }
 0x9d8   :  { %v1623_v43 = vpack.c.bf16 %v1621_v41, %v1619_v40 }
 0x9da   :  { %1709 = vmatprep.mubr.bf16.mxu0 %v1623_v43 }
 0x9db   :  { %1710 = vmatmul.mubr.bf16.vlgmr.msra.gmra.mrb[12].mxu0 %v1622_v42 }
 0xaae   :  { %v2163_v44 = vpop.f32.mrb[12].mxu0 }
 0xaaf   :  { %v2164_v46 = vpop.f32.mrb[13].mxu0 }
 0xab0   :  { %v2165_v16 = vadd.f32 %v2164_v46, %v2163_v44  ;;  %v2166_v47 = vpop.f32.mrb[14].mxu0 }
 0xab1   :  { %v2167_v48 = vpop.f32.mrb[15].mxu0 }
 0xab2   :  { %v1712_v49 = vadd.f32 %v2165_v16, %v2101_v45  ;;  %v2168_v50 = vadd.f32 %v2167_v48, %v2166_v47 }
 0xab4   :  { %v1715_v51 = vadd.f32 %v2168_v50, %v2101_v45  ;;  %v1720_v52 = vadd.f32 %v1712_v49, %v2862_v1 }
 0xab6   :  { %1722 = vadd.xlane.f32.xlu1 %v1720_v52  ;;  %v1721_v53 = vadd.f32 %v1715_v51, %v2864_v2 }
 0xaba   :  { %1724 = vadd.xlane.f32.xlu1 %v1721_v53 }
 0xb43   :  { %v1723_v54 = vpop.xlane.xlu1 %1722 }
 0xb44   :  { %v1726_v55 = vmul.f32 0.0078125, %v1723_v54 }
 0xb46   :  { %v1728_v56 = vsub.f32 %v1720_v52, %v1726_v55 }
 0xb47   :  { %v1725_v57 = vpop.xlane.xlu1 %1724 }
 0xb48   :  { %v1727_v58 = vmul.f32 0.0078125, %v1725_v57  ;;  %v1730_v60 = vmul.f32 %v1728_v56, %v1728_v56 }
 0xb4a   :  { %v1729_v61 = vsub.f32 %v1721_v53, %v1727_v58  ;;  %1732 = vadd.xlane.f32.xlu0 %v1730_v60 }
 0xb4c   :  { %v1731_v21 = vmul.f32 %v1729_v61, %v1729_v61 }
 0xb4e   :  { %1734 = vadd.xlane.f32.xlu1 %v1731_v21 }
 0xbd7   :  { %v1733_v22 = vpop.xlane.xlu0 %1732 }
 0xbd8   :  { %v1736_v62 = vmul.f32 0.0078125, %v1733_v22 }
 0xbda   :  { %v1738_v63 = vadd.f32 1e-05, %v1736_v62 }
 0xbdb   :  { %v1735_v0 = vpop.xlane.xlu1 %1734 }
 0xbdc   :  { %2274 = vrsqrt.f32 %v1738_v63  ;;  %v1737_v1 = vmul.f32 0.0078125, %v1735_v0 }
 0xbde   :  { %v1739_v3 = vadd.f32 1e-05, %v1737_v1 }
 0xbe0   :  { %2276 = vrsqrt.f32 %v1739_v3 }
 0xbe6   :  { %v2275_v2 = vpop.eup %2274 }
 0xbe7   :  { %v1742_v7 = vmul.f32 %v2275_v2, %v1728_v56 }
 0xbe9   :  { %v1748_v9 = vmul.f32 %v2102_v6, %v1742_v7 }
 0xbea   :  { %v2277_v10 = vpop.eup %2276 }
 0xbeb   :  { %v1743_v4 = vmul.f32 %v2277_v10, %v1729_v61  ;;  %v1754_v11 = vadd.f32 %v2103_v8, %v1748_v9 }
 0xbed   :  { %v1749_v12 = vmul.f32 %v2102_v6, %v1743_v4  ;;  %1756 = vst [vmem:[#allocation6] sm:$0xff] %v1754_v11 }
 0xbef   :  { %v1755_v33 = vadd.f32 %v2103_v8, %v1749_v12 }
 0xbf1   :  { %1757 = vst [vmem:[#allocation6 + $0x8] sm:$0xff] %v1755_v33 }
 0xbf2   :  { %2301 = shalt.err (!%p2298_p9)
}
 0xbf3   :  { %s2302_s22 = scalar_lea.hbm %s3003_s10, 256 }
 0xbf4   :  { %p2303_p10 = scmp.ne.s32.totalorder %s3003_s10, %s2302_s22  ;;  %p2306_p11 = scmp.lt.u32.totalorder %s2302_s22, %s3003_s10 }
 0xbf6   :  { %p2308_p12 = pnand %p2306_p11, %p2303_p10 }
 0xbf8   :  { %2311 = shalt.err (!%p2308_p12)
}
 0xbf9   :  { %s2355_s6 = smov 128   ;;  %s2356_s4 = smov 8  }
 0xbfa   :  { %1769 = dma.vmem_to_hbm [thread:$0]  %s1764_s20, 256, %s3003_s10, [#allocation7], %s2355_s6, %s2355_s6, %s2356_s4  }
 0xbfb   :  { %2346 = dma.done.wait [#allocation7], 256  }
 0xbfc   :  { %2347 = vsyncadd [#allocation7], 4294967040 }
 0xbfd   :  { %1773 = vsyncpa [#allocation7], 1 }
 0xbfe   :  { %1774 = vsyncmov [#allocation3] }
 0xc01   :  { %s1775_s27 = vpop.sfrf %1774 }
 0xc02   :  { %p2104_p13 = scmp.ne.s32.totalorder %s1775_s27, 0 }
 0xc04   :  { %1779 = shalt.err (%p2104_p13)  }
 0xc05   :  { %1781 = vsyncmov [#allocation3 + $0x1] }
 0xc08   :  { %s1782_s28 = vpop.sfrf %1781 }
 0xc09   :  { %p2105_p0 = scmp.ne.s32.totalorder %s1782_s28, 0 }
 0xc0b   :  { %1786 = shalt.err (%p2105_p0)  }
 0xc0c   :  { %1788 = vsyncmov [#allocation3 + $0x2] }
 0xc0f   :  { %s1789_s29 = vpop.sfrf %1788 }
 0xc10   :  { %p2106_p1 = scmp.ne.s32.totalorder %s1789_s29, 0 }
 0xc12   :  { %1793 = shalt.err (%p2106_p1)  }
 0xc13   :  { %1795 = vsyncmov [#allocation3 + $0x3] }
 0xc16   :  { %s1796_s30 = vpop.sfrf %1795 }
 0xc17   :  { %p2107_p2 = scmp.ne.s32.totalorder %s1796_s30, 0 }
 0xc19   :  { %1800 = shalt.err (%p2107_p2)  }
 0xc1a   :  { %1802 = vsyncmov [#allocation3 + $0x4] }
 0xc1d   :  { %s1803_s10 = vpop.sfrf %1802 }
 0xc1e   :  { %p2108_p3 = scmp.ne.s32.totalorder %s1803_s10, 0 }
 0xc20   :  { %1807 = shalt.err (%p2108_p3)  }
 0xc21   :  { %1809 = vsyncmov [#allocation3 + $0x5] }
 0xc24   :  { %s1810_s11 = vpop.sfrf %1809 }
 0xc25   :  { %p2109_p4 = scmp.ne.s32.totalorder %s1810_s11, 0 }
 0xc27   :  { %1814 = shalt.err (%p2109_p4)  }
 0xc28   :  { %1816 = vsyncmov [#allocation3 + $0x6] }
 0xc2b   :  { %s1817_s12 = vpop.sfrf %1816 }
 0xc2c   :  { %p2110_p5 = scmp.ne.s32.totalorder %s1817_s12, 0 }
 0xc2e   :  { %1821 = shalt.err (%p2110_p5)  }
 0xc2f   :  { %1823 = vsyncmov [#allocation3 + $0x7] }
 0xc32   :  { %s1824_s13 = vpop.sfrf %1823 }
 0xc33   :  { %p2111_p6 = scmp.ne.s32.totalorder %s1824_s13, 0 }
 0xc35   :  { %1828 = shalt.err (%p2111_p6)  }
 0xc36   :  { %1830 = vsyncmov [#allocation3 + $0x8] }
 0xc39   :  { %s1831_s14 = vpop.sfrf %1830 }
 0xc3a   :  { %p2112_p7 = scmp.ne.s32.totalorder %s1831_s14, 0 }
 0xc3c   :  { %1835 = shalt.err (%p2112_p7)  }
 0xc3d   :  { %1837 = vsyncmov [#allocation3 + $0x9] }
 0xc40   :  { %s1838_s15 = vpop.sfrf %1837 }
 0xc41   :  { %p2113_p8 = scmp.ne.s32.totalorder %s1838_s15, 0 }
 0xc43   :  { %1842 = shalt.err (%p2113_p8)  }
 0xc44   :  { %1844 = vsyncmov [#allocation3 + $0xa] }
 0xc47   :  { %s1845_s5 = vpop.sfrf %1844 }
 0xc48   :  { %p2114_p9 = scmp.ne.s32.totalorder %s1845_s5, 0 }
 0xc4a   :  { %1849 = shalt.err (%p2114_p9)  }
 0xc4b   :  { %1851 = vsyncmov [#allocation3 + $0xb] }
 0xc4e   :  { %s1852_s7 = vpop.sfrf %1851 }
 0xc4f   :  { %p2115_p10 = scmp.ne.s32.totalorder %s1852_s7, 0 }
 0xc51   :  { %1856 = shalt.err (%p2115_p10)  }
 0xc52   :  { %1858 = vsyncmov [#allocation3 + $0xc] }
 0xc55   :  { %s1859_s8 = vpop.sfrf %1858 }
 0xc56   :  { %p2116_p11 = scmp.ne.s32.totalorder %s1859_s8, 0 }
 0xc58   :  { %1863 = shalt.err (%p2116_p11)  }
 0xc59   :  { %1865 = vsyncmov [#allocation3 + $0xd] }
 0xc5c   :  { %s1866_s16 = vpop.sfrf %1865 }
 0xc5d   :  { %p2117_p12 = scmp.ne.s32.totalorder %s1866_s16, 0 }
 0xc5f   :  { %1870 = shalt.err (%p2117_p12)  }
 0xc60   :  { %1872 = vsyncmov [#allocation3 + $0xe] }
 0xc63   :  { %s1873_s17 = vpop.sfrf %1872 }
 0xc64   :  { %p2118_p13 = scmp.ne.s32.totalorder %s1873_s17, 0 }
 0xc66   :  { %1877 = shalt.err (%p2118_p13)  }
 0xc67   :  { %1879 = vsyncmov [#allocation3 + $0xf] }
 0xc6a   :  { %s1880_s18 = vpop.sfrf %1879 }
 0xc6b   :  { %p2119_p0 = scmp.ne.s32.totalorder %s1880_s18, 0 }
 0xc6d   :  { %1884 = shalt.err (%p2119_p0)  }

</bundles_post_ra>
